<compile_context>
chip_gen: v6e
topology: v6e:2x2x1
jax: 0.10.0
libtpu: 0.0.40
codegen_flags: <defaults>
</compile_context>

<pallas_src>
import math
import functools

import jax
import jax.numpy as jnp
from jax.experimental import pallas as pl
from jax.experimental.pallas import tpu as pltpu


# ----------------------------------------------------------------------------
# ops.group equivalent: feature-space kNN gather (raw neighbors, no diff).
# TODO(synk): fuse the top_k + gather into kernel A via scalar-prefetched neighbor
#             indices + in-kernel DMA gather so the (B*N*K, C) tensor never
#             round-trips HBM; kept in host JAX for now.
# ----------------------------------------------------------------------------
def knn_gather(xt, K):
    # xt: (B, N, C) channels-last
    inner = jnp.einsum("bnc,bmc->bnm", xt, xt)
    sq = jnp.sum(xt * xt, axis=-1)                           # (B, N)
    neg_sq_dist = 2.0 * inner - sq[:, :, None] - sq[:, None, :]
    _, idx = jax.lax.top_k(neg_sq_dist, K)                   # (B, N, K), self included
    return jax.vmap(lambda feat, ids: feat[ids])(xt, idx)    # (B, N, K, C)


# ----------------------------------------------------------------------------
# Kernel A: projections + all-heads neighbor attention + residual + BN1 partial stats.
# ----------------------------------------------------------------------------
def _attn_kernel(x_ref, nbr_ref, wq_ref, wkv_ref, sel_ref, y_ref, stats_ref,
                 *, subtract_center):
    x = x_ref[...]                                   # (TN, C)  f32 (residual path)
    TN, C = x.shape
    K = nbr_ref.shape[0] // TN
    P = wkv_ref.shape[1]                             # Cq + Cv (lane-dense width)
    Cq = P - C                                       # v_out == C (ResLink)

    x16 = x.astype(jnp.bfloat16)

    # q projection (scale 1/sqrt(dq) folded into the weight, zero-padded to P lanes).
    q = jnp.dot(x16, wq_ref[...], preferred_element_type=jnp.float32)       # (TN, P)

    # Fused [k | v] projection of the raw neighbors (bf16 MXU), then algebraic
    # 'diff' fold: (nbr - x) @ Wkv == nbr @ Wkv - broadcast_over_K(x @ Wkv).
    kv = jnp.dot(nbr_ref[...], wkv_ref[...],
                 preferred_element_type=jnp.float32).reshape(TN, K, P)      # (TN, K, P)
    if subtract_center:
        kv_x = jnp.dot(x16, wkv_ref[...], preferred_element_type=jnp.float32)
        kv = kv - kv_x[:, None, :]

    # Energies replicated over each head's value lanes via one 0/1 selector matmul:
    #   e[n, k, c] = sum_{d in q-head(c)} q[n, d] * k_diff[n, k, d]     (c in value lanes)
    prod = (q[:, None, :] * kv).reshape(TN * K, P)                           # f32 VPU
    e = jnp.dot(prod.astype(jnp.bfloat16), sel_ref[...],
                preferred_element_type=jnp.float32).reshape(TN, K, P)

    # Softmax over the K neighbors (per node, per lane) -- full-width vregs throughout.
    e = e - jnp.max(e, axis=1, keepdims=True)
    p = jnp.exp(e)                                                           # (TN, K, P)
    inv = pl.reciprocal(jnp.sum(p, axis=1), approx=False)                    # (TN, P)
    p = p * inv[:, None, :]

    # Attention output: value lanes of sum_k p * kv; lane-slice only the small (TN, P).
    attn = jnp.sum(p * kv, axis=1)[:, Cq:]                                   # (TN, C)

    y = x + attn                                                             # ResLink (f32)
    y_ref[...] = y

    # Per-tile BN1 partial statistics, packed lane-dense into one (1, 2C) row.
    ssum = jnp.sum(y, axis=0, keepdims=True)
    ssq = jnp.sum(y * y, axis=0, keepdims=True)
    stats_ref[0] = jnp.concatenate([ssum, ssq], axis=1)


# ----------------------------------------------------------------------------
# Kernel B: BN1 normalize (precomputed scale/bias) + FF + residual + BN2 partial stats.
# ----------------------------------------------------------------------------
def _bn_ff_kernel(y_ref, scale1_ref, bias1_ref, w1_ref, w2_ref, z_ref, stats_ref):
    y = y_ref[...]                                                           # (TN, C) f32
    xb = y * scale1_ref[...] + bias1_ref[...]                                # BN1 affine
    h = jnp.dot(xb.astype(jnp.bfloat16), w1_ref[...],
                preferred_element_type=jnp.float32)                          # (TN, F)
    h = jnp.where(h >= 0, h, 0.2 * h)                                        # LeakyReLU(0.2)
    f = jnp.dot(h.astype(jnp.bfloat16), w2_ref[...],
                preferred_element_type=jnp.float32)                          # (TN, C)
    z = xb + f                                                               # ResLink (f32)
    z_ref[...] = z

    ssum = jnp.sum(z, axis=0, keepdims=True)
    ssq = jnp.sum(z * z, axis=0, keepdims=True)
    stats_ref[0] = jnp.concatenate([ssum, ssq], axis=1)


# ----------------------------------------------------------------------------
# Wrapper: PyTorch-compatible forward.  x: (B, C, N)  ->  out: (B, C, N)
# ----------------------------------------------------------------------------
def _pick_row_tile(rows, target):
    """Largest multiple-of-8 divisor of `rows` that is <= min(target, rows//2)."""
    if rows <= 8:
        return rows
    target = max(8, min(target, rows))
    if rows >= 16:
        target = min(target, rows // 2)      # keep G >= 2 (v7x: feed both TensorCores)
    t = target - (target % 8)
    while t >= 8:
        if rows % t == 0:
            return t
        t -= 8
    return rows


def neighbor2point_attention(x, params, *, K, num_heads, group_type="diff",
                             eps=1e-5, row_tile=256):
    B, C, N = x.shape
    xt = jnp.transpose(x, (0, 2, 1)).astype(jnp.float32)      # (B, N, C)

    # Raw feature-space kNN gather; 'diff' is folded algebraically inside kernel A.
    nbrs = knn_gather(xt, K)                                   # (B, N, K, C)

    rows = B * N
    x2 = xt.reshape(rows, C)
    TN = _pick_row_tile(rows, row_tile)
    G = rows // TN

    # bf16 for the dominant (rows*K, C) neighbor stream + matmul weights; f32 accumulate.
    nbr_dt = jnp.bfloat16 if (TN * K) % 16 == 0 else jnp.float32
    nbr2 = nbrs.reshape(rows * K, C).astype(nbr_dt)

    wq, wk, wv = params["wq"], params["wk"], params["wv"]
    Cq, Cv = wq.shape[1], wv.shape[1]
    P = Cq + Cv
    dq, dv = Cq // num_heads, Cv // num_heads

    # q weight pre-scaled by 1/sqrt(dq), zero-padded to the fused P-lane width.
    wq_pad = (jnp.zeros((C, P), jnp.float32)
              .at[:, :Cq].set(wq / math.sqrt(dq))).astype(jnp.bfloat16)
    wkv = jnp.concatenate([wk, wv], axis=1).astype(nbr_dt)     # fused [k | v] projection

    # 0/1 head selector: sums each head's dq query lanes into its dv value lanes.
    d_idx = jnp.arange(P)
    c_idx = jnp.arange(P)
    sel = ((d_idx[:, None] < Cq) & (c_idx[None, :] >= Cq) &
           ((d_idx[:, None] // dq) == ((c_idx[None, :] - Cq) // dv))
           ).astype(jnp.bfloat16)                              # (P, P), exact in bf16

    w1 = params["w1"].astype(jnp.bfloat16)
    w2 = params["w2"].astype(jnp.bfloat16)
    Fm = w1.shape[1]

    cparams = pltpu.CompilerParams(
        dimension_semantics=("parallel",),
        vmem_limit_bytes=48 * 1024 * 1024,
    )

    # ---- kernel A: attention + residual + BN1 partial stats ---------------------
    y, stats1 = pl.pallas_call(
        functools.partial(_attn_kernel, subtract_center=(group_type == "diff")),
        out_shape=(jax.ShapeDtypeStruct((rows, C), jnp.float32),
                   jax.ShapeDtypeStruct((G, 1, 2 * C), jnp.float32)),
        grid=(G,),
        in_specs=[
            pl.BlockSpec((TN, C), lambda i: (i, 0)),
            pl.BlockSpec((TN * K, C), lambda i: (i, 0)),
            pl.BlockSpec((C, P), lambda i: (0, 0)),
            pl.BlockSpec((C, P), lambda i: (0, 0)),
            pl.BlockSpec((P, P), lambda i: (0, 0)),
        ],
        out_specs=(pl.BlockSpec((TN, C), lambda i: (i, 0)),
                   pl.BlockSpec((1, 1, 2 * C), lambda i: (i, 0, 0))),
        compiler_params=cparams,
    )(x2, nbr2, wq_pad, wkv, sel)

    # Fold per-tile partial sums into per-channel BN scale/bias (tiny (G, 2C) reduce).
    def bn_affine(stats, gamma, beta):
        s = jnp.sum(stats[:, 0, :C], axis=0)
        ss = jnp.sum(stats[:, 0, C:], axis=0)
        mean = s / rows
        var = jnp.maximum(ss / rows - mean * mean, 0.0)        # biased var (PyTorch fwd)
        scl = gamma * jax.lax.rsqrt(var + eps)
        bias = beta - mean * scl
        return scl.reshape(1, C).astype(jnp.float32), bias.reshape(1, C).astype(jnp.float32)

    scale1, bias1 = bn_affine(stats1, params["gamma1"], params["beta1"])

    # ---- kernel B: BN1 + FF + residual + BN2 partial stats ----------------------
    z, stats2 = pl.pallas_call(
        _bn_ff_kernel,
        out_shape=(jax.ShapeDtypeStruct((rows, C), jnp.float32),
                   jax.ShapeDtypeStruct((G, 1, 2 * C), jnp.float32)),
        grid=(G,),
        in_specs=[
            pl.BlockSpec((TN, C), lambda i: (i, 0)),
            pl.BlockSpec((1, C), lambda i: (0, 0)),
            pl.BlockSpec((1, C), lambda i: (0, 0)),
            pl.BlockSpec((C, Fm), lambda i: (0, 0)),
            pl.BlockSpec((Fm, C), lambda i: (0, 0)),
        ],
        out_specs=(pl.BlockSpec((TN, C), lambda i: (i, 0)),
                   pl.BlockSpec((1, 1, 2 * C), lambda i: (i, 0, 0))),
        compiler_params=cparams,
    )(y, scale1, bias1, w1, w2)

    scale2, bias2 = bn_affine(stats2, params["gamma2"], params["beta2"])

    # BN2 affine left to XLA: fuses with the final transpose (no extra HBM pass / kernel).
    out2 = z * scale2 + bias2
    return jnp.transpose(out2.reshape(B, N, C), (0, 2, 1))     # back to (B, C, N)


# ----------------------------------------------------------------------------
# Pure-JAX f32 reference (same math) for a correctness sanity check.
# NOTE: lax.top_k tie-ordering may not bit-match torch.topk; BN uses training-mode
#       (batch) statistics, matching the nn.BatchNorm1d forward in training.
# ----------------------------------------------------------------------------
def reference_forward(x, params, *, K, num_heads, group_type="diff", eps=1e-5):
    B, C, N = x.shape
    xt = jnp.transpose(x, (0, 2, 1)).astype(jnp.float32)
    nbrs = knn_gather(xt, K)
    if group_type == "diff":
        nbrs = nbrs - xt[:, :, None, :]

    q = xt @ params["wq"]
    k = jnp.einsum("bnkc,cd->bnkd", nbrs, params["wk"])
    v = jnp.einsum("bnkc,cd->bnkd", nbrs, params["wv"])
    H = num_heads
    dq = q.shape[-1] // H
    dv = v.shape[-1] // H
    qh = q.reshape(B, N, H, dq)
    kh = k.reshape(B, N, K, H, dq)
    vh = v.reshape(B, N, K, H, dv)
    e = jnp.einsum("bnhd,bnkhd->bnhk", qh, kh) / math.sqrt(dq)
    a = jax.nn.softmax(e, axis=-1)
    o = jnp.einsum("bnhk,bnkhd->bnhd", a, vh).reshape(B, N, H * dv)
    y = xt + o

    def bn(t, gamma, beta):
        m = jnp.mean(t, axis=(0, 1))
        var = jnp.mean(jnp.square(t - m), axis=(0, 1))
        return gamma * (t - m) / jnp.sqrt(var + eps) + beta

    xb = bn(y, params["gamma1"], params["beta1"])
    h = xb @ params["w1"]
    h = jnp.where(h >= 0, h, 0.2 * h)
    f = h @ params["w2"]
    z = xb + f
    out = bn(z, params["gamma2"], params["beta2"])
    return jnp.transpose(out, (0, 2, 1))


# ----------------------------------------------------------------------------
# Deterministic parameter init (shapes from Neighbor2PointAttention.__init__).
# ----------------------------------------------------------------------------
def init_params(key, *, q_in, q_out, k_in, k_out, v_in, v_out, ff_mid):
    ks = jax.random.split(key, 5)

    def w(k, cin, cout):
        bound = 1.0 / math.sqrt(cin)
        return jax.random.uniform(k, (cin, cout), jnp.float32, -bound, bound)

    return {
        "wq": w(ks[0], q_in, q_out),       # q_conv (Conv2d 1x1, no bias)
        "wk": w(ks[1], k_in, k_out),       # k_conv
        "wv": w(ks[2], v_in, v_out),       # v_conv
        "w1": w(ks[3], v_out, ff_mid),     # ff conv1d 64 -> 128
        "w2": w(ks[4], ff_mid, v_out),     # ff conv1d 128 -> 64
        "gamma1": jnp.ones((v_out,), jnp.float32),   # BN defaults: weight=1, bias=0
        "beta1": jnp.zeros((v_out,), jnp.float32),
        "gamma2": jnp.ones((v_out,), jnp.float32),
        "beta2": jnp.zeros((v_out,), jnp.float32),
    }


if __name__ == "__main__":
    B, C, N = 2, 64, 64          # (batch, channels=q_in=v_out, num_points)
    K = 16                       # neighbors per point
    num_heads = 8
    ff_mid = 128

    key = jax.random.PRNGKey(0)
    pkey, xkey = jax.random.split(key)
    params = init_params(pkey, q_in=C, q_out=C, k_in=C, k_out=C,
                         v_in=C, v_out=C, ff_mid=ff_mid)

    x = jax.random.normal(xkey, (B, C, N), jnp.float32)   # PyTorch layout (B, C, N)

    out = jax.block_until_ready(
        neighbor2point_attention(x, params, K=K, num_heads=num_heads))
    ref = jax.block_until_ready(
        reference_forward(x, params, K=K, num_heads=num_heads))

    assert out.shape == (B, C, N)
    assert bool(jnp.all(jnp.isfinite(out)))
    max_diff = float(jnp.max(jnp.abs(out - ref)))
    mean_diff = float(jnp.mean(jnp.abs(out - ref)))
    # bf16 operands on the neighbor/weight streams (f32 accumulation) -> relaxed tolerance
    assert max_diff < 5e-2, f"mismatch vs reference: max|diff|={max_diff}"
    assert mean_diff < 1e-2, f"mismatch vs reference: mean|diff|={mean_diff}"

    print("KERNEL_OK")
</pallas_src>

<mosaic_0001>
module attributes {stable_mosaic.version = 11 : i64} {
  func.func @_attn_kernel(%arg0: i32, %arg1: memref<64x64xf32, #tpu.memory_space<vmem>>, %arg2: memref<1024x64xbf16, #tpu.memory_space<vmem>>, %arg3: memref<64x128xbf16, #tpu.memory_space<vmem>>, %arg4: memref<64x128xbf16, #tpu.memory_space<vmem>>, %arg5: memref<128x128xbf16, #tpu.memory_space<vmem>>, %arg6: memref<64x64xf32, #tpu.memory_space<vmem>>, %arg7: memref<1x1x128xf32, #tpu.memory_space<vmem>>) attributes {dimension_semantics = [#tpu.dimension_semantics<parallel>], iteration_bounds = array<i64: 2>, scalar_prefetch = 0 : i64, scratch_operands = 0 : i64, tpu.core_type = #tpu.core_type<tc>, window_params = [{transform_indices = @transform_0, window_bounds = array<i64: 64, 64>}, {transform_indices = @transform_1, window_bounds = array<i64: 1024, 64>}, {pipeline_mode = #tpu.pipeline_mode<synchronous>, transform_indices = @transform_2, window_bounds = array<i64: 64, 128>}, {pipeline_mode = #tpu.pipeline_mode<synchronous>, transform_indices = @transform_3, window_bounds = array<i64: 64, 128>}, {pipeline_mode = #tpu.pipeline_mode<synchronous>, transform_indices = @transform_4, window_bounds = array<i64: 128, 128>}, {transform_indices = @transform_5, window_bounds = array<i64: 64, 64>}, {transform_indices = @transform_6, window_bounds = array<i64: 1, 1, 128>}]} {
    %c0 = arith.constant 0 : index
    %c0_0 = arith.constant 0 : index
    %0 = vector.load %arg1[%c0, %c0_0] : memref<64x64xf32, #tpu.memory_space<vmem>>, vector<64x64xf32>
    %1 = arith.truncf %0 : vector<64x64xf32> to vector<64x64xbf16>
    %c0_1 = arith.constant 0 : index
    %c0_2 = arith.constant 0 : index
    %2 = vector.load %arg3[%c0_1, %c0_2] : memref<64x128xbf16, #tpu.memory_space<vmem>>, vector<64x128xbf16>
    %cst = arith.constant dense<0.000000e+00> : vector<64x128xf32>
    %3 = tpu.matmul %1, %2, %cst {dimension_numbers = #tpu.dot_dimension_numbers<[1], [0], [0], [1], [0, 0, 1, 1], [], []>} : vector<64x64xbf16>, vector<64x128xbf16>, vector<64x128xf32> -> vector<64x128xf32>
    %c0_3 = arith.constant 0 : index
    %c0_4 = arith.constant 0 : index
    %4 = vector.load %arg2[%c0_3, %c0_4] : memref<1024x64xbf16, #tpu.memory_space<vmem>>, vector<1024x64xbf16>
    %c0_5 = arith.constant 0 : index
    %c0_6 = arith.constant 0 : index
    %5 = vector.load %arg4[%c0_5, %c0_6] : memref<64x128xbf16, #tpu.memory_space<vmem>>, vector<64x128xbf16>
    %cst_7 = arith.constant dense<0.000000e+00> : vector<1024x128xf32>
    %6 = tpu.matmul %4, %5, %cst_7 {dimension_numbers = #tpu.dot_dimension_numbers<[1], [0], [0], [1], [0, 0, 1, 1], [], []>} : vector<1024x64xbf16>, vector<64x128xbf16>, vector<1024x128xf32> -> vector<1024x128xf32>
    %7 = vector.shape_cast %6 : vector<1024x128xf32> to vector<64x16x128xf32>
    %c0_8 = arith.constant 0 : index
    %c0_9 = arith.constant 0 : index
    %8 = vector.load %arg4[%c0_8, %c0_9] : memref<64x128xbf16, #tpu.memory_space<vmem>>, vector<64x128xbf16>
    %cst_10 = arith.constant dense<0.000000e+00> : vector<64x128xf32>
    %9 = tpu.matmul %1, %8, %cst_10 {dimension_numbers = #tpu.dot_dimension_numbers<[1], [0], [0], [1], [0, 0, 1, 1], [], []>} : vector<64x64xbf16>, vector<64x128xbf16>, vector<64x128xf32> -> vector<64x128xf32>
    %10 = vector.shape_cast %9 : vector<64x128xf32> to vector<64x1x128xf32>
    %11 = vector.broadcast %10 : vector<64x1x128xf32> to vector<64x16x128xf32>
    %12 = arith.subf %7, %11 : vector<64x16x128xf32>
    %13 = vector.shape_cast %3 : vector<64x128xf32> to vector<64x1x128xf32>
    %14 = vector.broadcast %13 : vector<64x1x128xf32> to vector<64x16x128xf32>
    %15 = arith.mulf %14, %12 : vector<64x16x128xf32>
    %16 = vector.shape_cast %15 : vector<64x16x128xf32> to vector<1024x128xf32>
    %17 = arith.truncf %16 : vector<1024x128xf32> to vector<1024x128xbf16>
    %c0_11 = arith.constant 0 : index
    %c0_12 = arith.constant 0 : index
    %18 = vector.load %arg5[%c0_11, %c0_12] : memref<128x128xbf16, #tpu.memory_space<vmem>>, vector<128x128xbf16>
    %cst_13 = arith.constant dense<0.000000e+00> : vector<1024x128xf32>
    %19 = tpu.matmul %17, %18, %cst_13 {dimension_numbers = #tpu.dot_dimension_numbers<[1], [0], [0], [1], [0, 0, 1, 1], [], []>} : vector<1024x128xbf16>, vector<128x128xbf16>, vector<1024x128xf32> -> vector<1024x128xf32>
    %20 = vector.shape_cast %19 : vector<1024x128xf32> to vector<64x16x128xf32>
    %cst_14 = arith.constant dense<0xFF800000> : vector<64x128xf32>
    %21 = vector.multi_reduction <maximumf>, %20, %cst_14 [1] : vector<64x16x128xf32> to vector<64x128xf32>
    %22 = vector.shape_cast %21 : vector<64x128xf32> to vector<64x1x128xf32>
    %23 = vector.broadcast %22 : vector<64x1x128xf32> to vector<64x16x128xf32>
    %24 = arith.subf %20, %23 : vector<64x16x128xf32>
    %25 = math.exp %24 : vector<64x16x128xf32>
    %cst_15 = arith.constant dense<0.000000e+00> : vector<64x128xf32>
    %26 = vector.multi_reduction <add>, %25, %cst_15 [1] : vector<64x16x128xf32> to vector<64x128xf32>
    %27 = tpu.reciprocal %26 : vector<64x128xf32> -> vector<64x128xf32>
    %28 = vector.shape_cast %27 : vector<64x128xf32> to vector<64x1x128xf32>
    %29 = vector.broadcast %28 : vector<64x1x128xf32> to vector<64x16x128xf32>
    %30 = arith.mulf %25, %29 : vector<64x16x128xf32>
    %31 = arith.mulf %30, %12 : vector<64x16x128xf32>
    %cst_16 = arith.constant dense<0.000000e+00> : vector<64x128xf32>
    %32 = vector.multi_reduction <add>, %31, %cst_16 [1] : vector<64x16x128xf32> to vector<64x128xf32>
    %33 = vector.extract_strided_slice %32 {offsets = [0, 64], sizes = [64, 64], strides = [1, 1]} : vector<64x128xf32> to vector<64x64xf32>
    %34 = arith.addf %0, %33 : vector<64x64xf32>
    %c0_17 = arith.constant 0 : index
    %c0_18 = arith.constant 0 : index
    %35 = vector.load %arg6[%c0_17, %c0_18] : memref<64x64xf32, #tpu.memory_space<vmem>>, vector<64x64xf32>
    tpu.vector_store %arg6[%c0_17, %c0_18], %34 {strides = array<i32>} : memref<64x64xf32, #tpu.memory_space<vmem>>, vector<64x64xf32>,
    %cst_19 = arith.constant dense<0.000000e+00> : vector<64xf32>
    %36 = vector.multi_reduction <add>, %34, %cst_19 [0] : vector<64x64xf32> to vector<64xf32>
    %37 = vector.shape_cast %36 : vector<64xf32> to vector<1x64xf32>
    %38 = arith.mulf %34, %34 : vector<64x64xf32>
    %cst_20 = arith.constant dense<0.000000e+00> : vector<64xf32>
    %39 = vector.multi_reduction <add>, %38, %cst_20 [0] : vector<64x64xf32> to vector<64xf32>
    %40 = vector.shape_cast %39 : vector<64xf32> to vector<1x64xf32>
    %41 = tpu.concatenate %37, %40 in 1 : vector<1x64xf32>, vector<1x64xf32> -> vector<1x128xf32>
    %c0_21 = arith.constant 0 : index
    %c0_22 = arith.constant 0 : index
    %c0_23 = arith.constant 0 : index
    %42 = vector.load %arg7[%c0_21, %c0_22, %c0_23] : memref<1x1x128xf32, #tpu.memory_space<vmem>>, vector<1x1x128xf32>
    %43 = vector.shape_cast %42 : vector<1x1x128xf32> to vector<1x128xf32>
    %44 = vector.shape_cast %41 : vector<1x128xf32> to vector<1x1x128xf32>
    tpu.vector_store %arg7[%c0_21, %c0_22, %c0_23], %44 {strides = array<i32>} : memref<1x1x128xf32, #tpu.memory_space<vmem>>, vector<1x1x128xf32>,
    return
  }
  func.func @transform_0(%arg0: i32) -> (i32, i32) {
    %c0_i32 = arith.constant 0 : i32
    %c0_i32_0 = arith.constant 0 : i32
    return %arg0, %c0_i32 : i32, i32
  }
  func.func @transform_1(%arg0: i32) -> (i32, i32) {
    %c0_i32 = arith.constant 0 : i32
    %c0_i32_0 = arith.constant 0 : i32
    return %arg0, %c0_i32 : i32, i32
  }
  func.func @transform_2(%arg0: i32) -> (i32, i32) {
    %c0_i32 = arith.constant 0 : i32
    %c0_i32_0 = arith.constant 0 : i32
    %c0_i32_1 = arith.constant 0 : i32
    return %c0_i32, %c0_i32_0 : i32, i32
  }
  func.func @transform_3(%arg0: i32) -> (i32, i32) {
    %c0_i32 = arith.constant 0 : i32
    %c0_i32_0 = arith.constant 0 : i32
    %c0_i32_1 = arith.constant 0 : i32
    return %c0_i32, %c0_i32_0 : i32, i32
  }
  func.func @transform_4(%arg0: i32) -> (i32, i32) {
    %c0_i32 = arith.constant 0 : i32
    %c0_i32_0 = arith.constant 0 : i32
    %c0_i32_1 = arith.constant 0 : i32
    return %c0_i32, %c0_i32_0 : i32, i32
  }
  func.func @transform_5(%arg0: i32) -> (i32, i32) {
    %c0_i32 = arith.constant 0 : i32
    %c0_i32_0 = arith.constant 0 : i32
    return %arg0, %c0_i32 : i32, i32
  }
  func.func @transform_6(%arg0: i32) -> (i32, i32, i32) {
    %c0_i32 = arith.constant 0 : i32
    %c0_i32_0 = arith.constant 0 : i32
    %c0_i32_1 = arith.constant 0 : i32
    return %arg0, %c0_i32, %c0_i32_0 : i32, i32, i32
  }
}

</mosaic_0001>

<bundles_post_ra>
// kernel: tpu_custom_call.1
= control target key start
LH: loop header
LB: loop body
LE: loop exit
PB: predicated region body
PF: predicated region fallthrough
CT: control target
= control target key end

     0   :  { %12 = vsyncpa [#allocation3], 0  ;;  %s10902_s0 = inlined_call_operand.vmem [shape: f32[128,64], index: 0, kind: input, shape index: {}]   ;;  %s10903_s1 = inlined_call_operand.vmem [shape: bf16[2048,64], index: 1, kind: input, shape index: {}]   ;;  %s10904_s2 = inlined_call_operand.vmem [shape: bf16[64,128], index: 2, kind: input, shape index: {}]   ;;  %s10905_s3 = inlined_call_operand.vmem [shape: bf16[64,128], index: 3, kind: input, shape index: {}]   ;;  %s10906_s4 = inlined_call_operand.vmem [shape: bf16[128,128], index: 4, kind: input, shape index: {}]   ;;  %s10907_s5 = inlined_call_operand.vmem [shape: f32[128,64], index: 5, kind: output, shape index: {0}]   ;;  %s10908_s6 = inlined_call_operand.hbm [shape: f32[2,1,128], index: 6, kind: output, shape index: {1}]  }
   0x1   :  { %14 = vsyncpa [#allocation3 + $0x1], 0  ;;  %s7708_s21 = smov 0   ;;  %s7710_s22 = smov 0  }
   0x2   :  { %s7712_s23 = smov 0   ;;  %s7714_s24 = smov 0  }
   0x3 LB: > { %s7729_s25 = sadd.s32 4294967295, %s7668_s24   ;;  %s6446_s26 = sadd.s32 4294967294, %s7668_s24   ;;  %s7668_s24 = sphi %s7714_s24, %s11407_s24   ;;  %s7664_s23 = sphi %s7712_s23, %s11406_s23   ;;  %s7660_s22 = sphi %s7710_s22, %s11405_s22   ;;  %s7656_s21 = sphi %s7708_s21, %s11404_s21  }
   0x4   : > { %s7733_s27 = sadd.s32 1, %s7668_s24   ;;  %s168_s28 = sadd.s32 1, %s7664_s23 }
   0x5   : > { %s165_s29 = ssub.s32 %s7668_s24, %s7733_s27  ;;  %p178_p0 = scmp.ne.s32.totalorder %s7664_s23, %s7660_s22 }
   0x6   : > { %p166_p1 = scmp.eq.s32.totalorder %s165_s29, 0  ;;  %p179_p2 = scmp.eq.s32.totalorder %s7729_s25, 1 }
   0x7   : > { %p184_p3 = scmp.ne.s32.totalorder %s7660_s22, %s7656_s21  ;;  %p185_p4 = scmp.eq.s32.totalorder %s6446_s26, 1 }
   0x8   : > { %s7744_s30 = scalar_select %p166_p1, %s7664_s23, %s168_s28  }
   0x9   : > { %p7746_p5 = por %p179_p2, %p178_p0  ;;  %p7750_p6 = por %p185_p4, %p184_p3 }
   0xa   : > { %p6449_p7 = scmp.ge.s32.totalorder %s7668_s24, 1  ;;  %p230_p8 = scmp.lt.s32.totalorder %s7668_s24, 3 }
   0xc   : > { %p231_p9 = pnand %p6449_p7, %p230_p8 }
   0xe   : > { %234 = sbr.rel (%p231_p9) target bundleno = 1276 (0x4fc), region = 40 }
  0x13   : > { %v7136_v0 = vld [vmem:[%s10904_s2 + $0x18] sm:$0xff]   ;;  %s6450_s11 = sshll.u32 %s7729_s25, 3  ;;  %v7138_v2 = vld [vmem:[%s10904_s2 + $0x10] sm:$0xff]   ;;  %v7140_v4 = vld [vmem:[%s10904_s2 + $0x8] sm:$0xff]   ;;  %s6452_s20 = sshll.u32 %s7729_s25, 7  ;;  %vm332_vm0 = vcmask 523264  }
  0x14   : > { %v7137_v1 = vld [vmem:[%s10905_s3 + $0x18] sm:$0xff]   ;;  %p270_p10 = scmp.lt.s32.totalorder %s6450_s11, 15  ;;  %6767 = vmatprep.subr.bf16.mxu0 %v7136_v0  ;;  %v7139_v3 = vld [vmem:[%s10905_s3 + $0x10] sm:$0xff]   ;;  %v7141_v5 = vld [vmem:[%s10905_s3 + $0x8] sm:$0xff]   ;;  %p276_p11 = scmp.lt.s32.totalorder %s6452_s20, 255  ;;  %vm6173_vm1 = vcmask 1041409  }
  0x15   : > { %6783 = vmatprep.subr.bf16.mxu1 %v7137_v1  ;;  %6768 = vmatpush3.bf16.msra.mxu0 %v7136_v0  ;;  %v7142_v6 = vld [vmem:[%s10904_s2] sm:$0xff]   ;;  %v7190_v35 = vld [vmem:[%s10906_s4 + $0x38] sm:$0xff]   ;;  %v7195_v41 = vld [vmem:[%s10906_s4 + $0x30] sm:$0xff]   ;;  %vm6175_vm2 = vcmask 1042434   ;;  %vm6177_vm3 = vcmask 1043459   ;;  %vm6179_vm4 = vcmask 1044484  }
  0x16   : > { %s11409_s11 = smov (!%p270_p10, %s6450_s11), 15  ;;  %6784 = vmatpush3.bf16.msra.mxu1 %v7137_v1  ;;  %6769 = vmatprep.subr.bf16.mxu0 %v7138_v2  ;;  %v7143_v9 = vld [vmem:[%s10905_s3] sm:$0xff]   ;;  %s11411_s20 = smov (!%p276_p11, %s6452_s20), 255  ;;  %v7198_v43 = vld [vmem:[%s10906_s4 + $0x28] sm:$0xff]   ;;  %v7202_v47 = vld [vmem:[%s10906_s4 + $0x18] sm:$0xff]   ;;  %vm6181_vm5 = vcmask 1045509  }
  0x17   : > { %6785 = vmatprep.subr.bf16.mxu1 %v7139_v3  ;;  %s6451_s29 = sshll.u32 %s11409_s11, 3  ;;  %s6453_s17 = sshll.u32 %s11411_s20, 2  ;;  %v7199_v46 = vld [vmem:[%s10906_s4 + $0x20] sm:$0xff]   ;;  %v7203_v52 = vld [vmem:[%s10906_s4 + $0x10] sm:$0xff]   ;;  %v7206_v55 = vld [vmem:[%s10906_s4 + $0x8] sm:$0xff]   ;;  %vm6183_vm6 = vcmask 1046534  }
  0x18   : > { %s7784_s12 = scalar_lea.vmem %s10902_s0, %s6451_s29  ;;  %s7802_s26 = scalar_lea.vmem %s10903_s1, %s6453_s17  ;;  %v7207_v56 = vld [vmem:[%s10906_s4] sm:$0xff]   ;;  %vm6185_vm7 = vcmask 1047559  }
  0x19   : > { %6770 = vmatpush3.bf16.msra.mxu0 %v7138_v2  ;;  %v288_v7 = vld [vmem:[%s7784_s12] sm:$0xff]  ;;  %v289_v8 = vld [vmem:[%s7784_s12 + $0x8] sm:$0xff]  ;;  %v290_v11 = vld [vmem:[%s7784_s12 + $0x10] sm:$0xff]  ;;  %s10459_s16 = scalar_lea.vmem %s10907_s5, %s6451_s29  ;;  %s267_s11 = sand.u32 1, %s7660_s22  }
  0x1a   : > { %6786 = vmatpush3.bf16.msra.mxu1 %v7139_v3  ;;  %6771 = vmatprep.subr.bf16.mxu0 %v7140_v4  ;;  %v296_v10 = vpack.c.bf16 %v289_v8, %v288_v7  ;;  %v291_v12 = vld [vmem:[%s7784_s12 + $0x18] sm:$0xff]  ;;  %v292_v13 = vld [vmem:[%s7784_s12 + $0x20] sm:$0xff]  ;;  %v293_v14 = vld [vmem:[%s7784_s12 + $0x28] sm:$0xff]  ;;  %s6608_s29 = sshll.u32 %s7729_s25, 4  ;;  %s6338_s28 = scalar_lea.sflag [#allocation3], %s267_s11 }
  0x1b   : > { %6787 = vmatprep.subr.bf16.mxu1 %v7141_v5  ;;  %v7144_v15 = vld [vmem:[%s7802_s26] sm:$0xff]   ;;  %v297_v16 = vpack.c.bf16 %v291_v12, %v290_v11  ;;  %v7145_v17 = vld [vmem:[%s7802_s26 + $0x8] sm:$0xff]   ;;  %v298_v18 = vpack.c.bf16 %v293_v14, %v292_v13  ;;  %v7146_v19 = vld [vmem:[%s7802_s26 + $0x10] sm:$0xff]   ;;  %s10866_s20 = scalar_lea.hbm %s10908_s6, %s6608_s29  ;;  %s7672_s25 = smov [#allocation2]  }
  0x1c   : > { %6775 = vmatprep.mubr.msk.bf16.mxu0 %vm332_vm0, %v296_v10  ;;  %6791 = vmatprep.mubr.msk.bf16.mxu1 %vm332_vm0, %v7144_v15  ;;  %v294_v20 = vld [vmem:[%s7784_s12 + $0x30] sm:$0xff]  ;;  %v295_v21 = vld [vmem:[%s7784_s12 + $0x38] sm:$0xff]  ;;  %v7148_v24 = vld [vmem:[%s7802_s26 + $0x20] sm:$0xff]   ;;  %s7612_s10 = sshll.u32 %s7672_s25, 4  ;;  %s7613_s10 = int_to_ptr.vmem [resolvable:$false] %s7612_s10 }
  0x1d   : > { %6772 = vmatpush3.bf16.msra.mxu0 %v7140_v4  ;;  %v299_v22 = vpack.c.bf16 %v295_v21, %v294_v20  ;;  %v7147_v23 = vld [vmem:[%s7802_s26 + $0x18] sm:$0xff]   ;;  %v7149_v25 = vld [vmem:[%s7802_s26 + $0x28] sm:$0xff]   ;;  %v7150_v26 = vld [vmem:[%s7802_s26 + $0x30] sm:$0xff]   ;;  %s7614_s13 = scalar_lea.vmem %s7613_s10, 32 }
  0x1e   : > { %6788 = vmatpush3.bf16.msra.mxu1 %v7141_v5  ;;  %6773 = vmatprep.subr.bf16.mxu0 %v7142_v6  ;;  %v7151_v27 = vld [vmem:[%s7802_s26 + $0x38] sm:$0xff]   ;;  %v7152_v28 = vld [vmem:[%s7802_s26 + $0x40] sm:$0xff]   ;;  %v7153_v29 = vld [vmem:[%s7802_s26 + $0x48] sm:$0xff]  }
  0x1f   : > { %6789 = vmatprep.subr.bf16.mxu1 %v7143_v9  ;;  %v7154_v30 = vld [vmem:[%s7802_s26 + $0x50] sm:$0xff]   ;;  %v7155_v31 = vld [vmem:[%s7802_s26 + $0x58] sm:$0xff]   ;;  %v7156_v32 = vld [vmem:[%s7802_s26 + $0x60] sm:$0xff]  }
  0x20   : > { %v7157_v33 = vld [vmem:[%s7802_s26 + $0x68] sm:$0xff]   ;;  %v7158_v34 = vld [vmem:[%s7802_s26 + $0x70] sm:$0xff]   ;;  %v7159_v36 = vld [vmem:[%s7802_s26 + $0x78] sm:$0xff]  }
  0x21   : > { %6774 = vmatpush3.bf16.msra.mxu0 %v7142_v6  ;;  %v7160_v37 = vld [vmem:[%s7802_s26 + $0x80] sm:$0xff]   ;;  %v7161_v38 = vld [vmem:[%s7802_s26 + $0x88] sm:$0xff]   ;;  %v7162_v39 = vld [vmem:[%s7802_s26 + $0x90] sm:$0xff]  }
  0x22   : > { %6790 = vmatpush3.bf16.msra.mxu1 %v7143_v9  ;;  %6919 = vmatprep.subr.bf16.mxu0 %v7137_v1  ;;  %v7163_v40 = vld [vmem:[%s7802_s26 + $0x98] sm:$0xff]   ;;  %v7164_v42 = vld [vmem:[%s7802_s26 + $0xa0] sm:$0xff]   ;;  %v7165_v44 = vld [vmem:[%s7802_s26 + $0xa8] sm:$0xff]  }
  0x23   : > { %7079 = vmatprep.subr.bf16.mxu1 %v7190_v35  ;;  %v7166_v45 = vld [vmem:[%s7802_s26 + $0xb0] sm:$0xff]   ;;  %v7167_v48 = vld [vmem:[%s7802_s26 + $0xb8] sm:$0xff]   ;;  %v7168_v49 = vld [vmem:[%s7802_s26 + $0xc0] sm:$0xff]  }
  0x24   : > { %6776 = vmatmul.mubr.msk.bf16.vlgmr.msra.gmra.mxu0 %vm332_vm0, %v297_v16  ;;  %v7169_v50 = vld [vmem:[%s7802_s26 + $0xc8] sm:$0xff]   ;;  %v7170_v51 = vld [vmem:[%s7802_s26 + $0xd0] sm:$0xff]   ;;  %v7171_v53 = vld [vmem:[%s7802_s26 + $0xd8] sm:$0xff]  }
  0x25   : > { %6792 = vmatmul.mubr.msk.bf16.vlgmr.msra.gmra.mxu1 %vm332_vm0, %v7145_v17  ;;  %6920 = vmatpush3.bf16.msra.mxu0 %v7137_v1  ;;  %v7172_v54 = vld [vmem:[%s7802_s26 + $0xe0] sm:$0xff]   ;;  %v7173_v57 = vld [vmem:[%s7802_s26 + $0xe8] sm:$0xff]   ;;  %v7174_v58 = vld [vmem:[%s7802_s26 + $0xf0] sm:$0xff]  }
  0x26   : > { %6921 = vmatprep.subr.bf16.mxu0 %v7139_v3  ;;  %6779 = vmatprep.mubr.msk.bf16.mxu0 %vm332_vm0, %v298_v18  ;;  %v7175_v59 = vld [vmem:[%s7802_s26 + $0xf8] sm:$0xff]   ;;  %v7176_v60 = vld [vmem:[%s7802_s26 + $0x100] sm:$0xff]   ;;  %v7177_v61 = vld [vmem:[%s7802_s26 + $0x108] sm:$0xff]  }
  0x27   : > { %6795 = vmatprep.mubr.msk.bf16.mxu1 %vm332_vm0, %v7146_v19  ;;  %7087 = vmatpush3.bf16.msra.mxu1 %v7190_v35  ;;  %v7178_v62 = vld [vmem:[%s7802_s26 + $0x110] sm:$0xff]   ;;  %v7179_v63 = vld [vmem:[%s7802_s26 + $0x118] sm:$0xff]   ;;  %v7180_v0 = vld [vmem:[%s7802_s26 + $0x120] sm:$0xff]  }
  0x28   : > { %7080 = vmatprep.subr.bf16.mxu1 %v7195_v41  ;;  %v7181_v1 = vld [vmem:[%s7802_s26 + $0x128] sm:$0xff]   ;;  %v7182_v2 = vld [vmem:[%s7802_s26 + $0x130] sm:$0xff]   ;;  %v7184_v4 = vld [vmem:[%s7802_s26 + $0x140] sm:$0xff]  }
  0x29   : > { %6922 = vmatpush3.bf16.msra.mxu0 %v7139_v3  ;;  %v7183_v3 = vld [vmem:[%s7802_s26 + $0x138] sm:$0xff]   ;;  %v7186_v6 = vld [vmem:[%s7802_s26 + $0x150] sm:$0xff]   ;;  %v7188_v8 = vld [vmem:[%s7802_s26 + $0x160] sm:$0xff]  }
  0x2a   : > { %6923 = vmatprep.subr.bf16.mxu0 %v7141_v5  ;;  %v7187_v7 = vld [vmem:[%s7802_s26 + $0x158] sm:$0xff]   ;;  %v7193_v12 = vld [vmem:[%s7802_s26 + $0x180] sm:$0xff]   ;;  %v7194_v13 = vld [vmem:[%s7802_s26 + $0x188] sm:$0xff]  }
  0x2b   : > { %7088 = vmatpush3.bf16.msra.mxu1 %v7195_v41  ;;  %v7192_v11 = vld [vmem:[%s7802_s26 + $0x178] sm:$0xff]   ;;  %v7196_v14 = vld [vmem:[%s7802_s26 + $0x190] sm:$0xff]  }
  0x2c   : > { %6780 = vmatmul.mubr.msk.bf16.gmra.mxu0 %vm332_vm0, %v299_v22  ;;  %7081 = vmatprep.subr.bf16.mxu1 %v7198_v43  ;;  %v7197_v21 = vld [vmem:[%s7802_s26 + $0x198] sm:$0xff]  }
  0x2d   : > { %6796 = vmatmul.mubr.msk.bf16.gmra.mxu1 %vm332_vm0, %v7147_v23  ;;  %6924 = vmatpush3.bf16.msra.mxu0 %v7141_v5  ;;  %v7185_v5 = vld [vmem:[%s7802_s26 + $0x148] sm:$0xff]   ;;  %v7200_v23 = vld [vmem:[%s7802_s26 + $0x1a0] sm:$0xff]  }
  0x2e   : > { %6925 = vmatprep.subr.bf16.mxu0 %v7143_v9  ;;  %6799 = vmatprep.mubr.msk.bf16.mxu1 %vm332_vm0, %v7148_v24 }
  0x2f   : > { %6927 = vmatprep.mubr.msk.bf16.mxu0 %vm332_vm0, %v296_v10  ;;  %7089 = vmatpush3.bf16.msra.mxu1 %v7198_v43  ;;  %v7191_v10 = vld [vmem:[%s7802_s26 + $0x170] sm:$0xff]  }
  0x30   : > { %7082 = vmatprep.subr.bf16.mxu1 %v7199_v46 }
  0x31   : > { %6926 = vmatpush3.bf16.msra.mxu0 %v7143_v9  ;;  %v7189_v9 = vld [vmem:[%s7802_s26 + $0x168] sm:$0xff]  }
  0x32   : > { %6935 = vmatprep.subr.bf16.mxu0 %v7190_v35 }
  0x33   : > { %7090 = vmatpush3.bf16.msra.mxu1 %v7199_v46 }
  0x34   : > { %6928 = vmatmul.mubr.msk.bf16.vlgmr.msra.gmra.mxu0 %vm332_vm0, %v297_v16  ;;  %7083 = vmatprep.subr.bf16.mxu1 %v7202_v47 }
  0x35   : > { %6800 = vmatmul.mubr.msk.bf16.gmra.mxu1 %vm332_vm0, %v7149_v25  ;;  %6931 = vmatprep.mubr.msk.bf16.mxu0 %vm332_vm0, %v298_v18 }
  0x36   : > { %6803 = vmatprep.mubr.msk.bf16.mxu1 %vm332_vm0, %v7150_v26  ;;  %6936 = vmatpush3.bf16.msra.mxu0 %v7190_v35  ;;  %v7670_v26 = vmov 1966171168  }
  0x37   : > { %6937 = vmatprep.subr.bf16.mxu0 %v7195_v41  ;;  %7091 = vmatpush3.bf16.msra.mxu1 %v7202_v47 }
  0x38   : > { %7084 = vmatprep.subr.bf16.mxu1 %v7203_v52 }
  0x3a   : > { %6938 = vmatpush3.bf16.msra.mxu0 %v7195_v41 }
  0x3b   : > { %6939 = vmatprep.subr.bf16.mxu0 %v7198_v43  ;;  %7092 = vmatpush3.bf16.msra.mxu1 %v7203_v52 }
  0x3c   : > { %6932 = vmatmul.mubr.msk.bf16.gmra.mxu0 %vm332_vm0, %v299_v22  ;;  %7085 = vmatprep.subr.bf16.mxu1 %v7206_v55 }
  0x3d   : > { %6804 = vmatmul.mubr.msk.bf16.gmra.mxu1 %vm332_vm0, %v7151_v27  ;;  %v1702_v27 = vunpack.c.l.s4 %v7670_v26 }
  0x3e   : > { %6807 = vmatprep.mubr.msk.bf16.mxu1 %vm332_vm0, %v7152_v28  ;;  %6940 = vmatpush3.bf16.msra.mxu0 %v7198_v43  ;;  %v1704_v28 = vlaneseq }
  0x3f   : > { %6941 = vmatprep.subr.bf16.mxu0 %v7199_v46  ;;  %7093 = vmatpush3.bf16.msra.mxu1 %v7206_v55 }
  0x40   : > { %7086 = vmatprep.subr.bf16.mxu1 %v7207_v56 }
  0x42   : > { %6942 = vmatpush3.bf16.msra.mxu0 %v7199_v46 }
  0x43   : > { %6943 = vmatprep.subr.bf16.mxu0 %v7202_v47  ;;  %7094 = vmatpush3.bf16.msra.mxu1 %v7207_v56 }
  0x45   : > { %6808 = vmatmul.mubr.msk.bf16.gmra.mxu1 %vm332_vm0, %v7153_v29 }
  0x46   : > { %6811 = vmatprep.mubr.msk.bf16.mxu1 %vm332_vm0, %v7154_v30  ;;  %6944 = vmatpush3.bf16.msra.mxu0 %v7202_v47  ;;  %v7205_v47 = vld [vmem:[%s7802_s26 + $0x1b8] sm:$0xff]  }
  0x47   : > { %6945 = vmatprep.subr.bf16.mxu0 %v7203_v52 }
  0x4a   : > { %6946 = vmatpush3.bf16.msra.mxu0 %v7203_v52 }
  0x4b   : > { %6947 = vmatprep.subr.bf16.mxu0 %v7206_v55 }
  0x4d   : > { %6812 = vmatmul.mubr.msk.bf16.gmra.mxu1 %vm332_vm0, %v7155_v31 }
  0x4e   : > { %6815 = vmatprep.mubr.msk.bf16.mxu1 %vm332_vm0, %v7156_v32  ;;  %6948 = vmatpush3.bf16.msra.mxu0 %v7206_v55 }
  0x4f   : > { %6949 = vmatprep.subr.bf16.mxu0 %v7207_v56 }
  0x52   : > { %6950 = vmatpush3.bf16.msra.mxu0 %v7207_v56 }
  0x55   : > { %6816 = vmatmul.mubr.msk.bf16.gmra.mxu1 %vm332_vm0, %v7157_v33  ;;  %v1703_v33 = vunpack.c.0.s8 %v1702_v27 }
  0x56   : > { %6819 = vmatprep.mubr.msk.bf16.mxu1 %vm332_vm0, %v7158_v34  ;;  %v1705_v34 = vshrl.u32 %v1704_v28, 7 }
  0x58   : > { %v7971_v41 = vsub.s32 %v1703_v33, %v1705_v34  ;;  %v7986_v52 = vsub.s32 0, %v1705_v34 }
  0x5d   : > { %6820 = vmatmul.mubr.msk.bf16.gmra.mxu1 %vm332_vm0, %v7159_v36  ;;  %v7201_v36 = vld [vmem:[%s7802_s26 + $0x1a8] sm:$0xff]  }
  0x5e   : > { %6823 = vmatprep.mubr.msk.bf16.mxu1 %vm332_vm0, %v7160_v37 }
  0x65   : > { %6824 = vmatmul.mubr.msk.bf16.gmra.mxu1 %vm332_vm0, %v7161_v38  ;;  %v7204_v38 = vld [vmem:[%s7802_s26 + $0x1b0] sm:$0xff]  }
  0x66   : > { %6827 = vmatprep.mubr.msk.bf16.mxu1 %vm332_vm0, %v7162_v39 }
  0x6d   : > { %6828 = vmatmul.mubr.msk.bf16.gmra.mxu1 %vm332_vm0, %v7163_v40 }
  0x6e   : > { %6831 = vmatprep.mubr.msk.bf16.mxu1 %vm332_vm0, %v7164_v42 }
  0x75   : > { %6832 = vmatmul.mubr.msk.bf16.gmra.mxu1 %vm332_vm0, %v7165_v44 }
  0x76   : > { %6835 = vmatprep.mubr.msk.bf16.mxu1 %vm332_vm0, %v7166_v45 }
  0x7d   : > { %6836 = vmatmul.mubr.msk.bf16.gmra.mxu1 %vm332_vm0, %v7167_v48 }
  0x7e   : > { %6839 = vmatprep.mubr.msk.bf16.mxu1 %vm332_vm0, %v7168_v49  ;;  %v7208_v49 = vld [vmem:[%s7802_s26 + $0x1c0] sm:$0xff]  }
  0x85   : > { %6840 = vmatmul.mubr.msk.bf16.gmra.mxu1 %vm332_vm0, %v7169_v50 }
  0x86   : > { %6843 = vmatprep.mubr.msk.bf16.mxu1 %vm332_vm0, %v7170_v51 }
  0x8d   : > { %6844 = vmatmul.mubr.msk.bf16.gmra.mxu1 %vm332_vm0, %v7171_v53 }
  0x8e   : > { %6847 = vmatprep.mubr.msk.bf16.mxu1 %vm332_vm0, %v7172_v54 }
  0x95   : > { %6848 = vmatmul.mubr.msk.bf16.gmra.mxu1 %vm332_vm0, %v7173_v57 }
  0x96   : > { %6851 = vmatprep.mubr.msk.bf16.mxu1 %vm332_vm0, %v7174_v58 }
  0x9d   : > { %6852 = vmatmul.mubr.msk.bf16.gmra.mxu1 %vm332_vm0, %v7175_v59 }
  0x9e   : > { %6855 = vmatprep.mubr.msk.bf16.mxu1 %vm332_vm0, %v7176_v60 }
  0xa5   : > { %6856 = vmatmul.mubr.msk.bf16.gmra.mxu1 %vm332_vm0, %v7177_v61 }
  0xa6   : > { %6859 = vmatprep.mubr.msk.bf16.mxu1 %vm332_vm0, %v7178_v62 }
  0xad   : > { %6860 = vmatmul.mubr.msk.bf16.gmra.mxu1 %vm332_vm0, %v7179_v63 }
  0xae   : > { %6863 = vmatprep.mubr.msk.bf16.mxu1 %vm332_vm0, %v7180_v0 }
  0xb5   : > { %6864 = vmatmul.mubr.msk.bf16.gmra.mxu1 %vm332_vm0, %v7181_v1 }
  0xb6   : > { %6867 = vmatprep.mubr.msk.bf16.mxu1 %vm332_vm0, %v7182_v2  ;;  %v7209_v2 = vld [vmem:[%s7802_s26 + $0x1c8] sm:$0xff]  }
  0xbd   : > { %6868 = vmatmul.mubr.msk.bf16.gmra.mxu1 %vm332_vm0, %v7183_v3 }
  0xbe   : > { %6871 = vmatprep.mubr.msk.bf16.mxu1 %vm332_vm0, %v7184_v4 }
  0xc5   : > { %6872 = vmatmul.mubr.msk.bf16.gmra.mxu1 %vm332_vm0, %v7185_v5 }
  0xc6   : > { %6875 = vmatprep.mubr.msk.bf16.mxu1 %vm332_vm0, %v7186_v6 }
  0xcd   : > { %6876 = vmatmul.mubr.msk.bf16.gmra.mxu1 %vm332_vm0, %v7187_v7  ;;  %v7210_v7 = vld [vmem:[%s7802_s26 + $0x1d0] sm:$0xff]  }
  0xce   : > { %6879 = vmatprep.mubr.msk.bf16.mxu1 %vm332_vm0, %v7188_v8 }
  0xd5   : > { %6880 = vmatmul.mubr.msk.bf16.gmra.mxu1 %vm332_vm0, %v7189_v9 }
  0xd6   : > { %6883 = vmatprep.mubr.msk.bf16.mxu1 %vm332_vm0, %v7191_v10 }
  0xdd   : > { %6884 = vmatmul.mubr.msk.bf16.gmra.mxu1 %vm332_vm0, %v7192_v11 }
  0xde   : > { %6887 = vmatprep.mubr.msk.bf16.mxu1 %vm332_vm0, %v7193_v12 }
  0xe4   : > { %v7937_v15 = vpop.f32.mrf.mxu0 }
  0xe5   : > { %v6793_v16 = vpop.f32.mrf.mxu1  ;;  %6888 = vmatmul.mubr.msk.bf16.gmra.mxu1 %vm332_vm0, %v7194_v13 }
  0xe6   : > { %v7940_v17 = vpop.f32.mrf.mxu0  ;;  %6891 = vmatprep.mubr.msk.bf16.mxu1 %vm332_vm0, %v7196_v14 }
  0xe7   : > { %v1116_v18 = vpop.f32.mrf.mxu1  ;;  %v2555_v43 = vrot.slane %v7940_v17, %v7971_v41  ;;  %v2548_v0 = vcombine.high %v7940_v17, %v7940_v17 }
  0xe8   : > { %v7943_v19 = vpop.f32.mrf.mxu0 }
  0xe9   : > { %v6794_v20 = vpop.f32.mrf.mxu1  ;;  %v2563_v50 = vcombine.high %v2555_v43, %v2555_v43  ;;  %v2571_v61 = vrot.slane %v2555_v43, %v7971_v41  ;;  %v7211_v43 = vld [vmem:[%s7802_s26 + $0x1d8] sm:$0xff]  }
  0xea   : > { %v7946_v22 = vpop.f32.mrf.mxu0 }
  0xeb   : > { %v1119_v24 = vpop.f32.mrf.mxu1  ;;  %v7996_v59 = vrot.slane %v2563_v50, %v7971_v41  ;;  %v2943_v11 = vrot.slane %v2571_v61, %v7986_v52 }
  0xec   : > { %v7949_v25 = vpop.f32.mrf.mxu0 }
  0xed   : > { %v7951_v29 = vpop.f32.mrf.mxu1  ;;  %6892 = vmatmul.mubr.msk.bf16.gmra.mxu1 %vm332_vm0, %v7197_v21  ;;  %v2947_v8 = vrot.slane %v7996_v59, %v7986_v52 }
  0xee   : > { %v7954_v30 = vpop.f32.mrf.mxu0  ;;  %6895 = vmatprep.mubr.msk.bf16.mxu1 %vm332_vm0, %v7200_v23  ;;  %v2593_v23 = vcombine.high %v2571_v61, %v2571_v61 }
  0xef   : > { %v7957_v31 = vpop.f32.mrf.mxu1 }
  0xf0   : > { %v7959_v32 = vpop.f32.mrf.mxu0 }
  0xf1   : > { %v7961_v35 = vpop.f32.mrf.mxu1 }
  0xf2   : > { %v7964_v37 = vpop.f32.mrf.mxu0 }
  0xf3   : > { %v7967_v39 = vpop.f32.mrf.mxu1 }
  0xf4   : > { %v7969_v40 = vpop.f32.mrf.mxu0 }
  0xf5   : > { %v7973_v42 = vpop.f32.mrf.mxu1  ;;  %6896 = vmatmul.mubr.msk.bf16.gmra.mxu1 %vm332_vm0, %v7201_v36 }
  0xf6   : > { %6899 = vmatprep.mubr.msk.bf16.mxu1 %vm332_vm0, %v7204_v38  ;;  %v1661_v45 = vpop.f32.mrf.mxu0 }
  0xf7   : > { %v7979_v44 = vpop.f32.mrf.mxu1  ;;  %v1707_v48 = vrot.slane %v1661_v45, %v7971_v41  ;;  %v1700_v53 = vcombine.high %v1661_v45, %v1661_v45 }
  0xf9   : > { %v7981_v46 = vpop.f32.mrf.mxu1  ;;  %v1715_v54 = vcombine.high %v1707_v48, %v1707_v48  ;;  %v1723_v55 = vrot.slane %v1707_v48, %v7971_v41  ;;  %v1714_v62 = vrot.slane %v1700_v53, %v7971_v41  ;;  %v2595_v48 = vcombine.high %v7996_v59, %v7996_v59  ;;  %v8046_v53 = vpop.f32.mrf.mxu0 }
  0xfb   : > { %v1151_v51 = vpop.f32.mrf.mxu1  ;;  %v1737_v57 = vrot.slane %v1715_v54, %v7971_v41  ;;  %v2095_v58 = vrot.slane %v1723_v55, %v7986_v52  ;;  %v1745_v9 = vcombine.high %v1723_v55, %v1723_v55  ;;  %v1730_v12 = vrot.slane %v1714_v62, %v7971_v41 }
  0xfd   : > { %v7989_v56 = vpop.f32.mrf.mxu1  ;;  %6900 = vmatmul.mubr.msk.bf16.gmra.mxu1 %vm332_vm0, %v7205_v47  ;;  %v2099_v63 = vrot.slane %v1737_v57, %v7986_v52  ;;  %v8008_v3 = vsub.f32 %v1116_v18, %v2095_v58  ;;  %v8010_v4 = vsub.f32 %v1119_v24, %v2095_v58  ;;  %v1747_v13 = vcombine.high %v1737_v57, %v1737_v57  ;;  %v7212_v47 = vld [vmem:[%s7802_s26 + $0x1e0] sm:$0xff]  }
  0xfe   : > { %6903 = vmatprep.mubr.msk.bf16.mxu1 %vm332_vm0, %v7208_v49  ;;  %v2562_v18 = vrot.slane %v2548_v0, %v7971_v41  ;;  %v1716_v24 = vcombine.high %v1714_v62, %v1714_v62  ;;  %v2103_v26 = vrot.slane %v1745_v9, %v7986_v52  ;;  %v2111_v28 = vrot.slane %v1730_v12, %v7986_v52 }
  0xff   : > { %v7998_v60 = vpop.f32.mrf.mxu1  ;;  %v8012_v5 = vsub.f32 %v6793_v16, %v2099_v63  ;;  %v8014_v6 = vsub.f32 %v6794_v20, %v2099_v63  ;;  %v3260_v20 = vmul.f32 %v2943_v11, %v8008_v3  ;;  %v3261_v21 = vmul.f32 %v2943_v11, %v8010_v4 }
 0x100   : > { %v2107_v34 = vrot.slane %v1747_v13, %v7986_v52  ;;  %v2578_v45 = vrot.slane %v2562_v18, %v7971_v41  ;;  %v2951_v49 = vrot.slane %v2593_v23, %v7986_v52  ;;  %v1744_v50 = vrot.slane %v1716_v24, %v7971_v41 }
 0x101   : > { %v8005_v1 = vpop.f32.mrf.mxu1  ;;  %v3262_v14 = vmul.f32 %v2947_v8, %v8012_v5  ;;  %v3263_v17 = vmul.f32 %v2947_v8, %v8014_v6  ;;  %v3388_v33 = vpack.c.bf16 %v3261_v21, %v3260_v20  ;;  %v8049_v54 = vsub.f32 %v7957_v31, %v2103_v26 }
 0x102   : > { %v8053_v57 = vsub.f32 %v1151_v51, %v2111_v28  ;;  %v8056_v58 = vsub.f32 %v7967_v39, %v2103_v26  ;;  %v2564_v61 = vcombine.high %v2562_v18, %v2562_v18  ;;  %v8063_v63 = vsub.f32 %v7951_v29, %v2107_v34  ;;  %v7213_v18 = vld [vmem:[%s7802_s26 + $0x1e8] sm:$0xff]  }
 0x103   : > { %v8019_v10 = vpop.f32.mrf.mxu1  ;;  %v3389_v36 = vpack.c.bf16 %v3263_v17, %v3262_v14  ;;  %6951 = vmatprep.mubr.bf16.mxu0 %v3388_v33  ;;  %v3264_v59 = vmul.f32 %v2951_v49, %v8049_v54  ;;  %v8066_v31 = vsub.f32 %v7979_v44, %v2111_v28  ;;  %v2959_v51 = vrot.slane %v2578_v45, %v7986_v52 }
 0x104   : > { %11061 = vst [vmem:[#allocation5_spill] sm:$0xff] %v8063_v63  ;;  %v1746_v0 = vcombine.high %v1730_v12, %v1730_v12  ;;  %v3265_v39 = vmul.f32 %v2951_v49, %v8056_v58  ;;  %v8075_v8 = vsub.f32 %v7961_v35, %v2107_v34  ;;  %v2955_v29 = vrot.slane %v2595_v48, %v7986_v52 }
 0x105   : > { %v8025_v16 = vpop.f32.mrf.mxu1  ;;  %6904 = vmatmul.mubr.msk.bf16.gmra.mxu1 %vm332_vm0, %v7209_v2  ;;  %6952 = vmatmul.mubr.bf16.vlgmr.msra.gmra.mxu0 %v3389_v36  ;;  %11062 = vst [vmem:[#allocation6_spill] sm:$0xff] %v8066_v31  ;;  %v2115_v2 = vrot.slane %v1744_v50, %v7986_v52  ;;  %v3269_v44 = vmul.f32 %v2959_v51, %v8053_v57  ;;  %v7214_v36 = vld [vmem:[%s7802_s26 + $0x1f0] sm:$0xff]  }
 0x106   : > { %6907 = vmatprep.mubr.msk.bf16.mxu1 %vm332_vm0, %v7210_v7  ;;  %v8072_v7 = vpop.f32.mrf.mxu0  ;;  %v3390_v11 = vpack.c.bf16 %v3265_v39, %v3264_v59  ;;  %v2592_v12 = vrot.slane %v2564_v61, %v7971_v41  ;;  %v3266_v13 = vmul.f32 %v2955_v29, %v8063_v63  ;;  %v3267_v14 = vmul.f32 %v2955_v29, %v8075_v8  ;;  %v7215_v29 = vld [vmem:[%s7802_s26 + $0x1f8] sm:$0xff]   ;;  %s7671_s26 = smov 64  }
 0x107   : > { %v8033_v27 = vpop.f32.mrf.mxu1  ;;  %v1756_v35 = vrot.slane %v8072_v7, %v7971_v41  ;;  %v2119_v20 = vrot.slane %v1746_v0, %v7986_v52  ;;  %v2594_v21 = vcombine.high %v2578_v45, %v2578_v45  ;;  %v3268_v23 = vmul.f32 %v2959_v51, %v8066_v31 }
 0x108   : > { %6955 = vmatprep.mubr.bf16.mxu0 %v3390_v11  ;;  %v8092_v24 = vsub.f32 %v7973_v42, %v2115_v2  ;;  %v8095_v26 = vsub.f32 %v7981_v46, %v2115_v2  ;;  %v1748_v28 = vcombine.high %v1744_v50, %v1744_v50  ;;  %v3391_v33 = vpack.c.bf16 %v3267_v14, %v3266_v13 }
 0x109   : > { %v8037_v38 = vpop.f32.mrf.mxu1  ;;  %v2963_v48 = vrot.slane %v2592_v12, %v7986_v52  ;;  %v2604_v42 = vrot.slane %v7946_v22, %v7971_v41  ;;  %v8108_v46 = vsub.f32 %v7998_v60, %v2119_v20  ;;  %v2967_v49 = vrot.slane %v2594_v21, %v7986_v52 }
 0x10a   : > { %11063 = vst [vmem:[#allocation7_spill] sm:$0xff] %v8092_v24  ;;  %11064 = vst [vmem:[#allocation8_spill] sm:$0xff] %v8095_v26  ;;  %v2123_v61 = vrot.slane %v1748_v28, %v7986_v52  ;;  %v1764_v39 = vcombine.high %v1756_v35, %v1756_v35  ;;  %v2596_v60 = vcombine.high %v2592_v12, %v2592_v12 }
 0x10b   : > { %v8051_v55 = vpop.f32.mrf.mxu1  ;;  %11066 = vst [vmem:[#allocation10_spill] sm:$0xff] %v8108_v46  ;;  %v3271_v50 = vmul.f32 %v2963_v48, %v8095_v26  ;;  %v3270_v59 = vmul.f32 %v2963_v48, %v8092_v24  ;;  %v3272_v11 = vmul.f32 %v2967_v49, %v8108_v46 }
 0x10c   : > { %v8126_v14 = vsub.f32 %v7989_v56, %v2123_v61  ;;  %v2971_v28 = vrot.slane %v2596_v60, %v7986_v52  ;;  %v1749_v56 = vcombine.high %v8072_v7, %v8072_v7 }
 0x10d   : > { %v8059_v62 = vpop.f32.mrf.mxu1  ;;  %6908 = vmatmul.mubr.msk.bf16.gmra.mxu1 %vm332_vm0, %v7211_v43  ;;  %v8099_v43 = vsub.f32 %v8019_v10, %v2119_v20  ;;  %6956 = vmatmul.mubr.bf16.gmra.mxu0 %v3391_v33  ;;  %v1772_v10 = vrot.slane %v1756_v35, %v7971_v41  ;;  %v3393_v20 = vpack.c.bf16 %v3271_v50, %v3270_v59 }
 0x10e   : > { %6911 = vmatprep.mubr.msk.bf16.mxu1 %vm332_vm0, %v7212_v47  ;;  %v3392_v47 = vpack.c.bf16 %v3269_v44, %v3268_v23  ;;  %v2620_v44 = vrot.slane %v2604_v42, %v7971_v41  ;;  %11067 = vst [vmem:[#allocation11_spill] sm:$0xff] %v8126_v14  ;;  %v2612_v23 = vcombine.high %v2604_v42, %v2604_v42 }
 0x10f   : > { %v8078_v9 = vpop.f32.mrf.mxu1  ;;  %11065 = vst [vmem:[#allocation9_spill] sm:$0xff] %v8099_v43  ;;  %v3273_v0 = vmul.f32 %v2967_v49, %v8099_v43  ;;  %v2127_v13 = vrot.slane %v1772_v10, %v7986_v52  ;;  %v1786_v33 = vrot.slane %v1764_v39, %v7971_v41  ;;  %v3274_v48 = vmul.f32 %v2971_v28, %v8126_v14 }
 0x110   : > { %6959 = vmatprep.mubr.bf16.mxu0 %v3392_v47  ;;  %v1794_v47 = vcombine.high %v1772_v10, %v1772_v10  ;;  %v1763_v10 = vrot.slane %v1749_v56, %v7971_v41  ;;  %v2642_v60 = vcombine.high %v2620_v44, %v2620_v44 }
 0x111   : > { %v8084_v17 = vpop.f32.mrf.mxu1  ;;  %v8132_v35 = vsub.f32 %v8051_v55, %v2127_v13  ;;  %v3394_v12 = vpack.c.bf16 %v3273_v0, %v3272_v11  ;;  %v2975_v55 = vrot.slane %v2620_v44, %v7986_v52  ;;  %v2131_v7 = vrot.slane %v1786_v33, %v7986_v52 }
 0x112   : > { %v2135_v39 = vrot.slane %v1794_v47, %v7986_v52 }
 0x113   : > { %v1199_v34 = vpop.f32.mrf.mxu1  ;;  %11069 = vst [vmem:[#allocation13_spill] sm:$0xff] %v8132_v35  ;;  %v3277_v50 = vmul.f32 %v2975_v55, %v8132_v35 }
 0x114   : > { %v8172_v44 = vsub.f32 %v8078_v9, %v2135_v39 }
 0x115   : > { %v8102_v45 = vpop.f32.mrf.mxu1  ;;  %6912 = vmatmul.mubr.msk.bf16.gmra.mxu1 %vm332_vm0, %v7213_v18  ;;  %v8129_v18 = vsub.f32 %v8005_v1, %v2123_v61  ;;  %6960 = vmatmul.mubr.bf16.gmra.mxu0 %v3393_v20  ;;  %v8142_v1 = vsub.f32 %v8033_v27, %v2127_v13  ;;  %v2597_v61 = vcombine.high %v7946_v22, %v7946_v22 }
 0x116   : > { %6915 = vmatprep.mubr.msk.bf16.mxu1 %vm332_vm0, %v7214_v36  ;;  %6963 = vmatprep.mubr.bf16.mxu0 %v3394_v12  ;;  %v2634_v27 = vrot.slane %v2612_v23, %v7971_v41  ;;  %v8162_v20 = vsub.f32 %v1199_v34, %v2135_v39  ;;  %v8165_v12 = vsub.f32 %v8025_v16, %v2131_v7 }
 0x117   : > { %v8115_v51 = vpop.f32.mrf.mxu1  ;;  %11068 = vst [vmem:[#allocation12_spill] sm:$0xff] %v8129_v18  ;;  %v3275_v42 = vmul.f32 %v2971_v28, %v8129_v18  ;;  %v3276_v0 = vmul.f32 %v2975_v55, %v8142_v1  ;;  %v1796_v28 = vcombine.high %v1786_v33, %v1786_v33  ;;  %v2611_v55 = vrot.slane %v2597_v61, %v7971_v41 }
 0x118   : > { %11070 = vst [vmem:[#allocation14_spill] sm:$0xff] %v8162_v20  ;;  %v2979_v23 = vrot.slane %v2634_v27, %v7986_v52  ;;  %11071 = vst [vmem:[#allocation15_spill] sm:$0xff] %v8172_v44  ;;  %v1779_v34 = vrot.slane %v1763_v10, %v7971_v41  ;;  %v1765_v61 = vcombine.high %v1763_v10, %v1763_v10 }
 0x119   : > { %v8119_v2 = vpop.f32.mrf.mxu1  ;;  %v3395_v11 = vpack.c.bf16 %v3275_v42, %v3274_v48  ;;  %v3396_v22 = vpack.c.bf16 %v3277_v50, %v3276_v0  ;;  %v2139_v42 = vrot.slane %v1796_v28, %v7986_v52  ;;  %v2644_v50 = vcombine.high %v2634_v27, %v2634_v27 }
 0x11a   : > { %v3278_v33 = vmul.f32 %v2979_v23, %v8165_v12  ;;  %v2143_v0 = vrot.slane %v1779_v34, %v7986_v52  ;;  %v2627_v39 = vrot.slane %v2611_v55, %v7971_v41  ;;  %v2613_v14 = vcombine.high %v2611_v55, %v2611_v55 }
 0x11b   : > { %v1215_v21 = vpop.f32.mrf.mxu1  ;;  %v8193_v27 = vsub.f32 %v8059_v62, %v2139_v42  ;;  %v2987_v10 = vrot.slane %v2644_v50, %v7986_v52  ;;  %v1793_v28 = vrot.slane %v1765_v61, %v7971_v41 }
 0x11c   : > { %v8190_v18 = vsub.f32 %v1215_v21, %v2143_v0  ;;  %v8200_v43 = vsub.f32 %v8115_v51, %v2143_v0  ;;  %v1805_v51 = vrot.slane %v7969_v40, %v7971_v41 }
 0x11d   : > { %v8136_v36 = vpop.f32.mrf.mxu1  ;;  %6916 = vmatmul.mubr.msk.bf16.gmra.mxu1 %vm332_vm0, %v7215_v29  ;;  %v8160_v29 = vsub.f32 %v8037_v38, %v2131_v7  ;;  %6964 = vmatmul.mubr.bf16.gmra.mxu0 %v3395_v11  ;;  %v2983_v38 = vrot.slane %v2642_v60, %v7986_v52  ;;  %v8188_v60 = vsub.f32 %v8084_v17, %v2139_v42 }
 0x11e   : > { %6967 = vmatprep.mubr.bf16.mxu0 %v3396_v22  ;;  %11073 = vst [vmem:[#allocation17_spill] sm:$0xff] %v8190_v18  ;;  %11074 = vst [vmem:[#allocation18_spill] sm:$0xff] %v8193_v27  ;;  %v2991_v17 = vrot.slane %v2627_v39, %v7986_v52  ;;  %v2641_v42 = vrot.slane %v2613_v14, %v7971_v41  ;;  %v1797_v24 = vcombine.high %v1793_v28, %v1793_v28 }
 0x11f   : > { %v8147_v49 = vpop.f32.mrf.mxu1  ;;  %v3279_v47 = vmul.f32 %v2979_v23, %v8160_v29  ;;  %v3281_v48 = vmul.f32 %v2983_v38, %v8162_v20  ;;  %v3280_v9 = vmul.f32 %v2983_v38, %v8172_v44  ;;  %11072 = vst [vmem:[#allocation16_spill] sm:$0xff] %v8188_v60  ;;  %11075 = vst [vmem:[#allocation19_spill] sm:$0xff] %v8200_v43 }
 0x120   : > { %v3283_v21 = vmul.f32 %v2987_v10, %v8188_v60  ;;  %v3285_v62 = vmul.f32 %v2991_v17, %v8190_v18  ;;  %v2995_v26 = vrot.slane %v2641_v42, %v7986_v52 }
 0x121   : > { %v8154_v59 = vpop.f32.mrf.mxu1  ;;  %v3397_v11 = vpack.c.bf16 %v3279_v47, %v3278_v33  ;;  %v3398_v23 = vpack.c.bf16 %v3281_v48, %v3280_v9  ;;  %v1795_v47 = vcombine.high %v1779_v34, %v1779_v34  ;;  %v3282_v48 = vmul.f32 %v2987_v10, %v8193_v27 }
 0x122   : > { %v2147_v33 = vrot.slane %v1793_v28, %v7986_v52  ;;  %v3284_v34 = vmul.f32 %v2991_v17, %v8200_v43  ;;  %v2643_v9 = vcombine.high %v2627_v39, %v2627_v39  ;;  %v2653_v39 = vrot.slane %v7937_v15, %v7971_v41 }
 0x123   : > { %v1231_v13 = vpop.f32.mrf.mxu1  ;;  %v2151_v61 = vrot.slane %v1795_v47, %v7986_v52 }
 0x124   : > { %v8217_v0 = vsub.f32 %v8119_v2, %v2147_v33  ;;  %v3400_v46 = vpack.c.bf16 %v3285_v62, %v3284_v34  ;;  %v8222_v14 = vsub.f32 %v8102_v45, %v2147_v33  ;;  %v1821_v2 = vrot.slane %v1805_v51, %v7971_v41 }
 0x125   : > { %v8168_v56 = vpop.f32.mrf.mxu1  ;;  %6968 = vmatmul.mubr.bf16.gmra.mxu0 %v3397_v11  ;;  %v3399_v11 = vpack.c.bf16 %v3283_v21, %v3282_v48  ;;  %v8219_v10 = vsub.f32 %v1231_v13, %v2151_v61  ;;  %v8231_v17 = vsub.f32 %v8147_v49, %v2151_v61  ;;  %v2999_v13 = vrot.slane %v2643_v9, %v7986_v52 }
 0x126   : > { %6971 = vmatprep.mubr.bf16.mxu0 %v3398_v23  ;;  %11076 = vst [vmem:[#allocation20_spill] sm:$0xff] %v8217_v0  ;;  %11078 = vst [vmem:[#allocation22_spill] sm:$0xff] %v8222_v14  ;;  %v3287_v45 = vmul.f32 %v2995_v26, %v8217_v0  ;;  %v1813_v21 = vcombine.high %v1805_v51, %v1805_v51  ;;  %v3286_v62 = vmul.f32 %v2995_v26, %v8222_v14 }
 0x127   : > { %v8177_v16 = vpop.f32.mrf.mxu1  ;;  %11077 = vst [vmem:[#allocation21_spill] sm:$0xff] %v8219_v10  ;;  %11079 = vst [vmem:[#allocation23_spill] sm:$0xff] %v8231_v17  ;;  %v3289_v28 = vmul.f32 %v2999_v13, %v8219_v10  ;;  %v2155_v48 = vrot.slane %v1797_v24, %v7986_v52  ;;  %v2645_v33 = vcombine.high %v2641_v42, %v2641_v42 }
 0x128   : > { %v2669_v49 = vrot.slane %v2653_v39, %v7971_v41  ;;  %v3288_v61 = vmul.f32 %v2999_v13, %v8231_v17  ;;  %v2661_v26 = vcombine.high %v2653_v39, %v2653_v39  ;;  %v1835_v14 = vrot.slane %v1813_v21, %v7971_v41 }
 0x129   : > { %v8182_v7 = vpop.f32.mrf.mxu1  ;;  %v8246_v9 = vsub.f32 %v8154_v59, %v2155_v48  ;;  %v8251_v24 = vsub.f32 %v8136_v36, %v2155_v48  ;;  %v3003_v42 = vrot.slane %v2645_v33, %v7986_v52  ;;  %v1798_v59 = vcombine.high %v7969_v40, %v7969_v40 }
 0x12a   : > { %v3402_v51 = vpack.c.bf16 %v3289_v28, %v3288_v61  ;;  %v1843_v28 = vcombine.high %v1821_v2, %v1821_v2  ;;  %v2646_v21 = vcombine.high %v7937_v15, %v7937_v15  ;;  %v2683_v48 = vrot.slane %v2661_v26, %v7971_v41 }
 0x12b   : > { %v1247_v22 = vpop.f32.mrf.mxu1  ;;  %11080 = vst [vmem:[#allocation24_spill] sm:$0xff] %v8246_v9  ;;  %11082 = vst [vmem:[#allocation26_spill] sm:$0xff] %v8251_v24  ;;  %v3291_v36 = vmul.f32 %v3003_v42, %v8246_v9  ;;  %v3290_v40 = vmul.f32 %v3003_v42, %v8251_v24  ;;  %v2691_v61 = vcombine.high %v2669_v49, %v2669_v49 }
 0x12c   : > { %v3011_v24 = vrot.slane %v2683_v48, %v7986_v52 }
 0x12d   : > { %v8197_v38 = vpop.f32.mrf.mxu1  ;;  %6972 = vmatmul.mubr.bf16.gmra.mxu0 %v3399_v11  ;;  %v3401_v11 = vpack.c.bf16 %v3287_v45, %v3286_v62  ;;  %v3403_v9 = vpack.c.bf16 %v3291_v36, %v3290_v40 }
 0x12e   : > { %6975 = vmatprep.mubr.bf16.mxu0 %v3400_v46  ;;  %v2159_v46 = vrot.slane %v1821_v2, %v7986_v52  ;;  %v1812_v2 = vrot.slane %v1798_v59, %v7971_v41 }
 0x12f   : > { %v8204_v55 = vpop.f32.mrf.mxu1 }
 0x130   : > { %v8248_v10 = vsub.f32 %v1247_v22, %v2159_v46  ;;  %v8260_v45 = vsub.f32 %v8177_v16, %v2159_v46  ;;  %v3007_v22 = vrot.slane %v2669_v49, %v7986_v52  ;;  %v2163_v16 = vrot.slane %v1835_v14, %v7986_v52 }
 0x131   : > { %v8210_v50 = vpop.f32.mrf.mxu1  ;;  %v1845_v49 = vcombine.high %v1835_v14, %v1835_v14  ;;  %v1814_v14 = vcombine.high %v1812_v2, %v1812_v2 }
 0x132   : > { %11081 = vst [vmem:[#allocation25_spill] sm:$0xff] %v8248_v10  ;;  %11083 = vst [vmem:[#allocation27_spill] sm:$0xff] %v8260_v45  ;;  %v3293_v62 = vmul.f32 %v3007_v22, %v8248_v10  ;;  %v3292_v46 = vmul.f32 %v3007_v22, %v8260_v45  ;;  %v8283_v42 = vsub.f32 %v8168_v56, %v2163_v16 }
 0x133   : > { %v1263_v23 = vpop.f32.mrf.mxu1  ;;  %v2660_v22 = vrot.slane %v2646_v21, %v7971_v41  ;;  %v2171_v40 = vrot.slane %v1845_v49, %v7986_v52  ;;  %v2693_v21 = vcombine.high %v2683_v48, %v2683_v48  ;;  %v1842_v63 = vrot.slane %v1814_v14, %v7971_v41 }
 0x134   : > { %v3404_v26 = vpack.c.bf16 %v3293_v62, %v3292_v46  ;;  %11086 = vst [vmem:[#allocation30_spill] sm:$0xff] %v8283_v42 }
 0x135   : > { %v8225_v31 = vpop.f32.mrf.mxu1  ;;  %6976 = vmatmul.mubr.bf16.gmra.mxu0 %v3401_v11  ;;  %v2167_v11 = vrot.slane %v1843_v28, %v7986_v52  ;;  %v8311_v49 = vsub.f32 %v8197_v38, %v2171_v40  ;;  %v3019_v48 = vrot.slane %v2693_v21, %v7986_v52  ;;  %v2179_v14 = vrot.slane %v1842_v63, %v7986_v52 }
 0x136   : > { %6979 = vmatprep.mubr.bf16.mxu0 %v3402_v51  ;;  %v8278_v51 = vsub.f32 %v8182_v7, %v2163_v16  ;;  %v3015_v7 = vrot.slane %v2691_v61, %v7986_v52 }
 0x137   : > { %v8235_v47 = vpop.f32.mrf.mxu1  ;;  %v8280_v17 = vsub.f32 %v1263_v23, %v2167_v11  ;;  %v8290_v28 = vsub.f32 %v8204_v55, %v2167_v11  ;;  %v1828_v23 = vrot.slane %v1812_v2, %v7971_v41  ;;  %v2676_v55 = vrot.slane %v2660_v22, %v7971_v41  ;;  %11090 = vst [vmem:[#allocation34_spill] sm:$0xff] %v8311_v49 }
 0x138   : > { %11084 = vst [vmem:[#allocation28_spill] sm:$0xff] %v8278_v51  ;;  %v3295_v36 = vmul.f32 %v3011_v24, %v8278_v51  ;;  %v8306_v11 = vsub.f32 %v8210_v50, %v2171_v40 }
 0x139   : > { %v8240_v34 = vpop.f32.mrf.mxu1  ;;  %11085 = vst [vmem:[#allocation29_spill] sm:$0xff] %v8280_v17  ;;  %11087 = vst [vmem:[#allocation31_spill] sm:$0xff] %v8290_v28  ;;  %v3297_v62 = vmul.f32 %v3015_v7, %v8280_v17  ;;  %v3296_v61 = vmul.f32 %v3015_v7, %v8290_v28  ;;  %v2175_v46 = vrot.slane %v1828_v23, %v7986_v52 }
 0x13a   : > { %11088 = vst [vmem:[#allocation32_spill] sm:$0xff] %v8306_v11  ;;  %v3023_v50 = vrot.slane %v2676_v55, %v7986_v52 }
 0x13b   : > { %v1279_v0 = vpop.f32.mrf.mxu1  ;;  %v3406_v2 = vpack.c.bf16 %v3297_v62, %v3296_v61  ;;  %v8318_v28 = vsub.f32 %v8235_v47, %v2175_v46  ;;  %v3298_v62 = vmul.f32 %v3019_v48, %v8311_v49  ;;  %v1854_v47 = vrot.slane %v8046_v53, %v7971_v41 }
 0x13c   : > { %v8308_v17 = vsub.f32 %v1279_v0, %v2175_v46  ;;  %v3299_v0 = vmul.f32 %v3019_v48, %v8306_v11  ;;  %v2692_v61 = vcombine.high %v2676_v55, %v2676_v55  ;;  %v8335_v46 = vsub.f32 %v8240_v34, %v2179_v14 }
 0x13d   : > { %v8255_v13 = vpop.f32.mrf.mxu1  ;;  %6980 = vmatmul.mubr.bf16.gmra.mxu0 %v3403_v9  ;;  %v3294_v9 = vmul.f32 %v3011_v24, %v8283_v42  ;;  %v2662_v24 = vcombine.high %v2660_v22, %v2660_v22  ;;  %11091 = vst [vmem:[#allocation35_spill] sm:$0xff] %v8318_v28  ;;  %v1846_v11 = vcombine.high %v1842_v63, %v1842_v63 }
 0x13e   : > { %6983 = vmatprep.mubr.bf16.mxu0 %v3404_v26  ;;  %11089 = vst [vmem:[#allocation33_spill] sm:$0xff] %v8308_v17  ;;  %v3301_v38 = vmul.f32 %v3023_v50, %v8308_v17  ;;  %11092 = vst [vmem:[#allocation36_spill] sm:$0xff] %v8335_v46  ;;  %v2702_v55 = vrot.slane %v7943_v19, %v7971_v41  ;;  %v1870_v34 = vrot.slane %v1854_v47, %v7971_v41 }
 0x13f   : > { %v8264_v39 = vpop.f32.mrf.mxu1  ;;  %v3405_v26 = vpack.c.bf16 %v3295_v36, %v3294_v9  ;;  %v1844_v36 = vcombine.high %v1828_v23, %v1828_v23  ;;  %v2690_v9 = vrot.slane %v2662_v24, %v7971_v41  ;;  %v3300_v23 = vmul.f32 %v3023_v50, %v8318_v28 }
 0x140   : > { %v8340_v24 = vsub.f32 %v8225_v31, %v2179_v14 }
 0x141   : > { %v8272_v33 = vpop.f32.mrf.mxu1  ;;  %v2183_v21 = vrot.slane %v1844_v36, %v7986_v52  ;;  %v3408_v49 = vpack.c.bf16 %v3301_v38, %v3300_v23  ;;  %v3027_v17 = vrot.slane %v2690_v9, %v7986_v52  ;;  %v2694_v14 = vcombine.high %v2690_v9, %v2690_v9 }
 0x142   : > { %11094 = vst [vmem:[#allocation38_spill] sm:$0xff] %v8340_v24 }
 0x143   : > { %v1295_v15 = vpop.f32.mrf.mxu1  ;;  %v8349_v50 = vsub.f32 %v8264_v39, %v2183_v21  ;;  %v3303_v31 = vmul.f32 %v3027_v17, %v8335_v46  ;;  %v3302_v38 = vmul.f32 %v3027_v17, %v8340_v24  ;;  %v2718_v39 = vrot.slane %v2702_v55, %v7971_v41 }
 0x144   : > { %v8337_v48 = vsub.f32 %v1295_v15, %v2183_v21  ;;  %v3031_v15 = vrot.slane %v2692_v61, %v7986_v52  ;;  %v2710_v17 = vcombine.high %v2702_v55, %v2702_v55  ;;  %v3035_v9 = vrot.slane %v2694_v14, %v7986_v52 }
 0x145   : > { %v8286_v59 = vpop.f32.mrf.mxu1  ;;  %6984 = vmatmul.mubr.bf16.gmra.mxu0 %v3405_v26  ;;  %v3407_v26 = vpack.c.bf16 %v3299_v0, %v3298_v62  ;;  %11095 = vst [vmem:[#allocation39_spill] sm:$0xff] %v8349_v50  ;;  %v1862_v0 = vcombine.high %v1854_v47, %v1854_v47  ;;  %v2187_v62 = vrot.slane %v1846_v11, %v7986_v52 }
 0x146   : > { %6987 = vmatprep.mubr.bf16.mxu0 %v3406_v2  ;;  %11093 = vst [vmem:[#allocation37_spill] sm:$0xff] %v8337_v48  ;;  %v3305_v63 = vmul.f32 %v3031_v15, %v8337_v48  ;;  %v3304_v21 = vmul.f32 %v3031_v15, %v8349_v50 }
 0x147   : > { %v8295_v56 = vpop.f32.mrf.mxu1  ;;  %v8364_v61 = vsub.f32 %v8272_v33, %v2187_v62  ;;  %v8369_v11 = vsub.f32 %v8255_v13, %v2187_v62  ;;  %v1884_v24 = vrot.slane %v1862_v0, %v7971_v41  ;;  %v1847_v33 = vcombine.high %v8046_v53, %v8046_v53 }
 0x148   : > { %v3410_v47 = vpack.c.bf16 %v3305_v63, %v3304_v21  ;;  %v1892_v63 = vcombine.high %v1870_v34, %v1870_v34  ;;  %v2695_v0 = vcombine.high %v7943_v19, %v7943_v19  ;;  %v2732_v62 = vrot.slane %v2710_v17, %v7971_v41 }
 0x149   : > { %v8300_v16 = vpop.f32.mrf.mxu1  ;;  %11096 = vst [vmem:[#allocation40_spill] sm:$0xff] %v8364_v61  ;;  %11098 = vst [vmem:[#allocation42_spill] sm:$0xff] %v8369_v11  ;;  %v3307_v13 = vmul.f32 %v3035_v9, %v8364_v61  ;;  %v3306_v53 = vmul.f32 %v3035_v9, %v8369_v11  ;;  %v2740_v21 = vcombine.high %v2718_v39, %v2718_v39 }
 0x14a   : > { %v3043_v11 = vrot.slane %v2732_v62, %v7986_v52 }
 0x14b   : > { %v1311_v43 = vpop.f32.mrf.mxu1  ;;  %v3411_v61 = vpack.c.bf16 %v3307_v13, %v3306_v53 }
 0x14d   : > { %v8315_v7 = vpop.f32.mrf.mxu1  ;;  %6988 = vmatmul.mubr.bf16.gmra.mxu0 %v3407_v26  ;;  %v3409_v26 = vpack.c.bf16 %v3303_v31, %v3302_v38 }
 0x14e   : > { %6991 = vmatprep.mubr.bf16.mxu0 %v3408_v49  ;;  %v2191_v49 = vrot.slane %v1870_v34, %v7986_v52  ;;  %v1861_v34 = vrot.slane %v1847_v33, %v7971_v41 }
 0x14f   : > { %v8322_v22 = vpop.f32.mrf.mxu1 }
 0x150   : > { %v8366_v48 = vsub.f32 %v1311_v43, %v2191_v49  ;;  %v8378_v31 = vsub.f32 %v8295_v56, %v2191_v49  ;;  %v3039_v43 = vrot.slane %v2718_v39, %v7986_v52  ;;  %v2195_v56 = vrot.slane %v1884_v24, %v7986_v52 }
 0x151   : > { %v8328_v40 = vpop.f32.mrf.mxu1  ;;  %v1894_v39 = vcombine.high %v1884_v24, %v1884_v24  ;;  %v1863_v24 = vcombine.high %v1861_v34, %v1861_v34 }
 0x152   : > { %11097 = vst [vmem:[#allocation41_spill] sm:$0xff] %v8366_v48  ;;  %11099 = vst [vmem:[#allocation43_spill] sm:$0xff] %v8378_v31  ;;  %v3309_v38 = vmul.f32 %v3039_v43, %v8366_v48  ;;  %v3308_v49 = vmul.f32 %v3039_v43, %v8378_v31  ;;  %v8401_v9 = vsub.f32 %v8286_v59, %v2195_v56  ;;  %v8433_v31 = vpop.f32.mrf.mxu0 }
 0x153   : > { %v1327_v2 = vpop.f32.mrf.mxu1  ;;  %v2709_v43 = vrot.slane %v2695_v0, %v7971_v41  ;;  %v2203_v53 = vrot.slane %v1894_v39, %v7986_v52  ;;  %v2742_v0 = vcombine.high %v2732_v62, %v2732_v62  ;;  %v1891_v48 = vrot.slane %v1863_v24, %v7971_v41 }
 0x154   : > { %v3412_v17 = vpack.c.bf16 %v3309_v38, %v3308_v49  ;;  %11102 = vst [vmem:[#allocation46_spill] sm:$0xff] %v8401_v9 }
 0x155   : > { %v8343_v10 = vpop.f32.mrf.mxu1  ;;  %6992 = vmatmul.mubr.bf16.gmra.mxu0 %v3409_v26  ;;  %v2199_v26 = vrot.slane %v1892_v63, %v7986_v52  ;;  %v8429_v39 = vsub.f32 %v8315_v7, %v2203_v53  ;;  %v3051_v62 = vrot.slane %v2742_v0, %v7986_v52  ;;  %v8448_v0 = vpop.f32.mrf.mxu0 }
 0x156   : > { %6995 = vmatprep.mubr.bf16.mxu0 %v3410_v47  ;;  %v8396_v47 = vsub.f32 %v8300_v16, %v2195_v56  ;;  %v3047_v16 = vrot.slane %v2740_v21, %v7986_v52 }
 0x157   : > { %v8353_v36 = vpop.f32.mrf.mxu1  ;;  %v8398_v50 = vsub.f32 %v1327_v2, %v2199_v26  ;;  %v8408_v63 = vsub.f32 %v8322_v22, %v2199_v26  ;;  %v1877_v2 = vrot.slane %v1861_v34, %v7971_v41  ;;  %v2725_v22 = vrot.slane %v2709_v43, %v7971_v41  ;;  %11106 = vst [vmem:[#allocation50_spill] sm:$0xff] %v8429_v39 }
 0x158   : > { %11100 = vst [vmem:[#allocation44_spill] sm:$0xff] %v8396_v47  ;;  %v3311_v13 = vmul.f32 %v3043_v11, %v8396_v47  ;;  %v8424_v26 = vsub.f32 %v8328_v40, %v2203_v53  ;;  %v3314_v24 = vmul.f32 %v3051_v62, %v8429_v39 }
 0x159   : > { %v8358_v23 = vpop.f32.mrf.mxu1  ;;  %11101 = vst [vmem:[#allocation45_spill] sm:$0xff] %v8398_v50  ;;  %11103 = vst [vmem:[#allocation47_spill] sm:$0xff] %v8408_v63  ;;  %v3313_v38 = vmul.f32 %v3047_v16, %v8398_v50  ;;  %v3312_v21 = vmul.f32 %v3047_v16, %v8408_v63  ;;  %v2207_v49 = vrot.slane %v1877_v2, %v7986_v52 }
 0x15a   : > { %11104 = vst [vmem:[#allocation48_spill] sm:$0xff] %v8424_v26 }
 0x15b   : > { %v1343_v46 = vpop.f32.mrf.mxu1  ;;  %v3414_v34 = vpack.c.bf16 %v3313_v38, %v3312_v21  ;;  %v8438_v40 = vsub.f32 %v8353_v36, %v2207_v49 }
 0x15c   : > { %v8426_v50 = vsub.f32 %v1343_v46, %v2207_v49  ;;  %v3055_v46 = vrot.slane %v2725_v22, %v7986_v52  ;;  %v2741_v49 = vcombine.high %v2725_v22, %v2725_v22 }
 0x15d   : > { %v8373_v15 = vpop.f32.mrf.mxu1  ;;  %6996 = vmatmul.mubr.bf16.gmra.mxu0 %v3411_v61  ;;  %v3310_v61 = vmul.f32 %v3043_v11, %v8401_v9  ;;  %v2711_v11 = vcombine.high %v2709_v43, %v2709_v43  ;;  %11107 = vst [vmem:[#allocation51_spill] sm:$0xff] %v8438_v40  ;;  %v3315_v43 = vmul.f32 %v3051_v62, %v8424_v26 }
 0x15e   : > { %6999 = vmatprep.mubr.bf16.mxu0 %v3412_v17  ;;  %11105 = vst [vmem:[#allocation49_spill] sm:$0xff] %v8426_v50  ;;  %v3317_v38 = vmul.f32 %v3055_v46, %v8426_v50  ;;  %v3316_v21 = vmul.f32 %v3055_v46, %v8438_v40  ;;  %v1903_v62 = vrot.slane %v8448_v0, %v7971_v41 }
 0x15f   : > { %v8382_v55 = vpop.f32.mrf.mxu1  ;;  %v3413_v17 = vpack.c.bf16 %v3311_v13, %v3310_v61  ;;  %v1893_v13 = vcombine.high %v1877_v2, %v1877_v2  ;;  %v2211_v61 = vrot.slane %v1891_v48, %v7986_v52  ;;  %v2739_v53 = vrot.slane %v2711_v11, %v7971_v41 }
 0x160   : > { %v3416_v11 = vpack.c.bf16 %v3317_v38, %v3316_v21  ;;  %v1895_v46 = vcombine.high %v1891_v48, %v1891_v48  ;;  %v1919_v22 = vrot.slane %v1903_v62, %v7971_v41 }
 0x161   : > { %v8390_v14 = vpop.f32.mrf.mxu1  ;;  %v2215_v2 = vrot.slane %v1893_v13, %v7986_v52  ;;  %v8462_v26 = vsub.f32 %v8343_v10, %v2211_v61  ;;  %v3059_v39 = vrot.slane %v2739_v53, %v7986_v52  ;;  %v2743_v21 = vcombine.high %v2739_v53, %v2739_v53 }
 0x163   : > { %v1359_v19 = vpop.f32.mrf.mxu1  ;;  %11110 = vst [vmem:[#allocation54_spill] sm:$0xff] %v8462_v26 }
 0x164   : > { %v8459_v63 = vsub.f32 %v1359_v19, %v2215_v2  ;;  %v3063_v19 = vrot.slane %v2741_v49, %v7986_v52  ;;  %v2223_v49 = vrot.slane %v1919_v22, %v7986_v52 }
 0x165   : > { %v8404_v33 = vpop.f32.mrf.mxu1  ;;  %7000 = vmatmul.mubr.bf16.gmra.mxu0 %v3413_v17  ;;  %v8455_v17 = vsub.f32 %v8358_v23, %v2211_v61  ;;  %v2751_v23 = vrot.slane %v7954_v30, %v7971_v41  ;;  %v2219_v61 = vrot.slane %v1895_v46, %v7986_v52 }
 0x166   : > { %7003 = vmatprep.mubr.bf16.mxu0 %v3414_v34  ;;  %v3415_v34 = vpack.c.bf16 %v3315_v43, %v3314_v24  ;;  %11109 = vst [vmem:[#allocation53_spill] sm:$0xff] %v8459_v63  ;;  %v8471_v43 = vsub.f32 %v8382_v55, %v2215_v2  ;;  %v3321_v48 = vmul.f32 %v3063_v19, %v8459_v63 }
 0x167   : > { %v8413_v59 = vpop.f32.mrf.mxu1  ;;  %11108 = vst [vmem:[#allocation52_spill] sm:$0xff] %v8455_v17  ;;  %v3319_v10 = vmul.f32 %v3059_v39, %v8455_v17  ;;  %v3318_v24 = vmul.f32 %v3059_v39, %v8462_v26  ;;  %v2767_v55 = vrot.slane %v2751_v23, %v7971_v41  ;;  %v2759_v26 = vcombine.high %v2751_v23, %v2751_v23 }
 0x168   : > { %11111 = vst [vmem:[#allocation55_spill] sm:$0xff] %v8471_v43  ;;  %v3320_v2 = vmul.f32 %v3063_v19, %v8471_v43  ;;  %v8491_v53 = vsub.f32 %v8373_v15, %v2219_v61  ;;  %v8498_v43 = vsub.f32 %v8413_v59, %v2223_v49  ;;  %v1896_v15 = vcombine.high %v8448_v0, %v8448_v0 }
 0x169   : > { %v8418_v56 = vpop.f32.mrf.mxu1  ;;  %v3417_v17 = vpack.c.bf16 %v3319_v10, %v3318_v24  ;;  %v1941_v10 = vcombine.high %v1919_v22, %v1919_v22  ;;  %v2744_v22 = vcombine.high %v7954_v30, %v7954_v30 }
 0x16a   : > { %v3418_v39 = vpack.c.bf16 %v3321_v48, %v3320_v2  ;;  %11114 = vst [vmem:[#allocation58_spill] sm:$0xff] %v8491_v53  ;;  %11115 = vst [vmem:[#allocation59_spill] sm:$0xff] %v8498_v43 }
 0x16b   : > { %v1375_v28 = vpop.f32.mrf.mxu1  ;;  %v2231_v2 = vrot.slane %v1941_v10, %v7986_v52  ;;  %v2758_v10 = vrot.slane %v2744_v22, %v7971_v41 }
 0x16c   : > { %v8488_v63 = vsub.f32 %v1375_v28, %v2223_v49 }
 0x16d   : > { %v8435_v16 = vpop.f32.mrf.mxu1  ;;  %7004 = vmatmul.mubr.bf16.gmra.mxu0 %v3415_v34  ;;  %v1911_v34 = vcombine.high %v1903_v62, %v1903_v62  ;;  %v3067_v62 = vrot.slane %v2743_v21, %v7986_v52  ;;  %v2789_v21 = vcombine.high %v2767_v55, %v2767_v55 }
 0x16e   : > { %7007 = vmatprep.mubr.bf16.mxu0 %v3416_v11  ;;  %v8486_v11 = vsub.f32 %v8390_v14, %v2219_v61  ;;  %11113 = vst [vmem:[#allocation57_spill] sm:$0xff] %v8488_v63  ;;  %v3071_v14 = vrot.slane %v2767_v55, %v7986_v52 }
 0x16f   : > { %v8442_v7 = vpop.f32.mrf.mxu1  ;;  %v1933_v46 = vrot.slane %v1911_v34, %v7971_v41  ;;  %v3322_v24 = vmul.f32 %v3067_v62, %v8491_v53 }
 0x170   : > { %11112 = vst [vmem:[#allocation56_spill] sm:$0xff] %v8486_v11  ;;  %v3323_v28 = vmul.f32 %v3067_v62, %v8486_v11  ;;  %v3325_v48 = vmul.f32 %v3071_v14, %v8488_v63  ;;  %v3324_v34 = vmul.f32 %v3071_v14, %v8498_v43 }
 0x171   : > { %v8450_v36 = vpop.f32.mrf.mxu1  ;;  %v2227_v59 = vrot.slane %v1933_v46, %v7986_v52  ;;  %v1943_v55 = vcombine.high %v1933_v46, %v1933_v46 }
 0x172   : > { %v3419_v49 = vpack.c.bf16 %v3323_v28, %v3322_v24  ;;  %v3420_v11 = vpack.c.bf16 %v3325_v48, %v3324_v34  ;;  %v3079_v28 = vrot.slane %v2789_v21, %v7986_v52 }
 0x173   : > { %v1391_v50 = vpop.f32.mrf.mxu1  ;;  %v8517_v0 = vsub.f32 %v8418_v56, %v2227_v59  ;;  %v8523_v53 = vsub.f32 %v8404_v33, %v2227_v59  ;;  %v8530_v56 = vsub.f32 %v8442_v7, %v2231_v2  ;;  %v2235_v59 = vrot.slane %v1943_v55, %v7986_v52 }
 0x174   : > { %v8520_v62 = vsub.f32 %v1391_v50, %v2231_v2  ;;  %v2774_v7 = vrot.slane %v2758_v10, %v7971_v41  ;;  %v2760_v55 = vcombine.high %v2758_v10, %v2758_v10 }
 0x175   : > { %v8465_v13 = vpop.f32.mrf.mxu1  ;;  %7008 = vmatmul.mubr.bf16.gmra.mxu0 %v3417_v17  ;;  %v2781_v17 = vrot.slane %v2759_v26, %v7971_v41  ;;  %11116 = vst [vmem:[#allocation60_spill] sm:$0xff] %v8517_v0  ;;  %v1910_v26 = vrot.slane %v1896_v15, %v7971_v41  ;;  %11118 = vst [vmem:[#allocation62_spill] sm:$0xff] %v8523_v53  ;;  %v3328_v21 = vmul.f32 %v3079_v28, %v8530_v56 }
 0x176   : > { %7011 = vmatprep.mubr.bf16.mxu0 %v3418_v39  ;;  %11117 = vst [vmem:[#allocation61_spill] sm:$0xff] %v8520_v62  ;;  %11119 = vst [vmem:[#allocation63_spill] sm:$0xff] %v8530_v56  ;;  %v3329_v48 = vmul.f32 %v3079_v28, %v8520_v62  ;;  %v8546_v2 = vsub.f32 %v8450_v36, %v2235_v59 }
 0x177   : > { %v8475_v38 = vpop.f32.mrf.mxu1  ;;  %v3075_v30 = vrot.slane %v2781_v17, %v7986_v52  ;;  %v1926_v50 = vrot.slane %v1910_v26, %v7971_v41  ;;  %v1912_v46 = vcombine.high %v1910_v26, %v1910_v26  ;;  %v2791_v22 = vcombine.high %v2781_v17, %v2781_v17 }
 0x178   : > { %11120 = vst [vmem:[#allocation64_spill] sm:$0xff] %v8546_v2  ;;  %v8553_v17 = vsub.f32 %v8435_v16, %v2235_v59 }
 0x179   : > { %v8480_v40 = vpop.f32.mrf.mxu1  ;;  %v3327_v15 = vmul.f32 %v3075_v30, %v8517_v0  ;;  %v3326_v24 = vmul.f32 %v3075_v30, %v8523_v53  ;;  %v3422_v30 = vpack.c.bf16 %v3329_v48, %v3328_v21  ;;  %v3083_v43 = vrot.slane %v2791_v22, %v7986_v52 }
 0x17a   : > { %11122 = vst [vmem:[#allocation66_spill] sm:$0xff] %v8553_v17  ;;  %v1940_v28 = vrot.slane %v1912_v46, %v7971_v41  ;;  %v2788_v46 = vrot.slane %v2760_v55, %v7971_v41 }
 0x17b   : > { %v1407_v47 = vpop.f32.mrf.mxu1  ;;  %v3421_v62 = vpack.c.bf16 %v3327_v15, %v3326_v24  ;;  %v3087_v15 = vrot.slane %v2774_v7, %v7986_v52  ;;  %v1942_v24 = vcombine.high %v1926_v50, %v1926_v50  ;;  %v3330_v59 = vmul.f32 %v3083_v43, %v8553_v17 }
 0x17c   : > { %v3091_v55 = vrot.slane %v2788_v46, %v7986_v52  ;;  %v1944_v53 = vcombine.high %v1940_v28, %v1940_v28 }
 0x17d   : > { %v8495_v19 = vpop.f32.mrf.mxu1  ;;  %7012 = vmatmul.mubr.bf16.gmra.mxu0 %v3419_v49  ;;  %v8548_v49 = vpop.f32.mrf.mxu0  ;;  %v2247_v21 = vrot.slane %v1942_v24, %v7986_v52 }
 0x17e   : > { %7015 = vmatprep.mubr.bf16.mxu0 %v3420_v11  ;;  %v2239_v11 = vrot.slane %v1926_v50, %v7986_v52 }
 0x17f   : > { %v8502_v23 = vpop.f32.mrf.mxu1  ;;  %v1680_v10 = vpop.f32.mrf.mxu0 }
 0x180   : > { %v8550_v63 = vsub.f32 %v1407_v47, %v2239_v11  ;;  %v8560_v36 = vsub.f32 %v8475_v38, %v2239_v11  ;;  %v3331_v47 = vmul.f32 %v3083_v43, %v8546_v2  ;;  %v1952_v38 = vrot.slane %v1680_v10, %v7971_v41 }
 0x181   : > { %v8510_v61 = vpop.f32.mrf.mxu1  ;;  %v2790_v11 = vcombine.high %v2774_v7, %v2774_v7  ;;  %v2800_v7 = vrot.slane %v7964_v37, %v7971_v41 }
 0x182   : > { %11121 = vst [vmem:[#allocation65_spill] sm:$0xff] %v8550_v63  ;;  %11123 = vst [vmem:[#allocation67_spill] sm:$0xff] %v8560_v36  ;;  %v3333_v16 = vmul.f32 %v3087_v15, %v8550_v63  ;;  %v3332_v50 = vmul.f32 %v3087_v15, %v8560_v36  ;;  %v3423_v2 = vpack.c.bf16 %v3331_v47, %v3330_v59 }
 0x183   : > { %v1423_v39 = vpop.f32.mrf.mxu1  ;;  %v3095_v15 = vrot.slane %v2790_v11, %v7986_v52  ;;  %v1960_v47 = vcombine.high %v1952_v38, %v1952_v38  ;;  %v2792_v59 = vcombine.high %v2788_v46, %v2788_v46 }
 0x184   : > { %v8578_v0 = vsub.f32 %v1423_v39, %v2247_v21  ;;  %v3424_v43 = vpack.c.bf16 %v3333_v16, %v3332_v50  ;;  %v1968_v39 = vrot.slane %v1952_v38, %v7971_v41  ;;  %v2251_v16 = vrot.slane %v1944_v53, %v7986_v52 }
 0x185   : > { %v8526_v14 = vpop.f32.mrf.mxu1  ;;  %7016 = vmatmul.mubr.bf16.gmra.mxu0 %v3421_v62  ;;  %v2243_v62 = vrot.slane %v1940_v28, %v7986_v52  ;;  %v2808_v38 = vcombine.high %v2800_v7, %v2800_v7  ;;  %v3099_v46 = vrot.slane %v2792_v59, %v7986_v52 }
 0x186   : > { %7019 = vmatprep.mubr.bf16.mxu0 %v3422_v30  ;;  %11125 = vst [vmem:[#allocation69_spill] sm:$0xff] %v8578_v0  ;;  %v3337_v28 = vmul.f32 %v3095_v15, %v8578_v0  ;;  %v8605_v11 = vsub.f32 %v8510_v61, %v2251_v16  ;;  %v8610_v53 = vsub.f32 %v8495_v19, %v2251_v16 }
 0x187   : > { %v8535_v33 = vpop.f32.mrf.mxu1  ;;  %v8576_v30 = vsub.f32 %v8480_v40, %v2243_v62  ;;  %v8581_v17 = vsub.f32 %v8465_v13, %v2243_v62  ;;  %v8589_v40 = vsub.f32 %v8502_v23, %v2247_v21  ;;  %v2816_v23 = vrot.slane %v2800_v7, %v7971_v41 }
 0x188   : > { %v2255_v21 = vrot.slane %v1968_v39, %v7986_v52  ;;  %11128 = vst [vmem:[#allocation72_spill] sm:$0xff] %v8605_v11  ;;  %11130 = vst [vmem:[#allocation74_spill] sm:$0xff] %v8610_v53  ;;  %v3339_v7 = vmul.f32 %v3099_v46, %v8605_v11 }
 0x189   : > { %v8540_v34 = vpop.f32.mrf.mxu1  ;;  %11124 = vst [vmem:[#allocation68_spill] sm:$0xff] %v8576_v30  ;;  %11126 = vst [vmem:[#allocation70_spill] sm:$0xff] %v8581_v17  ;;  %v3335_v13 = vmul.f32 %v3091_v55, %v8576_v30  ;;  %v3336_v50 = vmul.f32 %v3095_v15, %v8589_v40 }
 0x18a   : > { %11127 = vst [vmem:[#allocation71_spill] sm:$0xff] %v8589_v40  ;;  %v1945_v40 = vcombine.high %v1680_v10, %v1680_v10  ;;  %v8617_v61 = vsub.f32 %v8535_v33, %v2255_v21  ;;  %v2830_v33 = vrot.slane %v2808_v38, %v7971_v41 }
 0x18b   : > { %v1439_v26 = vpop.f32.mrf.mxu1 }
 0x18c   : > { %v8607_v0 = vsub.f32 %v1439_v26, %v2255_v21  ;;  %11131 = vst [vmem:[#allocation75_spill] sm:$0xff] %v8617_v61  ;;  %v1990_v26 = vcombine.high %v1968_v39, %v1968_v39  ;;  %v1959_v39 = vrot.slane %v1945_v40, %v7971_v41  ;;  %v2838_v21 = vcombine.high %v2816_v23, %v2816_v23 }
 0x18d   : > { %v8557_v56 = vpop.f32.mrf.mxu1  ;;  %7020 = vmatmul.mubr.bf16.gmra.mxu0 %v3423_v2  ;;  %v3334_v2 = vmul.f32 %v3091_v55, %v8581_v17  ;;  %v3426_v55 = vpack.c.bf16 %v3337_v28, %v3336_v50  ;;  %v1982_v17 = vrot.slane %v1960_v47, %v7971_v41  ;;  %v3338_v47 = vmul.f32 %v3099_v46, %v8610_v53 }
 0x18e   : > { %7023 = vmatprep.mubr.bf16.mxu0 %v3424_v43  ;;  %11129 = vst [vmem:[#allocation73_spill] sm:$0xff] %v8607_v0  ;;  %v2263_v50 = vrot.slane %v1990_v26, %v7986_v52  ;;  %v3107_v53 = vrot.slane %v2830_v33, %v7986_v52  ;;  %v3111_v26 = vrot.slane %v2838_v21, %v7986_v52 }
 0x18f   : > { %v8564_v48 = vpop.f32.mrf.mxu1  ;;  %v3425_v43 = vpack.c.bf16 %v3335_v13, %v3334_v2  ;;  %v3103_v13 = vrot.slane %v2816_v23, %v7986_v52  ;;  %v2793_v2 = vcombine.high %v7964_v37, %v7964_v37  ;;  %v2259_v10 = vrot.slane %v1982_v17, %v7986_v52 }
 0x190   : > { %v1992_v40 = vcombine.high %v1982_v17, %v1982_v17  ;;  %v2849_v17 = vrot.slane %v7949_v25, %v7971_v41 }
 0x191   : > { %v8570_v22 = vpop.f32.mrf.mxu1  ;;  %v3341_v19 = vmul.f32 %v3103_v13, %v8607_v0  ;;  %v3340_v59 = vmul.f32 %v3103_v13, %v8617_v61  ;;  %v8642_v38 = vsub.f32 %v8526_v14, %v2259_v10  ;;  %v2807_v23 = vrot.slane %v2793_v2, %v7971_v41 }
 0x192   : > { %v2842_v14 = vcombine.high %v7949_v25, %v7949_v25 }
 0x193   : > { %v1455_v63 = vpop.f32.mrf.mxu1  ;;  %v3428_v11 = vpack.c.bf16 %v3341_v19, %v3340_v59  ;;  %11134 = vst [vmem:[#allocation78_spill] sm:$0xff] %v8642_v38  ;;  %v1961_v59 = vcombine.high %v1959_v39, %v1959_v39 }
 0x194   : > { %v8639_v46 = vsub.f32 %v1455_v63, %v2263_v50  ;;  %v1975_v63 = vrot.slane %v1959_v39, %v7971_v41  ;;  %v8669_v36 = vrot.slane %v2842_v14, %v7971_v41 }
 0x195   : > { %v8584_v9 = vpop.f32.mrf.mxu1  ;;  %7024 = vmatmul.mubr.bf16.gmra.mxu0 %v3425_v43  ;;  %v8635_v43 = vsub.f32 %v8540_v34, %v2259_v10  ;;  %v8649_v34 = vsub.f32 %v8564_v48, %v2263_v50  ;;  %v3342_v48 = vmul.f32 %v3107_v53, %v8642_v38  ;;  %v2840_v10 = vcombine.high %v2830_v33, %v2830_v33 }
 0x196   : > { %7027 = vmatprep.mubr.bf16.mxu0 %v3426_v55  ;;  %v3427_v55 = vpack.c.bf16 %v3339_v7, %v3338_v47  ;;  %11133 = vst [vmem:[#allocation77_spill] sm:$0xff] %v8639_v46  ;;  %v3345_v2 = vmul.f32 %v3111_v26, %v8639_v46  ;;  %v2267_v47 = vrot.slane %v1992_v40, %v7986_v52 }
 0x197   : > { %v8594_v24 = vpop.f32.mrf.mxu1  ;;  %11132 = vst [vmem:[#allocation76_spill] sm:$0xff] %v8635_v43  ;;  %11135 = vst [vmem:[#allocation79_spill] sm:$0xff] %v8649_v34  ;;  %v3343_v7 = vmul.f32 %v3107_v53, %v8635_v43  ;;  %v2271_v21 = vrot.slane %v1975_v63, %v7986_v52  ;;  %v2857_v40 = vcombine.high %v2849_v17, %v2849_v17 }
 0x198   : > { %v8672_v25 = vsub.f32 %v8570_v22, %v2267_v47  ;;  %v2891_v33 = vcombine.high %v7959_v32, %v7959_v32  ;;  %v8681_v0 = vsub.f32 %v8557_v56, %v2267_v47  ;;  %v3115_v14 = vrot.slane %v2840_v10, %v7986_v52 }
 0x199   : > { %v8599_v62 = vpop.f32.mrf.mxu1  ;;  %v3429_v46 = vpack.c.bf16 %v3343_v7, %v3342_v48  ;;  %v1989_v61 = vrot.slane %v1961_v59, %v7971_v41  ;;  %v8688_v7 = vrot.slane %v2849_v17, %v7971_v41  ;;  %v8691_v48 = vsub.f32 %v8594_v24, %v2271_v21 }
 0x19a   : > { %11136 = vst [vmem:[#allocation80_spill] sm:$0xff] %v8672_v25  ;;  %11138 = vst [vmem:[#allocation82_spill] sm:$0xff] %v8681_v0  ;;  %v3347_v47 = vmul.f32 %v3115_v14, %v8672_v25  ;;  %v8705_v24 = vrot.slane %v8669_v36, %v7971_v41  ;;  %v1994_v10 = vcombine.high %v8433_v31, %v8433_v31 }
 0x19b   : > { %v1471_v30 = vpop.f32.mrf.mxu1  ;;  %11139 = vst [vmem:[#allocation83_spill] sm:$0xff] %v8691_v48 }
 0x19c   : > { %v8678_v39 = vsub.f32 %v1471_v30, %v2271_v21  ;;  %v2275_v21 = vrot.slane %v1989_v61, %v7986_v52  ;;  %v2008_v45 = vrot.slane %v1994_v10, %v7971_v41  ;;  %v2050_v10 = vrot.slane %v8548_v49, %v7971_v41 }
 0x19d   : > { %v8614_v15 = vpop.f32.mrf.mxu1  ;;  %7028 = vmatmul.mubr.bf16.gmra.mxu0 %v3427_v55  ;;  %v2823_v55 = vrot.slane %v2807_v23, %v7971_v41  ;;  %v8844_v44 = vrot.slane %v8705_v24, %v7986_v52 }
 0x19e   : > { %7031 = vmatprep.mubr.bf16.mxu0 %v3428_v11  ;;  %v3344_v11 = vmul.f32 %v3111_v26, %v8649_v34  ;;  %11137 = vst [vmem:[#allocation81_spill] sm:$0xff] %v8678_v39  ;;  %v2809_v34 = vcombine.high %v2807_v23, %v2807_v23  ;;  %v2898_v23 = vrot.slane %v7959_v32, %v7971_v41 }
 0x19f   : > { %v8621_v28 = vpop.f32.mrf.mxu1  ;;  %v3119_v30 = vrot.slane %v2823_v55, %v7986_v52  ;;  %v8714_v32 = vrot.slane %v2857_v40, %v7971_v41  ;;  %v2839_v43 = vcombine.high %v2823_v55, %v2823_v55  ;;  %v8726_v40 = vsub.f32 %v8599_v62, %v2275_v21 }
 0x1a0   : > { %v3430_v26 = vpack.c.bf16 %v3345_v2, %v3344_v11  ;;  %v1991_v2 = vcombine.high %v1975_v63, %v1975_v63  ;;  %v8708_v63 = vrot.slane %v2891_v33, %v7971_v41  ;;  %v3346_v11 = vmul.f32 %v3115_v14, %v8681_v0 }
 0x1a1   : > { %v8629_v16 = vpop.f32.mrf.mxu1  ;;  %v3349_v59 = vmul.f32 %v3119_v30, %v8678_v39  ;;  %v3348_v25 = vmul.f32 %v3119_v30, %v8691_v48  ;;  %v2906_v39 = vcombine.high %v2898_v23, %v2898_v23  ;;  %11140 = vst [vmem:[#allocation84_spill] sm:$0xff] %v8726_v40  ;;  %v2043_v55 = vcombine.high %v8548_v49, %v8548_v49 }
 0x1a2   : > { %v3431_v14 = vpack.c.bf16 %v3347_v47, %v3346_v11  ;;  %v1993_v47 = vcombine.high %v1989_v61, %v1989_v61  ;;  %v8756_v61 = vrot.slane %v8708_v63, %v7971_v41  ;;  %v2058_v48 = vcombine.high %v2050_v10, %v2050_v10 }
 0x1a3   : > { %v8637_v37 = vpop.f32.mrf.mxu1  ;;  %v3432_v30 = vpack.c.bf16 %v3349_v59, %v3348_v25  ;;  %v3127_v25 = vrot.slane %v2839_v43, %v7986_v52  ;;  %v8763_v49 = vrot.slane %v2906_v39, %v7971_v41  ;;  %v2010_v43 = vcombine.high %v2008_v45, %v2008_v45 }
 0x1a4   : > { %v8776_v39 = vrot.slane %v2050_v10, %v7971_v41 }
 0x1a5   : > { %v8645_v13 = vpop.f32.mrf.mxu1  ;;  %7032 = vmatmul.mubr.bf16.gmra.mxu0 %v3429_v46  ;;  %v2001_v46 = vrot.slane %v8433_v31, %v7971_v41  ;;  %v2279_v31 = vrot.slane %v1991_v2, %v7986_v52  ;;  %v8740_v2 = vsub.f32 %v8584_v9, %v2275_v21  ;;  %v2283_v9 = vrot.slane %v1993_v47, %v7986_v52 }
 0x1a6   : > { %7035 = vmatprep.mubr.bf16.mxu0 %v3430_v26  ;;  %v2837_v26 = vrot.slane %v2809_v34, %v7971_v41  ;;  %v8731_v34 = vrot.slane %v2898_v23, %v7971_v41  ;;  %v2038_v10 = vrot.slane %v2010_v43, %v7971_v41  ;;  %v3139_v43 = vrot.slane %v8714_v32, %v7986_v52 }
 0x1a7   : > { %v8656_v19 = vpop.f32.mrf.mxu1  ;;  %v2009_v38 = vcombine.high %v2001_v46, %v2001_v46  ;;  %v8735_v33 = vsub.f32 %v8637_v37, %v2279_v31  ;;  %11142 = vst [vmem:[#allocation86_spill] sm:$0xff] %v8740_v2  ;;  %v2017_v23 = vrot.slane %v2001_v46, %v7971_v41  ;;  %v8749_v37 = vsub.f32 %v8621_v28, %v2279_v31 }
 0x1a8   : > { %v3123_v62 = vrot.slane %v2837_v26, %v7986_v52  ;;  %v8798_v18 = vsub.f32 %v8614_v15, %v2283_v9 }
 0x1a9   : > { %v8663_v50 = vpop.f32.mrf.mxu1  ;;  %11141 = vst [vmem:[#allocation85_spill] sm:$0xff] %v8735_v33  ;;  %11143 = vst [vmem:[#allocation87_spill] sm:$0xff] %v8749_v37  ;;  %v2031_v46 = vrot.slane %v2009_v38, %v7971_v41  ;;  %v3353_v31 = vmul.f32 %v3127_v25, %v8735_v33  ;;  %v3352_v51 = vmul.f32 %v3127_v25, %v8749_v37 }
 0x1aa   : > { %v3351_v59 = vmul.f32 %v3123_v62, %v8726_v40  ;;  %v2841_v40 = vcombine.high %v2837_v26, %v2837_v26  ;;  %v2287_v28 = vrot.slane %v2017_v23, %v7986_v52  ;;  %v8781_v33 = vsub.f32 %v8629_v16, %v2283_v9  ;;  %11147 = vst [vmem:[#allocation90_spill] sm:$0xff] %v8798_v18 }
 0x1ab   : > { %v8674_v53 = vpop.f32.mrf.mxu1  ;;  %v11146_v25 = vcombine.high %v8669_v36, %v8669_v36  ;;  %v3434_v42 = vpack.c.bf16 %v3353_v31, %v3352_v51  ;;  %v3135_v51 = vrot.slane %v8688_v7, %v7986_v52  ;;  %v2039_v31 = vcombine.high %v2017_v23, %v2017_v23 }
 0x1ac   : > { %11144 = vst [vmem:[#allocation88_spill] sm:$0xff] %v8781_v33  ;;  %v8788_v26 = vsub.f32 %v8674_v53, %v2287_v28  ;;  %v2024_v53 = vrot.slane %v2008_v45, %v7971_v41  ;;  %v8807_v36 = vsub.f32 %v8656_v19, %v2287_v28  ;;  %v11149_v45 = vcombine.high %v8688_v7, %v8688_v7 }
 0x1ad   : > { %v8685_v22 = vpop.f32.mrf.mxu1  ;;  %7036 = vmatmul.mubr.bf16.gmra.mxu0 %v3431_v14  ;;  %v8769_v14 = vrot.slane %v2043_v55, %v7971_v41  ;;  %v2041_v55 = vcombine.high %v2031_v46, %v2031_v46  ;;  %v2886_v37 = vrot.slane %v11146_v25, %v7971_v41  ;;  %v2042_v23 = vcombine.high %v2038_v10, %v2038_v10 }
 0x1ae   : > { %7039 = vmatprep.mubr.bf16.mxu0 %v3432_v30  ;;  %v3350_v30 = vmul.f32 %v3123_v62, %v8740_v2  ;;  %v2889_v62 = vcombine.high %v8714_v32, %v8714_v32  ;;  %11145 = vst [vmem:[#allocation89_spill] sm:$0xff] %v8788_v26  ;;  %11148 = vst [vmem:[#allocation91_spill] sm:$0xff] %v8807_v36  ;;  %v3143_v9 = vrot.slane %v11149_v45, %v7986_v52 }
 0x1af   : > { %v8701_v17 = vpop.f32.mrf.mxu1  ;;  %v2059_v16 = vcombine.high %v8769_v14, %v8769_v14  ;;  %v3357_v19 = vmul.f32 %v3135_v51, %v8788_v26  ;;  %v8830_v7 = vrot.slane %v2058_v48, %v7971_v41  ;;  %v3356_v45 = vmul.f32 %v3135_v51, %v8807_v36 }
 0x1b0   : > { %v3433_v2 = vpack.c.bf16 %v3351_v59, %v3350_v30  ;;  %v3131_v59 = vrot.slane %v2841_v40, %v7986_v52  ;;  %v2291_v40 = vrot.slane %v2031_v46, %v7986_v52  ;;  %v8822_v28 = vrot.slane %v2889_v62, %v7986_v52 }
 0x1b1   : > { %v8719_v56 = vpop.f32.mrf.mxu1  ;;  %v2888_v46 = vcombine.high %v8705_v24, %v8705_v24  ;;  %v2295_v26 = vrot.slane %v2039_v31, %v7986_v52  ;;  %v2307_v62 = vrot.slane %v2038_v10, %v7986_v52  ;;  %v8836_v20 = vrot.slane %v2886_v37, %v7986_v52 }
 0x1b2   : > { %v3355_v15 = vmul.f32 %v3131_v59, %v8781_v33  ;;  %v3354_v25 = vmul.f32 %v3131_v59, %v8798_v18  ;;  %v2040_v33 = vcombine.high %v2024_v53, %v2024_v53  ;;  %v8839_v59 = vsub.f32 %v8663_v50, %v2291_v40 }
 0x1b3   : > { %v8728_v0 = vpop.f32.mrf.mxu1  ;;  %v2303_v18 = vrot.slane %v2024_v53, %v7986_v52  ;;  %v8852_v10 = vrot.slane %v2042_v23, %v7986_v52  ;;  %v3436_v50 = vpack.c.bf16 %v3357_v19, %v3356_v45  ;;  %v8858_v31 = vsub.f32 %v8645_v13, %v2291_v40 }
 0x1b4   : > { %11150 = vst [vmem:[#allocation92_spill] sm:$0xff] %v8839_v59  ;;  %v3435_v48 = vpack.c.bf16 %v3355_v15, %v3354_v25  ;;  %v8849_v51 = vsub.f32 %v8728_v0, %v2295_v26  ;;  %v8861_v24 = vrot.slane %v2040_v33, %v7986_v52  ;;  %v8864_v53 = vrot.slane %v2888_v46, %v7986_v52 }
 0x1b5   : > { %v8743_v11 = vpop.f32.mrf.mxu1  ;;  %7040 = vmatmul.mubr.bf16.gmra.mxu0 %v3433_v2  ;;  %v2299_v2 = vrot.slane %v2041_v55, %v7986_v52  ;;  %11152 = vst [vmem:[#allocation94_spill] sm:$0xff] %v8858_v31  ;;  %v8870_v0 = vrot.slane %v8830_v7, %v7986_v52  ;;  %v8873_v23 = vsub.f32 %v8701_v17, %v2295_v26 }
 0x1b6   : > { %7043 = vmatprep.mubr.bf16.mxu0 %v3434_v42  ;;  %v2890_v42 = vcombine.high %v2886_v37, %v2886_v37  ;;  %11151 = vst [vmem:[#allocation93_spill] sm:$0xff] %v8849_v51  ;;  %v8877_v13 = vrot.slane %v8763_v49, %v7986_v52  ;;  %v8881_v33 = vrot.slane %v8776_v39, %v7986_v52 }
 0x1b7   : > { %v8760_v21 = vpop.f32.mrf.mxu1  ;;  %11153 = vst [vmem:[#allocation95_spill] sm:$0xff] %v8873_v23  ;;  %v11154_v40 = vcombine.high %v8708_v63, %v8708_v63  ;;  %v8892_v17 = vrot.slane %v8731_v34, %v7986_v52  ;;  %v2938_v26 = vcombine.high %v8763_v49, %v8763_v49  ;;  %v2087_v46 = vrot.slane %v2059_v16, %v7971_v41 }
 0x1b8   : > { %v8855_v37 = vrot.slane %v2890_v42, %v7986_v52  ;;  %v3359_v42 = vmul.f32 %v3139_v43, %v8839_v59  ;;  %v8898_v45 = vsub.f32 %v8719_v56, %v2299_v2  ;;  %v11156_v63 = vcombine.high %v8731_v34, %v8731_v34 }
 0x1b9   : > { %v8773_v38 = vpop.f32.mrf.mxu1  ;;  %v2935_v19 = vrot.slane %v11154_v40, %v7971_v41  ;;  %v2073_v40 = vrot.slane %v8769_v14, %v7971_v41  ;;  %v3358_v36 = vmul.f32 %v3139_v43, %v8858_v31  ;;  %v2088_v49 = vcombine.high %v8776_v39, %v8776_v39 }
 0x1ba   : > { %11155 = vst [vmem:[#allocation96_spill] sm:$0xff] %v8898_v45  ;;  %v8916_v56 = vrot.slane %v8756_v61, %v7986_v52  ;;  %v2937_v16 = vcombine.high %v8756_v61, %v8756_v61  ;;  %v8921_v34 = vsub.f32 %v8685_v22, %v2299_v2  ;;  %v2090_v41 = vcombine.high %v8830_v7, %v8830_v7 }
 0x1bb   : > { %v8785_v47 = vpop.f32.mrf.mxu1  ;;  %v2939_v14 = vcombine.high %v2935_v19, %v2935_v19  ;;  %v3437_v43 = vpack.c.bf16 %v3359_v42, %v3358_v36  ;;  %v3179_v27 = vrot.slane %v2938_v26, %v7986_v52  ;;  %v2091_v35 = vcombine.high %v2087_v46, %v2087_v46 }
 0x1bc   : > { %11157 = vst [vmem:[#allocation97_spill] sm:$0xff] %v8921_v34  ;;  %v3363_v22 = vmul.f32 %v8822_v28, %v8898_v45  ;;  %v8935_v2 = vrot.slane %v2935_v19, %v7986_v52  ;;  %v8938_v7 = vsub.f32 %v8743_v11, %v2307_v62  ;;  %v2327_v26 = vrot.slane %v2088_v49, %v7986_v52 }
 0x1bd   : > { %v8802_v30 = vpop.f32.mrf.mxu1  ;;  %7044 = vmatmul.mubr.bf16.gmra.mxu0 %v3435_v48  ;;  %v3361_v48 = vmul.f32 %v3143_v9, %v8849_v51  ;;  %v8927_v51 = vsub.f32 %v8785_v47, %v2303_v18  ;;  %v8941_v47 = vsub.f32 %v8760_v21, %v2303_v18  ;;  %v3362_v19 = vmul.f32 %v8822_v28, %v8921_v34 }
 0x1be   : > { %7047 = vmatprep.mubr.bf16.mxu0 %v3436_v50  ;;  %v8905_v50 = vrot.slane %v11156_v63, %v7986_v52  ;;  %v3360_v63 = vmul.f32 %v3143_v9, %v8873_v23  ;;  %v2089_v9 = vcombine.high %v2073_v40, %v2073_v40  ;;  %11159 = vst [vmem:[#allocation99_spill] sm:$0xff] %v8938_v7 }
 0x1bf   : > { %v8818_v32 = vpop.f32.mrf.mxu1  ;;  %11158 = vst [vmem:[#allocation98_spill] sm:$0xff] %v8927_v51  ;;  %11160 = vst [vmem:[#allocation100_spill] sm:$0xff] %v8941_v47  ;;  %v8947_v23 = vrot.slane %v2937_v16, %v7986_v52  ;;  %v8953_v11 = vrot.slane %v2073_v40, %v7986_v52  ;;  %v8956_v18 = vrot.slane %v2939_v14, %v7986_v52 }
 0x1c0   : > { %v3438_v61 = vpack.c.bf16 %v3361_v48, %v3360_v63  ;;  %v2331_v48 = vrot.slane %v2090_v41, %v7986_v52  ;;  %v8959_v21 = vsub.f32 %v8773_v38, %v2307_v62  ;;  %v3365_v49 = vmul.f32 %v8844_v44, %v8927_v51 }
 0x1c1   : > { %v8827_v55 = vpop.f32.mrf.mxu1  ;;  %v2339_v28 = vrot.slane %v2087_v46, %v7986_v52  ;;  %v3439_v41 = vpack.c.bf16 %v3363_v22, %v3362_v19  ;;  %v8976_v62 = vrot.slane %v2089_v9, %v7986_v52  ;;  %v8980_v14 = vmul.f32 %v8836_v20, %v8938_v7 }
 0x1c2   : > { %11161 = vst [vmem:[#allocation101_spill] sm:$0xff] %v8959_v21  ;;  %v8971_v40 = vsub.f32 %v8827_v55, %v8852_v10  ;;  %v3364_v46 = vmul.f32 %v8844_v44, %v8941_v47  ;;  %v3367_v44 = vmul.f32 %v8836_v20, %v8959_v21 }
 0x1c3   : > { %v8846_v60 = vpop.f32.mrf.mxu1 }
 0x1c4   : > { %11162 = vst [vmem:[#allocation102_spill] sm:$0xff] %v8971_v40  ;;  %v8990_v55 = vsub.f32 %v8846_v60, %v8861_v24  ;;  %v9010_v51 = vmul.f32 %v8855_v37, %v8971_v40 }
 0x1c5   : > { %v8866_v15 = vpop.f32.mrf.mxu1  ;;  %v8929_v39 = vpop.f32.mrf.mxu0  ;;  %7048 = vmatmul.mubr.bf16.gmra.mxu0 %v3437_v43  ;;  %v8967_v43 = vrot.slane %v2091_v35, %v7986_v52  ;;  %v8986_v35 = vsub.f32 %v8802_v30, %v8852_v10  ;;  %v9004_v30 = vsub.f32 %v8818_v32, %v8861_v24  ;;  %v3440_v10 = vpack.c.bf16 %v3365_v49, %v3364_v46 }
 0x1c6   : > { %7051 = vmatprep.mubr.bf16.mxu0 %v3438_v61  ;;  %11164 = vst [vmem:[#allocation104_spill] sm:$0xff] %v8990_v55  ;;  %v3369_v20 = vmul.f32 %v8864_v53, %v8990_v55 }
 0x1c7   : > { %v8888_v25 = vpop.f32.mrf.mxu1  ;;  %v8943_v36 = vpop.f32.mrf.mxu0  ;;  %11163 = vst [vmem:[#allocation103_spill] sm:$0xff] %v8986_v35  ;;  %11167 = vst [vmem:[#allocation107_spill] sm:$0xff] %v9004_v30 }
 0x1c9   : > { %v8910_v59 = vpop.f32.mrf.mxu1  ;;  %v8963_v16 = vpop.f32.mrf.mxu0 }
 0x1ca   : > { %v4068_v38 = vmax.f32 %v8929_v39, %v8963_v16 }
 0x1cb   : > { %v1567_v31 = vpop.f32.mrf.mxu1  ;;  %v8992_v22 = vpop.f32.mrf.mxu0 }
 0x1cc   : > { %v4069_v52 = vrot.slane %v4068_v38, 4  ;;  %v4061_v9 = vmax.f32 %v8943_v36, %v8992_v22  ;;  %v9021_v32 = vsub.f32 %v1567_v31, %v8881_v33  ;;  %v3368_v31 = vmul.f32 %v8864_v53, %v9004_v30 }
 0x1cd   : > { %v6909_v42 = vpop.f32.mrf.mxu1  ;;  %v9023_v24 = vpop.f32.mrf.mxu0  ;;  %7052 = vmatmul.mubr.bf16.gmra.mxu0 %v3439_v41  ;;  %v9035_v41 = vsub.f32 %v8888_v25, %v8881_v33  ;;  %v9048_v53 = vsub.f32 %v8910_v59, %v8870_v0 }
 0x1ce   : > { %v9006_v60 = vsub.f32 %v6909_v42, %v2331_v48  ;;  %v4070_v45 = vmax.f32 %v4068_v38, %v4069_v52  ;;  %11170 = vst [vmem:[#allocation110_spill] sm:$0xff] %v9021_v32  ;;  %7055 = vmatprep.mubr.bf16.mxu0 %v3440_v10 }
 0x1cf   : > { %v1580_v63 = vpop.f32.mrf.mxu1  ;;  %11171 = vst [vmem:[#allocation111_spill] sm:$0xff] %v9035_v41  ;;  %v9038_v52 = vpop.f32.mrf.mxu0  ;;  %11173 = vst [vmem:[#allocation113_spill] sm:$0xff] %v9048_v53 }
 0x1d0   : > { %v8996_v19 = vsub.f32 %v1580_v63, %v2327_v26  ;;  %11168 = vst [vmem:[#allocation108_spill] sm:$0xff] %v9006_v60  ;;  %v4062_v63 = vrot.slane %v4061_v9, 4  ;;  %v4071_v49 = vrot.slane %v4070_v45, 2  ;;  %v3378_v46 = vmul.f32 %v3179_v27, %v9006_v60 }
 0x1d1   : > { %v6910_v61 = vpop.f32.mrf.mxu1  ;;  %v9054_v25 = vpop.f32.mrf.mxu0 }
 0x1d2   : > { %11165 = vst [vmem:[#allocation105_spill] sm:$0xff] %v8996_v19  ;;  %v8998_v7 = vsub.f32 %v6910_v61, %v2331_v48  ;;  %v9016_v61 = vmul.f32 %v8855_v37, %v8986_v35  ;;  %v4063_v38 = vmax.f32 %v4061_v9, %v4062_v63  ;;  %v4072_v63 = vmax.f32 %v4070_v45, %v4071_v49 }
 0x1d3   : > { %v1583_v47 = vpop.f32.mrf.mxu1  ;;  %v4082_v49 = vmax.f32 %v9023_v24, %v9054_v25  ;;  %v9060_v59 = vpop.f32.mrf.mxu0 }
 0x1d4   : > { %11166 = vst [vmem:[#allocation106_spill] sm:$0xff] %v8998_v7  ;;  %v9012_v34 = vsub.f32 %v1583_v47, %v2327_v26  ;;  %v3379_v42 = vmul.f32 %v3179_v27, %v8998_v7  ;;  %v3376_v47 = vmul.f32 %v8905_v50, %v8996_v19  ;;  %v3441_v26 = vpack.c.bf16 %v3367_v44, %v8980_v14 }
 0x1d5   : > { %v6913_v48 = vpop.f32.mrf.mxu1  ;;  %v4064_v40 = vrot.slane %v4063_v38, 2  ;;  %v9044_v14 = vsub.f32 %v8866_v15, %v8870_v0  ;;  %v9052_v27 = vmul.f32 %v8892_v17, %v9021_v32  ;;  %v4073_v10 = vrot.slane %v4072_v63, 1 }
 0x1d6   : > { %11169 = vst [vmem:[#allocation109_spill] sm:$0xff] %v9012_v34  ;;  %v3377_v37 = vmul.f32 %v8905_v50, %v9012_v34  ;;  %v3447_v33 = vpack.c.bf16 %v3379_v42, %v3378_v46  ;;  %v3372_v15 = vmul.f32 %v8892_v17, %v9035_v41  ;;  %v9062_v0 = vsub.f32 %v6913_v48, %v2339_v28 }
 0x1d7   : > { %v1596_v9 = vpop.f32.mrf.mxu1  ;;  %11172 = vst [vmem:[#allocation112_spill] sm:$0xff] %v9044_v14  ;;  %v4065_v45 = vmax.f32 %v4063_v38, %v4064_v40  ;;  %v4074_v40 = vmax.f32 %v4072_v63, %v4073_v10  ;;  %v4083_v35 = vrot.slane %v4082_v49, 4  ;;  %v9073_v17 = vmul.f32 %v8877_v13, %v9044_v14  ;;  %7056 = vmatmul.mubr.bf16.gmra.mxu0 %v3441_v26 }
 0x1d8   : > { %v3446_v50 = vpack.c.bf16 %v3377_v37, %v3376_v47  ;;  %v3442_v47 = vpack.c.bf16 %v3369_v20, %v3368_v31  ;;  %11174 = vst [vmem:[#allocation114_spill] sm:$0xff] %v9062_v0  ;;  %v9065_v37 = vsub.f32 %v1596_v9, %v8953_v11  ;;  %v4075_v20 = vmax.f32 %v9038_v52, %v9060_v59  ;;  %v9079_v31 = vpop.f32.mrf.mxu0 }
 0x1d9   : > { %v6914_v44 = vpop.f32.mrf.mxu1  ;;  %v4066_v38 = vrot.slane %v4065_v45, 1  ;;  %v9077_v48 = vmul.f32 %v8877_v13, %v9048_v53  ;;  %v3444_v10 = vpack.c.bf16 %v9052_v27, %v3372_v15  ;;  %v4511_v63 = vsub.f32 %v8929_v39, %v4074_v40 }
 0x1da   : > { %7067 = vmatprep.mubr.bf16.mxu1 %v3446_v50  ;;  %11175 = vst [vmem:[#allocation115_spill] sm:$0xff] %v9065_v37  ;;  %v9067_v42 = vsub.f32 %v6914_v44, %v2339_v28  ;;  %v4512_v50 = vsub.f32 %v8963_v16, %v4074_v40  ;;  %v4084_v44 = vmax.f32 %v4082_v49, %v4083_v35  ;;  %v4076_v55 = vrot.slane %v4075_v20, 4  ;;  %v9091_v30 = vpop.f32.mrf.mxu0 }
 0x1db   : > { %v1599_v46 = vpop.f32.mrf.mxu1  ;;  %7068 = vmatmul.mubr.bf16.vlgmr.msra.gmra.mxu1 %v3447_v33  ;;  %v4067_v33 = vmax.f32 %v4065_v45, %v4066_v38  ;;  %7059 = vmatprep.mubr.bf16.mxu0 %v3442_v47  ;;  %v3382_v13 = vmul.f32 %v8935_v2, %v9062_v0  ;;  %v3380_v26 = vmul.f32 %v8916_v56, %v9065_v37  ;;  %v4641_v15 = vmul.f32 1.442695, %v4511_v63 }
 0x1dc   : > { %11176 = vst [vmem:[#allocation116_spill] sm:$0xff] %v9067_v42  ;;  %v9082_v28 = vsub.f32 %v1599_v46, %v8953_v11  ;;  %v3383_v11 = vmul.f32 %v8935_v2, %v9067_v42  ;;  %v4643_v39 = vmul.f32 1.442695, %v4512_v50  ;;  %v4085_v45 = vrot.slane %v4084_v44, 2  ;;  %v9097_v47 = vpop.f32.mrf.mxu0 }
 0x1dd   : > { %v6917_v9 = vpop.f32.mrf.mxu1  ;;  %v4509_v16 = vsub.f32 %v8943_v36, %v4067_v33  ;;  %v4510_v35 = vsub.f32 %v8992_v22, %v4067_v33  ;;  %v4077_v49 = vmax.f32 %v4075_v20, %v4076_v55  ;;  %7216 = vpow2.f32 %v4641_v15 }
 0x1de   : > { %11177 = vst [vmem:[#allocation117_spill] sm:$0xff] %v9082_v28  ;;  %v3381_v46 = vmul.f32 %v8916_v56, %v9082_v28  ;;  %v9102_v40 = vsub.f32 %v6917_v9, %v8967_v43  ;;  %v4096_v63 = vmax.f32 %v9079_v31, %v9097_v47  ;;  %7218 = vpow2.f32 %v4643_v39  ;;  %v9106_v50 = vpop.f32.mrf.mxu0 }
 0x1df   : > { %v1612_v27 = vpop.f32.mrf.mxu1  ;;  %v4637_v2 = vmul.f32 1.442695, %v4509_v16  ;;  %v4639_v42 = vmul.f32 1.442695, %v4510_v35  ;;  %v4086_v36 = vmax.f32 %v4084_v44, %v4085_v45  ;;  %v4078_v22 = vrot.slane %v4077_v49, 2 }
 0x1e0   : > { %11178 = vst [vmem:[#allocation118_spill] sm:$0xff] %v9102_v40  ;;  %v9109_v55 = vsub.f32 %v1612_v27, %v8976_v62  ;;  %v4097_v56 = vrot.slane %v4096_v63, 4  ;;  %v4089_v9 = vmax.f32 %v9091_v30, %v9106_v50  ;;  %v9116_v39 = vpop.f32.mrf.mxu0  ;;  %v11181_v44 = vpack.c.bf16 %v9010_v51, %v9016_v61 }
 0x1e1   : > { %v6918_v38 = vpop.f32.mrf.mxu1  ;;  %7220 = vpow2.f32 %v4637_v2  ;;  %v4087_v15 = vrot.slane %v4086_v36, 1  ;;  %v4079_v16 = vmax.f32 %v4077_v49, %v4078_v22  ;;  %v3448_v27 = vpack.c.bf16 %v3381_v46, %v3380_v26 }
 0x1e2   : > { %11179 = vst [vmem:[#allocation119_spill] sm:$0xff] %v9109_v55  ;;  %v9114_v33 = vsub.f32 %v6918_v38, %v8967_v43  ;;  %7222 = vpow2.f32 %v4639_v42  ;;  %7060 = vmatmul.mubr.bf16.gmra.mxu0 %v11181_v44  ;;  %v3449_v35 = vpack.c.bf16 %v3383_v11, %v3382_v13  ;;  %v4098_v45 = vmax.f32 %v4096_v63, %v4097_v56  ;;  %v9128_v22 = vpop.f32.mrf.mxu0 }
 0x1e3   : > { %v1615_v20 = vpop.f32.mrf.mxu1  ;;  %v4090_v2 = vrot.slane %v4089_v9, 4  ;;  %7063 = vmatprep.mubr.bf16.mxu0 %v3444_v10  ;;  %v3445_v43 = vpack.c.bf16 %v9077_v48, %v9073_v17  ;;  %v4088_v42 = vmax.f32 %v4086_v36, %v4087_v15  ;;  %v4080_v38 = vrot.slane %v4079_v16, 1  ;;  %7071 = vmatprep.mubr.bf16.mxu1 %v3448_v27 }
 0x1e4   : > { %11180 = vst [vmem:[#allocation120_spill] sm:$0xff] %v9114_v33  ;;  %v9122_v0 = vsub.f32 %v1615_v20, %v8976_v62  ;;  %v3386_v49 = vmul.f32 %v8956_v18, %v9102_v40  ;;  %v4099_v51 = vrot.slane %v4098_v45, 2  ;;  %v3384_v13 = vmul.f32 %v8947_v23, %v9109_v55  ;;  %7072 = vmatmul.mubr.bf16.gmra.mxu1 %v3449_v35  ;;  %v9138_v11 = vpop.f32.mrf.mxu0 }
 0x1e5   : > { %v4091_v61 = vmax.f32 %v4089_v9, %v4090_v2  ;;  %v4515_v10 = vsub.f32 %v9023_v24, %v4088_v42  ;;  %v4516_v17 = vsub.f32 %v9054_v25, %v4088_v42  ;;  %v4081_v48 = vmax.f32 %v4079_v16, %v4080_v38 }
 0x1e6   : > { %11182 = vst [vmem:[#allocation121_spill] sm:$0xff] %v9122_v0  ;;  %v3385_v62 = vmul.f32 %v8947_v23, %v9122_v0  ;;  %v3387_v26 = vmul.f32 %v8956_v18, %v9114_v33  ;;  %v4100_v46 = vmax.f32 %v4098_v45, %v4099_v51  ;;  %v4110_v36 = vmax.f32 %v9116_v39, %v9138_v11  ;;  %v9144_v15 = vpop.f32.mrf.mxu0 }
 0x1e7   : > { %v4092_v63 = vrot.slane %v4091_v61, 2  ;;  %v4649_v56 = vmul.f32 1.442695, %v4515_v10  ;;  %v4651_v9 = vmul.f32 1.442695, %v4516_v17  ;;  %v4513_v23 = vsub.f32 %v9038_v52, %v4081_v48 }
 0x1e8   : > { %v3450_v20 = vpack.c.bf16 %v3385_v62, %v3384_v13  ;;  %v4514_v24 = vsub.f32 %v9060_v59, %v4081_v48  ;;  %v4101_v25 = vrot.slane %v4100_v46, 1  ;;  %v4111_v44 = vrot.slane %v4110_v36, 4  ;;  %v9148_v2 = vpop.f32.mrf.mxu0 }
 0x1e9   : > { %v4093_v16 = vmax.f32 %v4091_v61, %v4092_v63  ;;  %v4103_v18 = vmax.f32 %v9128_v22, %v9144_v15  ;;  %7224 = vpow2.f32 %v4649_v56  ;;  %v4645_v27 = vmul.f32 1.442695, %v4513_v23 }
 0x1ea   : > { %7075 = vmatprep.mubr.bf16.mxu1 %v3450_v20  ;;  %v4647_v35 = vmul.f32 1.442695, %v4514_v24  ;;  %v3451_v45 = vpack.c.bf16 %v3387_v26, %v3386_v49  ;;  %7064 = vmatmul.mubr.bf16.gmra.mxu0 %v3445_v43  ;;  %7226 = vpow2.f32 %v4651_v9  ;;  %v4102_v52 = vmax.f32 %v4100_v46, %v4101_v25  ;;  %v9150_v38 = vpop.eup %7216  ;;  %v9152_v61 = vpop.f32.mrf.mxu0 }
 0x1eb   : > { %v4094_v42 = vrot.slane %v4093_v16, 1  ;;  %v4112_v59 = vmax.f32 %v4110_v36, %v4111_v44  ;;  %7228 = vpow2.f32 %v4645_v27  ;;  %v4104_v51 = vrot.slane %v4103_v18, 4  ;;  %v9154_v13 = vpop.eup %7218 }
 0x1ec   : > { %7230 = vpow2.f32 %v4647_v35  ;;  %v4519_v62 = vsub.f32 %v9079_v31, %v4102_v52  ;;  %v4520_v49 = vsub.f32 %v9097_v47, %v4102_v52  ;;  %7076 = vmatmul.mubr.bf16.gmra.mxu1 %v3451_v45  ;;  %v4900_v17 = vadd.f32 %v9154_v13, %v9150_v38  ;;  %v9162_v46 = vpop.f32.mrf.mxu0 }
 0x1ed   : > { %v4095_v10 = vmax.f32 %v4093_v16, %v4094_v42  ;;  %v4113_v48 = vrot.slane %v4112_v59, 2  ;;  %v4105_v26 = vmax.f32 %v4103_v18, %v4104_v51  ;;  %v4124_v18 = vmax.f32 %v9148_v2, %v9162_v46 }
 0x1ee   : > { %v9158_v43 = vpop.eup %7220  ;;  %v4657_v36 = vmul.f32 1.442695, %v4519_v62  ;;  %v4659_v20 = vmul.f32 1.442695, %v4520_v49  ;;  %v4901_v47 = vrot.slane %v4900_v17, 4  ;;  %v9170_v25 = vpop.f32.mrf.mxu0 }
 0x1ef   : > { %v9164_v63 = vpop.eup %7222  ;;  %v4517_v56 = vsub.f32 %v9091_v30, %v4095_v10  ;;  %v4518_v31 = vsub.f32 %v9106_v50, %v4095_v10  ;;  %v4114_v23 = vmax.f32 %v4112_v59, %v4113_v48  ;;  %v4106_v24 = vrot.slane %v4105_v26, 2 }
 0x1f0   : > { %v4893_v9 = vadd.f32 %v9164_v63, %v9158_v43  ;;  %7232 = vpow2.f32 %v4657_v36  ;;  %v4902_v27 = vadd.f32 %v4901_v47, %v4900_v17  ;;  %v9174_v45 = vpop.f32.mrf.mxu0  ;;  %v4125_v52 = vrot.slane %v4124_v18, 4 }
 0x1f1   : > { %v4653_v16 = vmul.f32 1.442695, %v4517_v56  ;;  %v4655_v44 = vmul.f32 1.442695, %v4518_v31  ;;  %7234 = vpow2.f32 %v4659_v20  ;;  %v4115_v30 = vrot.slane %v4114_v23, 1 }
 0x1f2   : > { %v4894_v35 = vrot.slane %v4893_v9, 4  ;;  %v4107_v50 = vmax.f32 %v4105_v26, %v4106_v24  ;;  %v4117_v42 = vmax.f32 %v9152_v61, %v9170_v25  ;;  %v4903_v59 = vrot.slane %v4902_v27, 2  ;;  %v9178_v49 = vpop.f32.mrf.mxu0 }
 0x1f3   : > { %7236 = vpow2.f32 %v4653_v16  ;;  %v4116_v62 = vmax.f32 %v4114_v23, %v4115_v30  ;;  %v4126_v48 = vmax.f32 %v4124_v18, %v4125_v52 }
 0x1f4   : > { %v4895_v51 = vadd.f32 %v4894_v35, %v4893_v9  ;;  %7238 = vpow2.f32 %v4655_v44  ;;  %v4108_v10 = vrot.slane %v4107_v50, 1  ;;  %v4118_v17 = vrot.slane %v4117_v42, 4  ;;  %v9182_v26 = vpop.f32.mrf.mxu0 }
 0x1f5   : > { %v4904_v36 = vadd.f32 %v4903_v59, %v4902_v27  ;;  %v4523_v56 = vsub.f32 %v9116_v39, %v4116_v62  ;;  %v4524_v31 = vsub.f32 %v9138_v11, %v4116_v62  ;;  %v4127_v16 = vrot.slane %v4126_v48, 2 }
 0x1f6   : > { %v4896_v20 = vrot.slane %v4895_v51, 2  ;;  %v9184_v47 = vpop.eup %7224  ;;  %v4109_v24 = vmax.f32 %v4107_v50, %v4108_v10  ;;  %v4119_v9 = vmax.f32 %v4117_v42, %v4118_v17  ;;  %v4138_v23 = vmax.f32 %v9174_v45, %v9182_v26  ;;  %v9190_v52 = vpop.f32.mrf.mxu0 }
 0x1f7   : > { %v9188_v44 = vpop.eup %7226  ;;  %v4905_v18 = vrot.slane %v4904_v36, 1  ;;  %v4665_v27 = vmul.f32 1.442695, %v4523_v56  ;;  %v4667_v30 = vmul.f32 1.442695, %v4524_v31  ;;  %v4128_v59 = vmax.f32 %v4126_v48, %v4127_v16 }
 0x1f8   : > { %v4897_v35 = vadd.f32 %v4896_v20, %v4895_v51  ;;  %v9192_v39 = vpop.eup %7228  ;;  %v4914_v11 = vadd.f32 %v9188_v44, %v9184_v47  ;;  %v4521_v50 = vsub.f32 %v9128_v22, %v4109_v24  ;;  %v4522_v42 = vsub.f32 %v9144_v15, %v4109_v24  ;;  %v9200_v20 = vpop.f32.mrf.mxu0 }
 0x1f9   : > { %v9198_v62 = vpop.eup %7230  ;;  %v4906_v10 = vadd.f32 %v4905_v18, %v4904_v36  ;;  %7240 = vpow2.f32 %v4665_v27  ;;  %v4120_v51 = vrot.slane %v4119_v9, 2  ;;  %v4129_v0 = vrot.slane %v4128_v59, 1 }
 0x1fa   : > { %v4898_v17 = vrot.slane %v4897_v35, 1  ;;  %v4915_v56 = vrot.slane %v4914_v11, 4  ;;  %v4907_v31 = vadd.f32 %v9198_v62, %v9192_v39  ;;  %7242 = vpow2.f32 %v4667_v30  ;;  %v9204_v15 = vpop.f32.mrf.mxu0 }
 0x1fb   : > { %v4661_v33 = vmul.f32 1.442695, %v4521_v50  ;;  %7244 = vrcp.f32 %v4906_v10  ;;  %v4663_v22 = vmul.f32 1.442695, %v4522_v42  ;;  %v4121_v36 = vmax.f32 %v4119_v9, %v4120_v51 }
 0x1fc   : > { %v4899_v40 = vadd.f32 %v4898_v17, %v4897_v35  ;;  %v4916_v48 = vadd.f32 %v4915_v56, %v4914_v11  ;;  %v4908_v24 = vrot.slane %v4907_v31, 4  ;;  %v4130_v18 = vmax.f32 %v4128_v59, %v4129_v0  ;;  %v9210_v30 = vpop.f32.mrf.mxu0 }
 0x1fd   : > { %7246 = vpow2.f32 %v4661_v33  ;;  %v9206_v16 = vpop.eup %7232  ;;  %v4139_v27 = vrot.slane %v4138_v23, 4  ;;  %v4131_v55 = vmax.f32 %v9178_v49, %v9190_v52  ;;  %v4122_v10 = vrot.slane %v4121_v36, 1 }
 0x1fe   : > { %7248 = vrcp.f32 %v4899_v40  ;;  %v9212_v50 = vpop.eup %7234  ;;  %v4917_v35 = vrot.slane %v4916_v48, 2  ;;  %v4909_v42 = vadd.f32 %v4908_v24, %v4907_v31  ;;  %v4527_v40 = vsub.f32 %v9148_v2, %v4130_v18  ;;  %v9220_v59 = vpop.f32.mrf.mxu0 }
 0x1ff   : > { %7250 = vpow2.f32 %v4663_v22  ;;  %v4928_v33 = vadd.f32 %v9212_v50, %v9206_v16  ;;  %v4528_v0 = vsub.f32 %v9162_v46, %v4130_v18  ;;  %v4140_v9 = vmax.f32 %v4138_v23, %v4139_v27 }
 0x200   : > { %v9214_v11 = vpop.eup %7236  ;;  %v4918_v51 = vadd.f32 %v4917_v35, %v4916_v48  ;;  %v4910_v56 = vrot.slane %v4909_v42, 2  ;;  %v4123_v37 = vmax.f32 %v4121_v36, %v4122_v10  ;;  %v4132_v31 = vrot.slane %v4131_v55, 4  ;;  %v9226_v41 = vpop.f32.mrf.mxu0 }
 0x201   : > { %v9222_v17 = vpop.eup %7238  ;;  %v4929_v22 = vrot.slane %v4928_v33, 4  ;;  %v4673_v21 = vmul.f32 1.442695, %v4527_v40  ;;  %v4675_v32 = vmul.f32 1.442695, %v4528_v0  ;;  %v4141_v48 = vrot.slane %v4140_v9, 2 }
 0x202   : > { %v4921_v24 = vadd.f32 %v9222_v17, %v9214_v11  ;;  %v4919_v2 = vrot.slane %v4918_v51, 1  ;;  %v4911_v53 = vadd.f32 %v4910_v56, %v4909_v42  ;;  %v4525_v46 = vsub.f32 %v9152_v61, %v4123_v37  ;;  %v9230_v36 = vpop.f32.mrf.mxu0 }
 0x203   : > { %v4526_v23 = vsub.f32 %v9170_v25, %v4123_v37  ;;  %v4930_v18 = vadd.f32 %v4929_v22, %v4928_v33  ;;  %7252 = vpow2.f32 %v4673_v21  ;;  %v4142_v34 = vmax.f32 %v4140_v9, %v4141_v48 }
 0x204   : > { %v4922_v27 = vrot.slane %v4921_v24, 4  ;;  %v4920_v35 = vadd.f32 %v4919_v2, %v4918_v51  ;;  %v4912_v10 = vrot.slane %v4911_v53, 1  ;;  %7254 = vpow2.f32 %v4675_v32  ;;  %v9232_v19 = vpop.f32.mrf.mxu0 }
 0x205   : > { %v4669_v14 = vmul.f32 1.442695, %v4525_v46  ;;  %v4931_v40 = vrot.slane %v4930_v18, 2  ;;  %v4671_v28 = vmul.f32 1.442695, %v4526_v23  ;;  %v4133_v61 = vmax.f32 %v4131_v55, %v4132_v31 }
 0x206   : > { %v4923_v0 = vadd.f32 %v4922_v27, %v4921_v24  ;;  %v9234_v42 = vpop.eup %7240  ;;  %7256 = vrcp.f32 %v4920_v35  ;;  %v4913_v37 = vadd.f32 %v4912_v10, %v4911_v53  ;;  %v4152_v21 = vmax.f32 %v9200_v20, %v9210_v30  ;;  %v9240_v56 = vpop.f32.mrf.mxu0 }
 0x207   : > { %v9238_v25 = vpop.eup %7242  ;;  %v4932_v33 = vadd.f32 %v4931_v40, %v4930_v18  ;;  %7258 = vpow2.f32 %v4669_v14  ;;  %v4143_v32 = vrot.slane %v4142_v34, 1  ;;  %v4134_v24 = vrot.slane %v4133_v61, 2 }
 0x208   : > { %v4924_v51 = vrot.slane %v4923_v0, 2  ;;  %v7245_v22 = vpop.eup %7244  ;;  %7260 = vrcp.f32 %v4913_v37  ;;  %v4942_v9 = vadd.f32 %v9238_v25, %v9234_v42  ;;  %v4153_v2 = vrot.slane %v4152_v21, 4  ;;  %v9248_v18 = vpop.f32.mrf.mxu0 }
 0x209   : > { %v5407_v55 = vmul.f32 %v7245_v22, %v9150_v38  ;;  %v5408_v31 = vmul.f32 %v7245_v22, %v9154_v13  ;;  %v4933_v46 = vrot.slane %v4932_v33, 1  ;;  %7262 = vpow2.f32 %v4671_v28 }
 0x20a   : > { %v9244_v53 = vpop.eup %7246  ;;  %v4925_v23 = vadd.f32 %v4924_v51, %v4923_v0  ;;  %v4943_v27 = vrot.slane %v4942_v9, 4  ;;  %v4144_v48 = vmax.f32 %v4142_v34, %v4143_v32  ;;  %v4135_v35 = vmax.f32 %v4133_v61, %v4134_v24  ;;  %v9256_v13 = vpop.f32.mrf.mxu0 }
 0x20b   : > { %v7249_v14 = vpop.eup %7248  ;;  %v5535_v40 = vmul.f32 %v5407_v55, %v8012_v5  ;;  %v5536_v37 = vmul.f32 %v5408_v31, %v8014_v6  ;;  %v4934_v0 = vadd.f32 %v4933_v46, %v4932_v33 }
 0x20c   : > { %v9250_v10 = vpop.eup %7250  ;;  %v5405_v7 = vmul.f32 %v7249_v14, %v9158_v43  ;;  %v5406_v38 = vmul.f32 %v7249_v14, %v9164_v63  ;;  %v4926_v51 = vrot.slane %v4925_v23, 1  ;;  %v4944_v22 = vadd.f32 %v4943_v27, %v4942_v9  ;;  %v9265_v32 = vpop.f32.mrf.mxu0 }
 0x20d   : > { %v4935_v28 = vadd.f32 %v9250_v10, %v9244_v53  ;;  %v9260_v34 = vadd.f32 %v5536_v37, %v5535_v40  ;;  %v4531_v6 = vsub.f32 %v9174_v45, %v4144_v48  ;;  %7264 = vrcp.f32 %v4934_v0 }
 0x20e   : > { %v5533_v61 = vmul.f32 %v5405_v7, %v8008_v3  ;;  %v5534_v5 = vmul.f32 %v5406_v38, %v8010_v4  ;;  %v4927_v43 = vadd.f32 %v4926_v51, %v4925_v23  ;;  %v4945_v63 = vrot.slane %v4944_v22, 2  ;;  %v9271_v46 = vpop.f32.mrf.mxu0 }
 0x20f   : > { %v4936_v24 = vrot.slane %v4935_v28, 4  ;;  %v4532_v55 = vsub.f32 %v9182_v26, %v4144_v48  ;;  %v4681_v31 = vmul.f32 1.442695, %v4531_v6  ;;  %v4136_v45 = vrot.slane %v4135_v35, 1 }
 0x210   : > { %v9268_v9 = vadd.f32 %v5534_v5, %v5533_v61  ;;  %v9273_v3 = vpop.eup %7252  ;;  %7266 = vrcp.f32 %v4927_v43  ;;  %v4946_v4 = vadd.f32 %v4945_v63, %v4944_v22  ;;  %v4154_v27 = vmax.f32 %v4152_v21, %v4153_v2  ;;  %v9279_v37 = vpop.f32.mrf.mxu0 }
 0x211   : > { %v4937_v7 = vadd.f32 %v4936_v24, %v4935_v28  ;;  %v9275_v14 = vpop.eup %7254  ;;  %7268 = vpow2.f32 %v4681_v31  ;;  %v4683_v23 = vmul.f32 1.442695, %v4532_v55  ;;  %v4145_v40 = vmax.f32 %v9204_v15, %v9220_v59 }
 0x212   : > { %v4947_v26 = vrot.slane %v4946_v4, 1  ;;  %v4956_v38 = vadd.f32 %v9275_v14, %v9273_v3  ;;  %v4137_v0 = vmax.f32 %v4135_v35, %v4136_v45  ;;  %v4155_v22 = vrot.slane %v4154_v27, 2  ;;  %v9291_v63 = vpop.f32.mrf.mxu0 }
 0x213   : > { %v4938_v48 = vrot.slane %v4937_v7, 2  ;;  %v7257_v51 = vpop.eup %7256  ;;  %7270 = vpow2.f32 %v4683_v23  ;;  %v4146_v28 = vrot.slane %v4145_v40, 4  ;;  %v4166_v61 = vmax.f32 %v9226_v41, %v9232_v19 }
 0x214   : > { %v9285_v5 = vpop.eup %7258  ;;  %v9288_v21 = vmul.f32 %v7257_v51, %v9184_v47  ;;  %v5412_v2 = vmul.f32 %v7257_v51, %v9188_v44  ;;  %v4948_v6 = vadd.f32 %v4947_v26, %v4946_v4  ;;  %v4957_v35 = vrot.slane %v4956_v38, 4 }
 0x215   : > { %v4939_v43 = vadd.f32 %v4938_v48, %v4937_v7  ;;  %v7261_v24 = vpop.eup %7260  ;;  %v4529_v55 = vsub.f32 %v9178_v49, %v4137_v0  ;;  %v4530_v31 = vsub.f32 %v9190_v52, %v4137_v0  ;;  %v4156_v45 = vmax.f32 %v4154_v27, %v4155_v22  ;;  %v9306_v27 = vpop.f32.mrf.mxu0 }
 0x216   : > { %v9296_v23 = vmul.f32 %v5412_v2, %v8075_v8  ;;  %v5409_v33 = vmul.f32 %v7261_v24, %v9192_v39  ;;  %v5410_v47 = vmul.f32 %v7261_v24, %v9198_v62  ;;  %7272 = vrcp.f32 %v4948_v6  ;;  %v9300_v44 = vpop.eup %7262 }
 0x217   : > { %v4940_v4 = vrot.slane %v4939_v43, 1  ;;  %v4958_v7 = vadd.f32 %v4957_v35, %v4956_v38  ;;  %v4677_v26 = vmul.f32 1.442695, %v4529_v55  ;;  %v4679_v48 = vmul.f32 1.442695, %v4530_v31 }
 0x218   : > { %11183 = vst [vmem:[#allocation122_spill] sm:$0xff] %v9296_v23  ;;  %v5537_v51 = vmul.f32 %v5409_v33, %v8049_v54  ;;  %v5538_v49 = vmul.f32 %v5410_v47, %v8056_v58  ;;  %v4949_v52 = vadd.f32 %v9300_v44, %v9285_v5  ;;  %v4157_v8 = vrot.slane %v4156_v45, 1 }
 0x219   : > { %v4941_v39 = vadd.f32 %v4940_v4, %v4939_v43  ;;  %v4959_v0 = vrot.slane %v4958_v7, 2  ;;  %7274 = vpow2.f32 %v4677_v26  ;;  %v4147_v62 = vmax.f32 %v4145_v40, %v4146_v28  ;;  %v9318_v28 = vpop.f32.mrf.mxu0 }
 0x21a   : > { %v9308_v22 = vadd.f32 %v5538_v49, %v5537_v51  ;;  %v4950_v2 = vrot.slane %v4949_v52, 4  ;;  %7276 = vpow2.f32 %v4679_v48  ;;  %v4158_v38 = vmax.f32 %v4156_v45, %v4157_v8  ;;  %v9310_v6 = vpop.eup %7264 }
 0x21b   : > { %7278 = vrcp.f32 %v4941_v39  ;;  %v4960_v54 = vadd.f32 %v4959_v0, %v4958_v7  ;;  %v4148_v58 = vrot.slane %v4147_v62, 2  ;;  %v4167_v33 = vrot.slane %v4166_v61, 4 }
 0x21c   : > { %v9314_v24 = vmul.f32 %v9310_v6, %v9212_v50  ;;  %v4951_v35 = vadd.f32 %v4950_v2, %v4949_v52  ;;  %v4535_v43 = vsub.f32 %v9200_v20, %v4158_v38  ;;  %v4536_v40 = vsub.f32 %v9210_v30, %v4158_v38 }
 0x21d   : > { %v7267_v55 = vpop.eup %7266  ;;  %v4961_v31 = vrot.slane %v4960_v54, 1  ;;  %v4149_v45 = vmax.f32 %v4147_v62, %v4148_v58  ;;  %v4168_v47 = vmax.f32 %v4166_v61, %v4167_v33  ;;  %v4159_v4 = vmax.f32 %v9230_v36, %v9240_v56  ;;  %v9333_v62 = vpop.f32.mrf.mxu0 }
 0x21e   : > { %v9322_v7 = vpop.eup %7268  ;;  %v9325_v26 = vmul.f32 %v7267_v55, %v9214_v11  ;;  %v5414_v50 = vmul.f32 %v7267_v55, %v9222_v17  ;;  %v4952_v48 = vrot.slane %v4951_v35, 2  ;;  %v4689_v20 = vmul.f32 1.442695, %v4535_v43 }
 0x21f   : > { %v4962_v51 = vadd.f32 %v4961_v31, %v4960_v54  ;;  %v4691_v30 = vmul.f32 1.442695, %v4536_v40  ;;  %v4150_v49 = vrot.slane %v4149_v45, 1  ;;  %v4169_v52 = vrot.slane %v4168_v47, 2 }
 0x220   : > { %v9328_v8 = vpop.eup %7270  ;;  %v9331_v61 = vmul.f32 %v5414_v50, %v8053_v57  ;;  %v4953_v39 = vadd.f32 %v4952_v48, %v4951_v35  ;;  %7280 = vpow2.f32 %v4689_v20  ;;  %v4160_v0 = vrot.slane %v4159_v4, 4 }
 0x221   : > { %7282 = vrcp.f32 %v4962_v51  ;;  %v4970_v11 = vadd.f32 %v9328_v8, %v9322_v7  ;;  %v4151_v17 = vmax.f32 %v4149_v45, %v4150_v49  ;;  %v4170_v2 = vmax.f32 %v4168_v47, %v4169_v52  ;;  %v9345_v47 = vpop.f32.mrf.mxu0 }
 0x222   : > { %11184 = vst [vmem:[#allocation123_spill] sm:$0xff] %v9331_v61  ;;  %v4954_v38 = vrot.slane %v4953_v39, 1  ;;  %7284 = vpow2.f32 %v4691_v30  ;;  %v4161_v54 = vmax.f32 %v4159_v4, %v4160_v0  ;;  %v4180_v58 = vmax.f32 %v9248_v18, %v9265_v32 }
 0x223   : > { %v9339_v33 = vpop.eup %7272  ;;  %v4971_v57 = vrot.slane %v4970_v11, 4  ;;  %v4533_v35 = vsub.f32 %v9204_v15, %v4151_v17  ;;  %v4534_v43 = vsub.f32 %v9220_v59, %v4151_v17  ;;  %v4171_v40 = vrot.slane %v4170_v2, 1 }
 0x224   : > { %v4955_v55 = vadd.f32 %v4954_v38, %v4953_v39  ;;  %v4162_v31 = vrot.slane %v4161_v54, 2  ;;  %v4181_v50 = vrot.slane %v4180_v58, 4  ;;  %v4173_v45 = vmax.f32 %v9256_v13, %v9271_v46 }
 0x225   : > { %v4972_v4 = vadd.f32 %v4971_v57, %v4970_v11  ;;  %v4685_v48 = vmul.f32 1.442695, %v4533_v35  ;;  %v4687_v20 = vmul.f32 1.442695, %v4534_v43  ;;  %v4172_v51 = vmax.f32 %v4170_v2, %v4171_v40  ;;  %v9357_v35 = vpop.f32.mrf.mxu0 }
 0x226   : > { %v9347_v30 = vpop.eup %7274  ;;  %7286 = vrcp.f32 %v4955_v55  ;;  %v4163_v49 = vmax.f32 %v4161_v54, %v4162_v31  ;;  %v4182_v15 = vmax.f32 %v4180_v58, %v4181_v50  ;;  %v4174_v52 = vrot.slane %v4173_v45, 4 }
 0x227   : > { %v9349_v59 = vpop.eup %7276  ;;  %v4973_v39 = vrot.slane %v4972_v4, 2  ;;  %7288 = vpow2.f32 %v4685_v48  ;;  %v4539_v0 = vsub.f32 %v9226_v41, %v4172_v51  ;;  %v4540_v17 = vsub.f32 %v9232_v19, %v4172_v51 }
 0x228   : > { %v9353_v38 = vpop.eup %7278  ;;  %v4963_v11 = vadd.f32 %v9349_v59, %v9347_v30  ;;  %7290 = vpow2.f32 %v4687_v20  ;;  %v4164_v2 = vrot.slane %v4163_v49, 1  ;;  %v4183_v57 = vrot.slane %v4182_v15, 2 }
 0x229   : > { %v9361_v54 = vmul.f32 %v9353_v38, %v9250_v10  ;;  %v4974_v58 = vadd.f32 %v4973_v39, %v4972_v4  ;;  %v4697_v43 = vmul.f32 1.442695, %v4539_v0  ;;  %v4699_v40 = vmul.f32 1.442695, %v4540_v17  ;;  %v9369_v39 = vpop.f32.mrf.mxu0 }
 0x22a   : > { %v4964_v41 = vrot.slane %v4963_v11, 4  ;;  %v4165_v55 = vmax.f32 %v4163_v49, %v4164_v2  ;;  %v4184_v19 = vmax.f32 %v4182_v15, %v4183_v57  ;;  %v4175_v31 = vmax.f32 %v4173_v45, %v4174_v52 }
 0x22b   : > { %v4975_v50 = vrot.slane %v4974_v58, 1  ;;  %7292 = vpow2.f32 %v4697_v43  ;;  %v4194_v48 = vmax.f32 %v9279_v37, %v9306_v27  ;;  %v4187_v20 = vmax.f32 %v9291_v63, %v9318_v28 }
 0x22c   : > { %v4965_v51 = vadd.f32 %v4964_v41, %v4963_v11  ;;  %7294 = vpow2.f32 %v4699_v40  ;;  %v4537_v10 = vsub.f32 %v9230_v36, %v4165_v55  ;;  %v4538_v4 = vsub.f32 %v9240_v56, %v4165_v55  ;;  %v9379_v55 = vpop.f32.mrf.mxu0 }
 0x22d   : > { %v9371_v0 = vpop.eup %7280  ;;  %v4976_v49 = vadd.f32 %v4975_v50, %v4974_v58  ;;  %v4185_v45 = vrot.slane %v4184_v19, 1  ;;  %v4176_v15 = vrot.slane %v4175_v31, 2  ;;  %v4195_v52 = vrot.slane %v4194_v48, 4 }
 0x22e   : > { %v7283_v17 = vpop.eup %7282  ;;  %v4966_v2 = vrot.slane %v4965_v51, 2  ;;  %v4693_v57 = vmul.f32 1.442695, %v4537_v10  ;;  %v4695_v43 = vmul.f32 1.442695, %v4538_v4  ;;  %v4188_v60 = vrot.slane %v4187_v20, 4 }
 0x22f   : > { %v9373_v61 = vpop.eup %7284  ;;  %v5423_v11 = vmul.f32 %v7283_v17, %v9273_v3  ;;  %v5424_v36 = vmul.f32 %v7283_v17, %v9275_v14  ;;  %7296 = vrcp.f32 %v4976_v49  ;;  %v4186_v56 = vmax.f32 %v4184_v19, %v4185_v45 }
 0x230   : > { %v4967_v40 = vadd.f32 %v4966_v2, %v4965_v51  ;;  %v4984_v58 = vadd.f32 %v9373_v61, %v9371_v0  ;;  %7298 = vpow2.f32 %v4693_v57  ;;  %v4177_v41 = vmax.f32 %v4175_v31, %v4176_v15 }
 0x231   : > { %v5551_v50 = vmul.f32 %v5423_v11, %v8165_v12  ;;  %v5552_v10 = vmul.f32 %v5424_v36, %v8160_v29  ;;  %7300 = vpow2.f32 %v4695_v43  ;;  %v4543_v4 = vsub.f32 %v9248_v18, %v4186_v56  ;;  %v9389_v43 = vpop.f32.mrf.mxu0 }
 0x232   : > { %v4968_v3 = vrot.slane %v4967_v40, 1  ;;  %v4985_v23 = vrot.slane %v4984_v58, 4  ;;  %v4544_v14 = vsub.f32 %v9265_v32, %v4186_v56  ;;  %v4178_v19 = vrot.slane %v4177_v41, 1 }
 0x233   : > { %v7287_v51 = vpop.eup %7286  ;;  %v5724_v49 = vadd.f32 %v5552_v10, %v5551_v50  ;;  %v4705_v45 = vmul.f32 1.442695, %v4543_v4  ;;  %v4196_v17 = vmax.f32 %v4194_v48, %v4195_v52  ;;  %v4189_v2 = vmax.f32 %v4187_v20, %v4188_v60  ;;  %v11185_v48 = vld [vmem:[#allocation13_spill] sm:$0xff] }
 0x234   : > { %v9385_v31 = vpop.eup %7288  ;;  %v5421_v15 = vmul.f32 %v7287_v51, %v9285_v5  ;;  %v5422_v12 = vmul.f32 %v7287_v51, %v9300_v44  ;;  %v4969_v29 = vadd.f32 %v4968_v3, %v4967_v40  ;;  %v4986_v57 = vadd.f32 %v4985_v23, %v4984_v58 }
 0x235   : > { %v9391_v18 = vpop.eup %7290  ;;  %v5725_v11 = vrot.slane %v5724_v49, 4  ;;  %7302 = vpow2.f32 %v4705_v45  ;;  %v4707_v32 = vmul.f32 1.442695, %v4544_v14  ;;  %v4179_v36 = vmax.f32 %v4177_v41, %v4178_v19 }
 0x236   : > { %v5549_v56 = vmul.f32 %v5421_v15, %v8142_v1  ;;  %v5550_v60 = vmul.f32 %v5422_v12, %v11185_v48  ;;  %7304 = vrcp.f32 %v4969_v29  ;;  %v4987_v20 = vrot.slane %v4986_v57, 2  ;;  %v9403_v1 = vpop.f32.mrf.mxu0 }
 0x237   : > { %v9395_v52 = vadd.f32 %v5725_v11, %v5724_v49  ;;  %v4977_v5 = vadd.f32 %v9391_v18, %v9385_v31  ;;  %7306 = vpow2.f32 %v4707_v32  ;;  %v4541_v23 = vsub.f32 %v9256_v13, %v4179_v36 }
 0x238   : > { %v9400_v44 = vpop.eup %7292  ;;  %v5717_v40 = vadd.f32 %v5550_v60, %v5549_v56  ;;  %v4988_v58 = vadd.f32 %v4987_v20, %v4986_v57  ;;  %v4542_v41 = vsub.f32 %v9271_v46, %v4179_v36  ;;  %v4197_v50 = vrot.slane %v4196_v17, 2  ;;  %v9413_v36 = vpop.f32.mrf.mxu0 }
 0x239   : > { %11186 = vst [vmem:[#allocation13_spill] sm:$0xff] %v9395_v52  ;;  %v9405_v10 = vpop.eup %7294  ;;  %v4978_v4 = vrot.slane %v4977_v5, 4  ;;  %v4701_v3 = vmul.f32 1.442695, %v4541_v23  ;;  %v4190_v14 = vrot.slane %v4189_v2, 2  ;;  %v4208_v19 = vmax.f32 %v9333_v62, %v9357_v35 }
 0x23a   : > { %11187 = vst [vmem:[#allocation124_spill] sm:$0xff] %v9405_v10  ;;  %v5718_v51 = vrot.slane %v5717_v40, 4  ;;  %v4989_v49 = vrot.slane %v4988_v58, 1  ;;  %v4998_v13 = vadd.f32 %v9405_v10, %v9400_v44  ;;  %v4703_v45 = vmul.f32 1.442695, %v4542_v41  ;;  %v11189_v41 = vld [vmem:[#allocation18_spill] sm:$0xff] }
 0x23b   : > { %v4979_v15 = vadd.f32 %v4978_v4, %v4977_v5  ;;  %7308 = vpow2.f32 %v4701_v3  ;;  %v4198_v46 = vmax.f32 %v4196_v17, %v4197_v50  ;;  %v4191_v12 = vmax.f32 %v4189_v2, %v4190_v14  ;;  %v11190_v50 = vld [vmem:[#allocation16_spill] sm:$0xff] }
 0x23c   : > { %v7297_v29 = vpop.eup %7296  ;;  %v9411_v57 = vadd.f32 %v5718_v51, %v5717_v40  ;;  %v4990_v11 = vadd.f32 %v4989_v49, %v4988_v58  ;;  %v4999_v32 = vrot.slane %v4998_v13, 4  ;;  %7310 = vpow2.f32 %v4703_v45  ;;  %v9425_v45 = vpop.f32.mrf.mxu0 }
 0x23d   : > { %v9415_v56 = vpop.eup %7298  ;;  %v5427_v48 = vmul.f32 %v7297_v29, %v9322_v7  ;;  %v5428_v60 = vmul.f32 %v7297_v29, %v9328_v8  ;;  %v4980_v20 = vrot.slane %v4979_v15, 2  ;;  %v4199_v23 = vrot.slane %v4198_v46, 1 }
 0x23e   : > { %11188 = vst [vmem:[#allocation125_spill] sm:$0xff] %v9411_v57  ;;  %v9419_v5 = vpop.eup %7300  ;;  %7312 = vrcp.f32 %v4990_v11  ;;  %v5000_v17 = vadd.f32 %v4999_v32, %v4998_v13  ;;  %v4192_v2 = vrot.slane %v4191_v12, 1  ;;  %v4209_v40 = vrot.slane %v4208_v19, 4 }
 0x23f   : > { %v5555_v58 = vmul.f32 %v5427_v48, %v11189_v41  ;;  %v5556_v4 = vmul.f32 %v5428_v60, %v11190_v50  ;;  %v4981_v3 = vadd.f32 %v4980_v20, %v4979_v15  ;;  %v4991_v14 = vadd.f32 %v9419_v5, %v9415_v56 }
 0x240   : > { %v5001_v51 = vrot.slane %v5000_v17, 2  ;;  %v4200_v7 = vmax.f32 %v4198_v46, %v4199_v23  ;;  %v4193_v49 = vmax.f32 %v4191_v12, %v4192_v2  ;;  %v4210_v8 = vmax.f32 %v4208_v19, %v4209_v40 }
 0x241   : > { %v9427_v29 = vadd.f32 %v5556_v4, %v5555_v58  ;;  %v4982_v11 = vrot.slane %v4981_v3, 1  ;;  %v4992_v13 = vrot.slane %v4991_v14, 4  ;;  %v4201_v32 = vmax.f32 %v9345_v47, %v9369_v39 }
 0x242   : > { %v9431_v48 = vpop.eup %7302  ;;  %v5002_v60 = vadd.f32 %v5001_v51, %v5000_v17  ;;  %v4547_v15 = vsub.f32 %v9279_v37, %v4200_v7  ;;  %v4548_v20 = vsub.f32 %v9306_v27, %v4200_v7  ;;  %v4545_v46 = vsub.f32 %v9291_v63, %v4193_v49  ;;  %v9441_v51 = vpop.f32.mrf.mxu0 }
 0x243   : > { %11191 = vst [vmem:[#allocation18_spill] sm:$0xff] %v9427_v29  ;;  %v7305_v12 = vpop.eup %7304  ;;  %v4983_v19 = vadd.f32 %v4982_v11, %v4981_v3  ;;  %v4993_v23 = vadd.f32 %v4992_v13, %v4991_v14  ;;  %v4546_v2 = vsub.f32 %v9318_v28, %v4193_v49  ;;  %v4211_v40 = vrot.slane %v4210_v8, 2  ;;  %v11192_v3 = vld [vmem:[#allocation15_spill] sm:$0xff]  ;;  %v11193_v28 = vld [vmem:[#allocation14_spill] sm:$0xff] }
 0x244   : > { %v9437_v41 = vpop.eup %7306  ;;  %v5425_v58 = vmul.f32 %v7305_v12, %v9347_v30  ;;  %v5426_v50 = vmul.f32 %v7305_v12, %v9349_v59  ;;  %v5003_v4 = vrot.slane %v5002_v60, 1  ;;  %v4713_v17 = vmul.f32 1.442695, %v4547_v15  ;;  %v9451_v29 = vpop.f32.mrf.mxu0 }
 0x245   : > { %7314 = vrcp.f32 %v4983_v19  ;;  %v4994_v37 = vrot.slane %v4993_v23, 2  ;;  %v5012_v63 = vadd.f32 %v9437_v41, %v9431_v48  ;;  %v4715_v27 = vmul.f32 1.442695, %v4548_v20 }
 0x246   : > { %v5553_v14 = vmul.f32 %v5425_v58, %v11192_v3  ;;  %v5554_v7 = vmul.f32 %v5426_v50, %v11193_v28  ;;  %v5004_v49 = vadd.f32 %v5003_v4, %v5002_v60  ;;  %7316 = vpow2.f32 %v4713_v17  ;;  %v9468_v28 = vpop.f32.mrf.mxu0 }
 0x247   : > { %v4995_v11 = vadd.f32 %v4994_v37, %v4993_v23  ;;  %v5013_v30 = vrot.slane %v5012_v63, 4  ;;  %7318 = vpow2.f32 %v4715_v27  ;;  %v4709_v59 = vmul.f32 1.442695, %v4545_v46 }
 0x248   : > { %v9447_v13 = vpop.eup %7308  ;;  %v9449_v15 = vadd.f32 %v5554_v7, %v5553_v14  ;;  %7320 = vrcp.f32 %v5004_v49  ;;  %v4711_v12 = vmul.f32 1.442695, %v4546_v2  ;;  %v4212_v19 = vmax.f32 %v4210_v8, %v4211_v40 }
 0x249   : > { %v9453_v20 = vpop.eup %7310  ;;  %v4996_v58 = vrot.slane %v4995_v11, 1  ;;  %v5014_v3 = vadd.f32 %v5013_v30, %v5012_v63  ;;  %7322 = vpow2.f32 %v4709_v59  ;;  %v4202_v60 = vrot.slane %v4201_v32, 4 }
 0x24a   : > { %11194 = vst [vmem:[#allocation16_spill] sm:$0xff] %v9449_v15  ;;  %v5005_v46 = vadd.f32 %v9453_v20, %v9447_v13  ;;  %7324 = vpow2.f32 %v4711_v12  ;;  %v4213_v50 = vrot.slane %v4212_v19, 1  ;;  %v4222_v40 = vmax.f32 %v9379_v55, %v9403_v1 }
 0x24b   : > { %v9458_v4 = vpop.eup %7312  ;;  %v4997_v17 = vadd.f32 %v4996_v58, %v4995_v11  ;;  %v5015_v2 = vrot.slane %v5014_v3, 2  ;;  %v4203_v8 = vmax.f32 %v4201_v32, %v4202_v60  ;;  %v4215_v14 = vmax.f32 %v9389_v43, %v9413_v36 }
 0x24c   : > { %v9464_v37 = vmul.f32 %v9458_v4, %v9373_v61  ;;  %v5006_v63 = vrot.slane %v5005_v46, 4  ;;  %v4214_v27 = vmax.f32 %v4212_v19, %v4213_v50  ;;  %v4223_v11 = vrot.slane %v4222_v40, 4 }
 0x24d   : > { %7326 = vrcp.f32 %v4997_v17  ;;  %v5016_v7 = vadd.f32 %v5015_v2, %v5014_v3  ;;  %v4204_v49 = vrot.slane %v4203_v8, 2  ;;  %v4216_v12 = vrot.slane %v4215_v14, 4  ;;  %v9474_v17 = vpop.f32.mrf.mxu0 }
 0x24e   : > { %11195 = vst [vmem:[#allocation15_spill] sm:$0xff] %v9464_v37  ;;  %v5007_v30 = vadd.f32 %v5006_v63, %v5005_v46  ;;  %v4551_v32 = vsub.f32 %v9333_v62, %v4214_v27  ;;  %v4552_v59 = vsub.f32 %v9357_v35, %v4214_v27  ;;  %v4224_v60 = vmax.f32 %v4222_v40, %v4223_v11 }
 0x24f   : > { %v5017_v58 = vrot.slane %v5016_v7, 1  ;;  %v4205_v61 = vmax.f32 %v4203_v8, %v4204_v49  ;;  %v4236_v19 = vmax.f32 %v9425_v45, %v9451_v29  ;;  %v4217_v52 = vmax.f32 %v4215_v14, %v4216_v12  ;;  %v11197_v12 = vld [vmem:[#allocation17_spill] sm:$0xff] }
 0x250   : > { %v5008_v50 = vrot.slane %v5007_v30, 2  ;;  %v4721_v23 = vmul.f32 1.442695, %v4551_v32  ;;  %v4723_v15 = vmul.f32 1.442695, %v4552_v59  ;;  %v4225_v46 = vrot.slane %v4224_v60, 2 }
 0x251   : > { %v5018_v3 = vadd.f32 %v5017_v58, %v5016_v7  ;;  %v4206_v2 = vrot.slane %v4205_v61, 1  ;;  %v4237_v63 = vrot.slane %v4236_v19, 4  ;;  %v4218_v35 = vrot.slane %v4217_v52, 2 }
 0x252   : > { %v7315_v62 = vpop.eup %7314  ;;  %v5009_v57 = vadd.f32 %v5008_v50, %v5007_v30  ;;  %7328 = vpow2.f32 %v4721_v23  ;;  %v4229_v8 = vmax.f32 %v9441_v51, %v9468_v28  ;;  %v4226_v32 = vmax.f32 %v4224_v60, %v4225_v46  ;;  %v9486_v23 = vpop.f32.mrf.mxu0 }
 0x253   : > { %v9478_v40 = vpop.eup %7316  ;;  %v9481_v27 = vmul.f32 %v7315_v62, %v9385_v31  ;;  %v5430_v14 = vmul.f32 %v7315_v62, %v9391_v18  ;;  %7330 = vrcp.f32 %v5018_v3  ;;  %v4207_v49 = vmax.f32 %v4205_v61, %v4206_v2 }
 0x254   : > { %v9484_v7 = vpop.eup %7318  ;;  %v5010_v11 = vrot.slane %v5009_v57, 1  ;;  %7332 = vpow2.f32 %v4723_v15  ;;  %v4219_v30 = vmax.f32 %v4217_v52, %v4218_v35  ;;  %v4227_v15 = vrot.slane %v4226_v32, 1  ;;  %v9503_v37 = vpop.f32.mrf.mxu0 }
 0x255   : > { %11196 = vst [vmem:[#allocation14_spill] sm:$0xff] %v9481_v27  ;;  %v9488_v59 = vpop.eup %7320  ;;  %v9491_v58 = vmul.f32 %v5430_v14, %v11197_v12  ;;  %v5026_v31 = vadd.f32 %v9484_v7, %v9478_v40  ;;  %v4549_v18 = vsub.f32 %v9345_v47, %v4207_v49  ;;  %v4550_v61 = vsub.f32 %v9369_v39, %v4207_v49 }
 0x256   : > { %v9497_v50 = vpop.eup %7322  ;;  %v5011_v3 = vadd.f32 %v5010_v11, %v5009_v57  ;;  %v4220_v60 = vrot.slane %v4219_v30, 1  ;;  %v4238_v52 = vmax.f32 %v4236_v19, %v4237_v63  ;;  %v4230_v14 = vrot.slane %v4229_v8, 4 }
 0x257   : > { %11198 = vst [vmem:[#allocation17_spill] sm:$0xff] %v9491_v58  ;;  %v9499_v2 = vpop.eup %7324  ;;  %v5027_v46 = vrot.slane %v5026_v31, 4  ;;  %v4717_v62 = vmul.f32 1.442695, %v4549_v18  ;;  %v4719_v35 = vmul.f32 1.442695, %v4550_v61  ;;  %v4228_v58 = vmax.f32 %v4226_v32, %v4227_v15 }
 0x258   : > { %7334 = vrcp.f32 %v5011_v3  ;;  %v5019_v12 = vadd.f32 %v9499_v2, %v9497_v50  ;;  %v4221_v47 = vmax.f32 %v4219_v30, %v4220_v60  ;;  %v4239_v57 = vrot.slane %v4238_v52, 2 }
 0x259   : > { %v5028_v39 = vadd.f32 %v5027_v46, %v5026_v31  ;;  %7336 = vpow2.f32 %v4717_v62  ;;  %v4231_v49 = vmax.f32 %v4229_v8, %v4230_v14  ;;  %v4555_v63 = vsub.f32 %v9379_v55, %v4228_v58  ;;  %v9515_v46 = vpop.f32.mrf.mxu0 }
 0x25a   : > { %v9505_v11 = vpop.eup %7326  ;;  %v5020_v19 = vrot.slane %v5019_v12, 4  ;;  %7338 = vpow2.f32 %v4719_v35  ;;  %v4556_v18 = vsub.f32 %v9403_v1, %v4228_v58  ;;  %v4553_v30 = vsub.f32 %v9389_v43, %v4221_v47 }
 0x25b   : > { %v9511_v61 = vmul.f32 %v9505_v11, %v9419_v5  ;;  %v5029_v32 = vrot.slane %v5028_v39, 2  ;;  %v4554_v31 = vsub.f32 %v9413_v36, %v4221_v47  ;;  %v4729_v15 = vmul.f32 1.442695, %v4555_v63 }
 0x25c   : > { %v5021_v3 = vadd.f32 %v5020_v19, %v5019_v12  ;;  %v4731_v8 = vmul.f32 1.442695, %v4556_v18  ;;  %v4240_v60 = vmax.f32 %v4238_v52, %v4239_v57  ;;  %v4725_v35 = vmul.f32 1.442695, %v4553_v30  ;;  %v9527_v30 = vpop.f32.mrf.mxu0 }
 0x25d   : > { %11199 = vst [vmem:[#allocation126_spill] sm:$0xff] %v9511_v61  ;;  %v5030_v62 = vadd.f32 %v5029_v32, %v5028_v39  ;;  %v4727_v55 = vmul.f32 1.442695, %v4554_v31  ;;  %v4232_v14 = vrot.slane %v4231_v49, 2  ;;  %7340 = vpow2.f32 %v4729_v15 }
 0x25e   : > { %v5022_v1 = vrot.slane %v5021_v3, 2  ;;  %v4241_v58 = vrot.slane %v4240_v60, 1  ;;  %v4250_v5 = vmax.f32 %v9474_v17, %v9503_v37  ;;  %7342 = vpow2.f32 %v4731_v8  ;;  %v11201_v8 = vld [vmem:[#allocation30_spill] sm:$0xff]  ;;  %v9537_v10 = vpop.f32.mrf.mxu0 }
 0x25f   : > { %v9519_v61 = vpop.eup %7328  ;;  %v5031_v43 = vrot.slane %v5030_v62, 1  ;;  %v4233_v36 = vmax.f32 %v4231_v49, %v4232_v14  ;;  %v4243_v52 = vmax.f32 %v9486_v23, %v9515_v46  ;;  %7344 = vpow2.f32 %v4725_v35  ;;  %v11202_v35 = vld [vmem:[#allocation28_spill] sm:$0xff] }
 0x260   : > { %11200 = vst [vmem:[#allocation127_spill] sm:$0xff] %v9519_v61  ;;  %v7331_v12 = vpop.eup %7330  ;;  %v5023_v47 = vadd.f32 %v5022_v1, %v5021_v3  ;;  %v4242_v39 = vmax.f32 %v4240_v60, %v4241_v58  ;;  %v4251_v57 = vrot.slane %v4250_v5, 4  ;;  %7346 = vpow2.f32 %v4727_v55 }
 0x261   : > { %v9523_v19 = vpop.eup %7332  ;;  %v5439_v63 = vmul.f32 %v7331_v12, %v9431_v48  ;;  %v5440_v18 = vmul.f32 %v7331_v12, %v9437_v41  ;;  %v5032_v32 = vadd.f32 %v5031_v43, %v5030_v62  ;;  %v4234_v48 = vrot.slane %v4233_v36, 1 }
 0x262   : > { %v5024_v31 = vrot.slane %v5023_v47, 1  ;;  %v5040_v49 = vadd.f32 %v9523_v19, %v9519_v61  ;;  %v4559_v15 = vsub.f32 %v9425_v45, %v4242_v39  ;;  %v4560_v3 = vsub.f32 %v9451_v29, %v4242_v39 }
 0x263   : > { %v5567_v60 = vmul.f32 %v5439_v63, %v11201_v8  ;;  %v5568_v14 = vmul.f32 %v5440_v18, %v11202_v35  ;;  %7348 = vrcp.f32 %v5032_v32  ;;  %v4235_v12 = vmax.f32 %v4233_v36, %v4234_v48  ;;  %v11204_v36 = vld [vmem:[#allocation27_spill] sm:$0xff] }
 0x264   : > { %v5025_v1 = vadd.f32 %v5024_v31, %v5023_v47  ;;  %v5041_v41 = vrot.slane %v5040_v49, 4  ;;  %v4737_v62 = vmul.f32 1.442695, %v4559_v15  ;;  %v4739_v55 = vmul.f32 1.442695, %v4560_v3  ;;  %v11205_v31 = vld [vmem:[#allocation25_spill] sm:$0xff] }
 0x265   : > { %v7335_v58 = vpop.eup %7334  ;;  %v9535_v43 = vadd.f32 %v5568_v14, %v5567_v60  ;;  %v4252_v27 = vmax.f32 %v4250_v5, %v4251_v57  ;;  %v4244_v61 = vrot.slane %v4243_v52, 4  ;;  %v4557_v32 = vsub.f32 %v9441_v51, %v4235_v12  ;;  %v9552_v60 = vpop.f32.mrf.mxu0 }
 0x266   : > { %v9539_v45 = vpop.eup %7336  ;;  %v5437_v29 = vmul.f32 %v7335_v58, %v9447_v13  ;;  %v5438_v39 = vmul.f32 %v7335_v58, %v9453_v20  ;;  %7350 = vrcp.f32 %v5025_v1  ;;  %v5042_v63 = vadd.f32 %v5041_v41, %v5040_v49 }
 0x267   : > { %11203 = vst [vmem:[#allocation30_spill] sm:$0xff] %v9535_v43  ;;  %v9543_v47 = vpop.eup %7338  ;;  %7352 = vpow2.f32 %v4737_v62  ;;  %v4558_v5 = vsub.f32 %v9468_v28, %v4235_v12  ;;  %v4733_v20 = vmul.f32 1.442695, %v4557_v32  ;;  %v4253_v8 = vrot.slane %v4252_v27, 2  ;;  %v11231_v43 = vld [vmem:[#allocation50_spill] sm:$0xff] }
 0x268   : > { %v5565_v57 = vmul.f32 %v5437_v29, %v11204_v36  ;;  %v5566_v15 = vmul.f32 %v5438_v39, %v11205_v31  ;;  %v5043_v3 = vrot.slane %v5042_v63, 2  ;;  %v5033_v13 = vadd.f32 %v9543_v47, %v9539_v45 }
 0x269   : > { %7354 = vpow2.f32 %v4739_v55  ;;  %v4735_v49 = vmul.f32 1.442695, %v4558_v5  ;;  %v4245_v48 = vmax.f32 %v4243_v52, %v4244_v61  ;;  %v4254_v1 = vmax.f32 %v4252_v27, %v4253_v8  ;;  %v11207_v5 = vld [vmem:[#allocation5_spill] sm:$0xff]  ;;  %v11209_v8 = vld [vmem:[#allocation7_spill] sm:$0xff] }
 0x26a   : > { %v9554_v35 = vadd.f32 %v5566_v15, %v5565_v57  ;;  %v5044_v14 = vadd.f32 %v5043_v3, %v5042_v63  ;;  %v5034_v51 = vrot.slane %v5033_v13, 4  ;;  %v9556_v28 = vpop.eup %7340  ;;  %7356 = vpow2.f32 %v4733_v20  ;;  %v11208_v20 = vld [vmem:[#allocation6_spill] sm:$0xff] }
 0x26b   : > { %v5415_v41 = vmul.f32 %v9310_v6, %v9206_v16  ;;  %v5417_v62 = vmul.f32 %v9353_v38, %v9244_v53  ;;  %v9562_v55 = vpop.eup %7342  ;;  %7358 = vpow2.f32 %v4735_v49  ;;  %v4255_v52 = vrot.slane %v4254_v1, 1  ;;  %v9573_v6 = vpop.f32.mrf.mxu0 }
 0x26c   : > { %11206 = vst [vmem:[#allocation28_spill] sm:$0xff] %v9554_v35  ;;  %v5045_v12 = vrot.slane %v5044_v14, 1  ;;  %v5035_v29 = vadd.f32 %v5034_v51, %v5033_v13  ;;  %v9565_v39 = vpop.eup %7344  ;;  %v5054_v61 = vadd.f32 %v9562_v55, %v9556_v28  ;;  %v4246_v27 = vrot.slane %v4245_v48, 2  ;;  %v11232_v35 = vld [vmem:[#allocation48_spill] sm:$0xff] }
 0x26d   : > { %v9571_v16 = vmul.f32 %v9339_v33, %v9234_v42  ;;  %v9575_v53 = vpop.eup %7346  ;;  %v5420_v32 = vmul.f32 %v9339_v33, %v9238_v25  ;;  %v9581_v36 = vmul.f32 %v9288_v21, %v11207_v5  ;;  %v4256_v15 = vmax.f32 %v4254_v1, %v4255_v52 }
 0x26e   : > { %v5046_v38 = vadd.f32 %v5045_v12, %v5044_v14  ;;  %v5036_v63 = vrot.slane %v5035_v29, 2  ;;  %v5055_v57 = vrot.slane %v5054_v61, 4  ;;  %v5047_v31 = vadd.f32 %v9575_v53, %v9565_v39  ;;  %v9596_v12 = vpop.f32.mrf.mxu0 }
 0x26f   : > { %v4247_v42 = vmax.f32 %v4245_v48, %v4246_v27  ;;  %v9587_v49 = vmul.f32 %v9325_v26, %v11208_v20  ;;  %v9590_v14 = vmul.f32 %v5415_v41, %v11209_v8  ;;  %v4563_v1 = vsub.f32 %v9474_v17, %v4256_v15  ;;  %v11210_v27 = vld [vmem:[#allocation32_spill] sm:$0xff] }
 0x270   : > { %v7349_v3 = vpop.eup %7348  ;;  %7360 = vrcp.f32 %v5046_v38  ;;  %v5037_v13 = vadd.f32 %v5036_v63, %v5035_v29  ;;  %v5056_v33 = vadd.f32 %v5055_v57, %v5054_v61  ;;  %v5048_v51 = vrot.slane %v5047_v31, 4  ;;  %v9609_v18 = vpop.f32.mrf.mxu0 }
 0x271   : > { %v9593_v25 = vmul.f32 %v7349_v3, %v9478_v40  ;;  %v5444_v21 = vmul.f32 %v7349_v3, %v9484_v7  ;;  %v4564_v29 = vsub.f32 %v9503_v37, %v4256_v15  ;;  %v4248_v52 = vrot.slane %v4247_v42, 1  ;;  %v11212_v40 = vld [vmem:[#allocation8_spill] sm:$0xff] }
 0x272   : > { %v5038_v48 = vrot.slane %v5037_v13, 1  ;;  %v5057_v41 = vrot.slane %v5056_v33, 2  ;;  %v5049_v63 = vadd.f32 %v5048_v51, %v5047_v31  ;;  %v5544_v5 = vmul.f32 %v9314_v24, %v11212_v40  ;;  %v11213_v31 = vld [vmem:[#allocation31_spill] sm:$0xff]  ;;  %v11215_v40 = vld [vmem:[#allocation10_spill] sm:$0xff] }
 0x273   : > { %v7351_v26 = vpop.eup %7350  ;;  %v9601_v38 = vmul.f32 %v5444_v21, %v11210_v27  ;;  %v4745_v17 = vmul.f32 1.442695, %v4563_v1  ;;  %v4747_v15 = vmul.f32 1.442695, %v4564_v29  ;;  %v4249_v8 = vmax.f32 %v4247_v42, %v4248_v52  ;;  %v11214_v27 = vld [vmem:[#allocation29_spill] sm:$0xff] }
 0x274   : > { %v9605_v7 = vpop.eup %7352  ;;  %v5441_v61 = vmul.f32 %v7351_v26, %v9497_v50  ;;  %v5442_v57 = vmul.f32 %v7351_v26, %v9499_v2  ;;  %v5039_v3 = vadd.f32 %v5038_v48, %v5037_v13  ;;  %v5058_v20 = vadd.f32 %v5057_v41, %v5056_v33  ;;  %v11217_v41 = vld [vmem:[#allocation9_spill] sm:$0xff] }
 0x275   : > { %11211 = vst [vmem:[#allocation27_spill] sm:$0xff] %v9601_v38  ;;  %v5050_v37 = vrot.slane %v5049_v63, 2  ;;  %v9616_v58 = vmul.f32 %v5417_v62, %v11215_v40  ;;  %v4561_v48 = vsub.f32 %v9486_v23, %v4249_v8  ;;  %v4562_v1 = vsub.f32 %v9515_v46, %v4249_v8 }
 0x276   : > { %v9611_v21 = vpop.eup %7354  ;;  %v5569_v51 = vmul.f32 %v5441_v61, %v11213_v31  ;;  %v5570_v24 = vmul.f32 %v5442_v57, %v11214_v27  ;;  %7362 = vrcp.f32 %v5039_v3  ;;  %v5059_v50 = vrot.slane %v5058_v20, 1  ;;  %v9632_v61 = vpop.f32.mrf.mxu0 }
 0x277   : > { %v5051_v2 = vadd.f32 %v5050_v37, %v5049_v63  ;;  %v5068_v13 = vadd.f32 %v9611_v21, %v9605_v7  ;;  %7364 = vpow2.f32 %v4745_v17  ;;  %v9620_v33 = vpop.eup %7356  ;;  %v9630_v63 = vmul.f32 %v9361_v54, %v11217_v41  ;;  %v11218_v37 = vld [vmem:[#allocation11_spill] sm:$0xff] }
 0x278   : > { %v9622_v42 = vadd.f32 %v5570_v24, %v5569_v51  ;;  %7366 = vpow2.f32 %v4747_v15  ;;  %v9626_v29 = vpop.eup %7358  ;;  %v5060_v52 = vadd.f32 %v5059_v50, %v5058_v20  ;;  %v4741_v3 = vmul.f32 1.442695, %v4561_v48  ;;  %v11219_v15 = vld [vmem:[#allocation12_spill] sm:$0xff]  ;;  %v11221_v50 = vld [vmem:[#allocation122_spill] sm:$0xff] }
 0x279   : > { %v5052_v62 = vrot.slane %v5051_v2, 1  ;;  %v5069_v26 = vrot.slane %v5068_v13, 4  ;;  %v5061_v57 = vadd.f32 %v9626_v29, %v9620_v33  ;;  %v4743_v17 = vmul.f32 1.442695, %v4562_v1 }
 0x27a   : > { %11216 = vst [vmem:[#allocation25_spill] sm:$0xff] %v9622_v42  ;;  %v9638_v23 = vmul.f32 %v9571_v16, %v11218_v37  ;;  %7368 = vrcp.f32 %v5060_v52  ;;  %v5548_v8 = vmul.f32 %v5420_v32, %v11219_v15  ;;  %v5662_v54 = vrot.slane %v9268_v9, 4  ;;  %v11222_v37 = vld [vmem:[#allocation123_spill] sm:$0xff] }
 0x27b   : > { %v5053_v46 = vadd.f32 %v5052_v62, %v5051_v2  ;;  %v5070_v20 = vadd.f32 %v5069_v26, %v5068_v13  ;;  %v5062_v31 = vrot.slane %v5061_v57, 4  ;;  %7370 = vpow2.f32 %v4741_v3  ;;  %v9650_v13 = vpop.f32.mrf.mxu0 }
 0x27c   : > { %v11220_v51 = vrot.slane %v9260_v34, 4  ;;  %v5676_v16 = vrot.slane %v9308_v22, 4  ;;  %v5682_v2 = vadd.f32 %v11221_v50, %v9581_v36  ;;  %v5663_v1 = vadd.f32 %v5662_v54, %v9268_v9 }
 0x27d   : > { %v9645_v24 = vpop.eup %7360  ;;  %7372 = vrcp.f32 %v5053_v46  ;;  %v5071_v40 = vrot.slane %v5070_v20, 2  ;;  %v5063_v48 = vadd.f32 %v5062_v31, %v5061_v57  ;;  %v5689_v36 = vadd.f32 %v11222_v37, %v9587_v49  ;;  %v9661_v57 = vpop.f32.mrf.mxu0 }
 0x27e   : > { %v5670_v27 = vadd.f32 %v11220_v51, %v9260_v34  ;;  %v9654_v32 = vmul.f32 %v9645_v24, %v9523_v19  ;;  %7374 = vpow2.f32 %v4743_v17  ;;  %v5677_v62 = vadd.f32 %v5676_v16, %v9308_v22 }
 0x27f   : > { %v5072_v34 = vadd.f32 %v5071_v40, %v5070_v20  ;;  %v5683_v26 = vrot.slane %v5682_v2, 4  ;;  %v5064_v41 = vrot.slane %v5063_v48, 2  ;;  %v5664_v3 = vrot.slane %v5663_v1, 2 }
 0x280   : > { %v5671_v52 = vrot.slane %v5670_v27, 2  ;;  %v5696_v46 = vadd.f32 %v5544_v5, %v9590_v14  ;;  %v5678_v19 = vrot.slane %v5677_v62, 2  ;;  %v5690_v20 = vrot.slane %v5689_v36, 4 }
 0x281   : > { %v5073_v15 = vrot.slane %v5072_v34, 1  ;;  %v5684_v50 = vadd.f32 %v5683_v26, %v5682_v2  ;;  %v5065_v17 = vadd.f32 %v5064_v41, %v5063_v48  ;;  %v5665_v9 = vadd.f32 %v5664_v3, %v5663_v1  ;;  %v9671_v26 = vpop.f32.mrf.mxu0 }
 0x282   : > { %v5672_v51 = vadd.f32 %v5671_v52, %v5670_v27  ;;  %v5697_v31 = vrot.slane %v5696_v46, 4  ;;  %v5679_v16 = vadd.f32 %v5678_v19, %v5677_v62 }
 0x283   : > { %v7363_v54 = vpop.eup %7362  ;;  %v5074_v22 = vadd.f32 %v5073_v15, %v5072_v34  ;;  %v5685_v38 = vrot.slane %v5684_v50, 2  ;;  %v5066_v5 = vrot.slane %v5065_v17, 1  ;;  %v5666_v27 = vrot.slane %v5665_v9, 1  ;;  %v11223_v34 = vld [vmem:[#allocation33_spill] sm:$0xff] }
 0x284   : > { %v5673_v40 = vrot.slane %v5672_v51, 1  ;;  %v9663_v42 = vpop.eup %7364  ;;  %v9666_v49 = vmul.f32 %v7363_v54, %v9539_v45  ;;  %v5446_v14 = vmul.f32 %v7363_v54, %v9543_v47  ;;  %v5680_v1 = vrot.slane %v5679_v16, 1 }
 0x285   : > { %v9669_v2 = vpop.eup %7366  ;;  %7376 = vrcp.f32 %v5074_v22  ;;  %v5686_v52 = vadd.f32 %v5685_v38, %v5684_v50  ;;  %v5067_v41 = vadd.f32 %v5066_v5, %v5065_v17  ;;  %v5667_v3 = vadd.f32 %v5666_v27, %v5665_v9  ;;  %v9685_v9 = vpop.f32.mrf.mxu0 }
 0x286   : > { %v5674_v48 = vadd.f32 %v5673_v40, %v5672_v51  ;;  %v9674_v62 = vmul.f32 %v5446_v14, %v11223_v34  ;;  %v5082_v45 = vadd.f32 %v9669_v2, %v9663_v42  ;;  %v5681_v37 = vadd.f32 %v5680_v1, %v5679_v16 }
 0x287   : > { %v5687_v47 = vrot.slane %v5686_v52, 1  ;;  %v5691_v15 = vadd.f32 %v5690_v20, %v5689_v36  ;;  %v5698_v19 = vadd.f32 %v5697_v31, %v5696_v46  ;;  %v9678_v54 = vpop.eup %7368  ;;  %7378 = vrcp.f32 %v5067_v41 }
 0x288   : > { %11224 = vst [vmem:[#allocation5_spill] sm:$0xff] %v9674_v62  ;;  %v5083_v51 = vrot.slane %v5082_v45, 4  ;;  %v5703_v38 = vadd.f32 %v9630_v63, %v9616_v58  ;;  %v5710_v50 = vadd.f32 %v5548_v8, %v9638_v23  ;;  %v9683_v22 = vpop.eup %7370  ;;  %v6174_v31 = vsel %vm6173_vm1, %v5674_v48, %v5667_v3  ;;  %v9699_v48 = vpop.f32.mrf.mxu0 }
 0x289   : > { %v5688_v17 = vadd.f32 %v5687_v47, %v5686_v52  ;;  %v5692_v40 = vrot.slane %v5691_v15, 2  ;;  %v5699_v14 = vrot.slane %v5698_v19, 2 }
 0x28a   : > { %v9687_v16 = vpop.eup %7372  ;;  %v5084_v36 = vadd.f32 %v5083_v51, %v5082_v45  ;;  %v5704_v46 = vrot.slane %v5703_v38, 4  ;;  %v5711_v20 = vrot.slane %v5710_v50, 4  ;;  %v6176_v45 = vsel %vm6175_vm2, %v5681_v37, %v6174_v31  ;;  %v9703_v37 = vpop.f32.mrf.mxu0 }
 0x28b   : > { %v9690_v5 = vpop.eup %7374  ;;  %v9694_v58 = vmul.f32 %v9687_v16, %v9575_v53  ;;  %v5693_v63 = vadd.f32 %v5692_v40, %v5691_v15  ;;  %v5700_v23 = vadd.f32 %v5699_v14, %v5698_v19  ;;  %v6178_v40 = vsel %vm6177_vm3, %v5688_v17, %v6176_v45 }
 0x28c   : > { %v5085_v8 = vrot.slane %v5084_v36, 2  ;;  %v5075_v27 = vadd.f32 %v9690_v5, %v9683_v22  ;;  %v5705_v1 = vadd.f32 %v5704_v46, %v5703_v38  ;;  %v5712_v52 = vadd.f32 %v5711_v20, %v5710_v50 }
 0x28d   : > { %v5694_v34 = vrot.slane %v5693_v63, 1  ;;  %v5701_v41 = vrot.slane %v5700_v23, 1 }
 0x28e   : > { %v5086_v3 = vadd.f32 %v5085_v8, %v5084_v36  ;;  %v5076_v47 = vrot.slane %v5075_v27, 4  ;;  %v5706_v53 = vrot.slane %v5705_v1, 2  ;;  %v5713_v51 = vrot.slane %v5712_v52, 2 }
 0x28f   : > { %v5695_v15 = vadd.f32 %v5694_v34, %v5693_v63  ;;  %v5702_v19 = vadd.f32 %v5701_v41, %v5700_v23 }
 0x290   : > { %v5087_v14 = vrot.slane %v5086_v3, 1  ;;  %v5077_v62 = vadd.f32 %v5076_v47, %v5075_v27  ;;  %v5707_v38 = vadd.f32 %v5706_v53, %v5705_v1  ;;  %v5714_v50 = vadd.f32 %v5713_v51, %v5712_v52  ;;  %v11225_v47 = vld [vmem:[#allocation46_spill] sm:$0xff] }
 0x291   : > { %v6180_v46 = vsel %vm6179_vm4, %v5695_v15, %v6178_v40  ;;  %v4264_v1 = vmax.f32 %v9527_v30, %v9552_v60  ;;  %v9714_v40 = vpop.f32.mrf.mxu0 }
 0x292   : > { %v7377_v36 = vpop.eup %7376  ;;  %v5088_v20 = vadd.f32 %v5087_v14, %v5086_v3  ;;  %v5078_v31 = vrot.slane %v5077_v62, 2  ;;  %v5708_v8 = vrot.slane %v5707_v38, 1  ;;  %v5715_v63 = vrot.slane %v5714_v50, 1  ;;  %v11226_v3 = vld [vmem:[#allocation44_spill] sm:$0xff] }
 0x293   : > { %v5455_v23 = vmul.f32 %v7377_v36, %v9605_v7  ;;  %v5456_v17 = vmul.f32 %v7377_v36, %v9611_v21  ;;  %v6182_v27 = vsel %vm6181_vm5, %v5702_v19, %v6180_v46  ;;  %v4265_v15 = vrot.slane %v4264_v1, 4 }
 0x294   : > { %7380 = vrcp.f32 %v5088_v20  ;;  %v5079_v52 = vadd.f32 %v5078_v31, %v5077_v62  ;;  %v5709_v34 = vadd.f32 %v5708_v8, %v5707_v38  ;;  %v5716_v41 = vadd.f32 %v5715_v63, %v5714_v50  ;;  %v7379_v45 = vpop.eup %7378  ;;  %v11227_v20 = vld [vmem:[#allocation43_spill] sm:$0xff]  ;;  %v11228_v8 = vld [vmem:[#allocation41_spill] sm:$0xff] }
 0x295   : > { %v5583_v53 = vmul.f32 %v5455_v23, %v11225_v47  ;;  %v5584_v51 = vmul.f32 %v5456_v17, %v11226_v3  ;;  %v4257_v7 = vmax.f32 %v9537_v10, %v9573_v6  ;;  %v5453_v21 = vmul.f32 %v7379_v45, %v9620_v33 }
 0x296   : > { %v5454_v19 = vmul.f32 %v7379_v45, %v9626_v29  ;;  %v5080_v14 = vrot.slane %v5079_v52, 1  ;;  %v6184_v62 = vsel %vm6183_vm6, %v5709_v34, %v6182_v27  ;;  %v4266_v46 = vmax.f32 %v4264_v1, %v4265_v15  ;;  %v9727_v34 = vpop.f32.mrf.mxu0 }
 0x297   : > { %v5836_v38 = vadd.f32 %v5584_v51, %v5583_v53  ;;  %v6186_v50 = vsel %vm6185_vm7, %v5716_v41, %v6184_v62  ;;  %v4258_v36 = vrot.slane %v4257_v7, 4  ;;  %v5581_v31 = vmul.f32 %v5453_v21, %v11227_v20 }
 0x298   : > { %v5582_v63 = vmul.f32 %v5454_v19, %v11228_v8  ;;  %v5081_v23 = vadd.f32 %v5080_v14, %v5079_v52  ;;  %6236 = vrot.lane.b32.xlu0 %v6186_v50, %s7671_s26  ;;  %v4278_v33 = vmax.f32 %v9596_v12, %v9632_v61  ;;  %v4267_v17 = vrot.slane %v4266_v46, 2  ;;  %v9739_v20 = vpop.f32.mrf.mxu0 }
 0x299   : > { %v5837_v29 = vrot.slane %v5836_v38, 4  ;;  %v4259_v45 = vmax.f32 %v4257_v7, %v4258_v36  ;;  %v4271_v27 = vmax.f32 %v9609_v18, %v9650_v13  ;;  %v4292_v52 = vmax.f32 %v9661_v57, %v9685_v9 }
 0x29a   : > { %v5829_v1 = vadd.f32 %v5582_v63, %v5581_v31  ;;  %7382 = vrcp.f32 %v5081_v23  ;;  %v4279_v41 = vrot.slane %v4278_v33, 4  ;;  %v4268_v53 = vmax.f32 %v4266_v46, %v4267_v17 }
 0x29b   : > { %v9731_v47 = vadd.f32 %v5837_v29, %v5836_v38  ;;  %v4260_v3 = vrot.slane %v4259_v45, 2  ;;  %v4272_v51 = vrot.slane %v4271_v27, 4  ;;  %v4293_v19 = vrot.slane %v4292_v52, 4 }
 0x29c   : > { %v5830_v15 = vrot.slane %v5829_v1, 4  ;;  %v4280_v21 = vmax.f32 %v4278_v33, %v4279_v41  ;;  %v4285_v7 = vmax.f32 %v9671_v26, %v9699_v48  ;;  %v4269_v14 = vrot.slane %v4268_v53, 1 }
 0x29d   : > { %11229 = vst [vmem:[#allocation6_spill] sm:$0xff] %v9731_v47  ;;  %v4261_v62 = vmax.f32 %v4259_v45, %v4260_v3  ;;  %v4273_v50 = vmax.f32 %v4271_v27, %v4272_v51  ;;  %v9737_v36 = vmax.f32 %v9703_v37, %v9727_v34  ;;  %v4294_v31 = vmax.f32 %v4292_v52, %v4293_v19 }
 0x29e   : > { %v9741_v38 = vadd.f32 %v5830_v15, %v5829_v1  ;;  %v4281_v46 = vrot.slane %v4280_v21, 2  ;;  %v4286_v8 = vrot.slane %v4285_v7, 4  ;;  %v4270_v63 = vmax.f32 %v4268_v53, %v4269_v14 }
 0x29f   : > { %v4262_v23 = vrot.slane %v4261_v62, 1  ;;  %v4274_v33 = vrot.slane %v4273_v50, 2  ;;  %v4307_v29 = vrot.slane %v9737_v36, 4  ;;  %v4295_v41 = vrot.slane %v4294_v31, 2 }
 0x2a0   : > { %11230 = vst [vmem:[#allocation7_spill] sm:$0xff] %v9741_v38  ;;  %v4282_v17 = vmax.f32 %v4280_v21, %v4281_v46  ;;  %v4287_v45 = vmax.f32 %v4285_v7, %v4286_v8  ;;  %v9746_v27 = vmax.f32 %v9714_v40, %v9739_v20  ;;  %v4567_v51 = vsub.f32 %v9527_v30, %v4270_v63  ;;  %v9754_v38 = vpop.f32.mrf.mxu0 }
 0x2a1   : > { %v7381_v3 = vpop.eup %7380  ;;  %v4568_v1 = vsub.f32 %v9552_v60, %v4270_v63  ;;  %v4263_v15 = vmax.f32 %v4261_v62, %v4262_v23  ;;  %v4275_v52 = vmax.f32 %v4273_v50, %v4274_v33  ;;  %v4296_v47 = vmax.f32 %v4294_v31, %v4295_v41 }
 0x2a2   : > { %v5459_v53 = vmul.f32 %v7381_v3, %v9663_v42  ;;  %v5460_v19 = vmul.f32 %v7381_v3, %v9669_v2  ;;  %v4283_v14 = vrot.slane %v4282_v17, 1  ;;  %v4753_v21 = vmul.f32 1.442695, %v4567_v51  ;;  %v9762_v3 = vpop.f32.mrf.mxu0 }
 0x2a3   : > { %v4755_v46 = vmul.f32 1.442695, %v4568_v1  ;;  %v4565_v7 = vsub.f32 %v9537_v10, %v4263_v15  ;;  %v4566_v8 = vsub.f32 %v9573_v6, %v4263_v15  ;;  %v4276_v50 = vrot.slane %v4275_v52, 1 }
 0x2a4   : > { %v5587_v30 = vmul.f32 %v5459_v53, %v11231_v43  ;;  %v5588_v60 = vmul.f32 %v5460_v19, %v11232_v35  ;;  %v4284_v62 = vmax.f32 %v4282_v17, %v4283_v14  ;;  %7384 = vpow2.f32 %v4753_v21  ;;  %v11234_v53 = vld [vmem:[#allocation47_spill] sm:$0xff] }
 0x2a5   : > { %v4749_v42 = vmul.f32 1.442695, %v4565_v7  ;;  %v4751_v63 = vmul.f32 1.442695, %v4566_v8  ;;  %v4297_v2 = vrot.slane %v4296_v47, 1  ;;  %7386 = vpow2.f32 %v4755_v46  ;;  %v9772_v46 = vpop.f32.mrf.mxu0 }
 0x2a6   : > { %v9758_v23 = vadd.f32 %v5588_v60, %v5587_v30  ;;  %v4571_v31 = vsub.f32 %v9596_v12, %v4284_v62  ;;  %v4572_v10 = vsub.f32 %v9632_v61, %v4284_v62  ;;  %v4277_v33 = vmax.f32 %v4275_v52, %v4276_v50  ;;  %v11235_v52 = vld [vmem:[#allocation45_spill] sm:$0xff] }
 0x2a7   : > { %v7383_v6 = vpop.eup %7382  ;;  %7388 = vpow2.f32 %v4749_v42  ;;  %v4298_v41 = vmax.f32 %v4296_v47, %v4297_v2  ;;  %v4288_v43 = vrot.slane %v4287_v45, 2  ;;  %v5431_v30 = vmul.f32 %v9458_v4, %v9371_v0 }
 0x2a8   : > { %11233 = vst [vmem:[#allocation32_spill] sm:$0xff] %v9758_v23  ;;  %v5457_v35 = vmul.f32 %v7383_v6, %v9683_v22  ;;  %v5458_v17 = vmul.f32 %v7383_v6, %v9690_v5  ;;  %7390 = vpow2.f32 %v4751_v63  ;;  %v4761_v51 = vmul.f32 1.442695, %v4571_v31  ;;  %v9788_v63 = vpop.f32.mrf.mxu0 }
 0x2a9   : > { %v4763_v1 = vmul.f32 1.442695, %v4572_v10  ;;  %v4569_v15 = vsub.f32 %v9609_v18, %v4277_v33  ;;  %v4570_v12 = vsub.f32 %v9650_v13, %v4277_v33  ;;  %v4575_v61 = vsub.f32 %v9661_v57, %v4298_v41  ;;  %v11240_v10 = vld [vmem:[#allocation22_spill] sm:$0xff]  ;;  %v11242_v33 = vld [vmem:[#allocation15_spill] sm:$0xff] }
 0x2aa   : > { %v5585_v19 = vmul.f32 %v5457_v35, %v11234_v53  ;;  %v5586_v47 = vmul.f32 %v5458_v17, %v11235_v52  ;;  %7392 = vpow2.f32 %v4761_v51  ;;  %v4576_v14 = vsub.f32 %v9685_v9, %v4298_v41 }
 0x2ab   : > { %7394 = vpow2.f32 %v4763_v1  ;;  %v4757_v22 = vmul.f32 1.442695, %v4569_v15  ;;  %v4759_v21 = vmul.f32 1.442695, %v4570_v12  ;;  %v4769_v5 = vmul.f32 1.442695, %v4575_v61 }
 0x2ac   : > { %v9774_v7 = vadd.f32 %v5586_v47, %v5585_v19  ;;  %v4771_v18 = vmul.f32 1.442695, %v4576_v14  ;;  %v4289_v8 = vmax.f32 %v4287_v45, %v4288_v43  ;;  %v4308_v13 = vmax.f32 %v9737_v36, %v4307_v29  ;;  %v11237_v29 = vld [vmem:[#allocation124_spill] sm:$0xff]  ;;  %v11244_v1 = vld [vmem:[#allocation21_spill] sm:$0xff]  ;;  %v11245_v15 = vld [vmem:[#allocation126_spill] sm:$0xff] }
 0x2ad   : > { %7396 = vpow2.f32 %v4757_v22  ;;  %v4300_v57 = vrot.slane %v9746_v27, 4  ;;  %v5433_v9 = vmul.f32 %v9505_v11, %v9415_v56  ;;  %v5435_v36 = vmul.f32 %v9488_v59, %v9400_v44  ;;  %v11238_v56 = vld [vmem:[#allocation19_spill] sm:$0xff]  ;;  %v11239_v11 = vld [vmem:[#allocation14_spill] sm:$0xff]  ;;  %v11247_v47 = vld [vmem:[#allocation24_spill] sm:$0xff] }
 0x2ae   : > { %11236 = vst [vmem:[#allocation8_spill] sm:$0xff] %v9774_v7  ;;  %7398 = vpow2.f32 %v4759_v21  ;;  %v4290_v62 = vrot.slane %v4289_v8, 1  ;;  %v4309_v50 = vrot.slane %v4308_v13, 2  ;;  %v5436_v45 = vmul.f32 %v9488_v59, %v11237_v29  ;;  %v11243_v44 = vld [vmem:[#allocation23_spill] sm:$0xff]  ;;  %v11246_v19 = vld [vmem:[#allocation26_spill] sm:$0xff]  ;;  %v11248_v22 = vld [vmem:[#allocation125_spill] sm:$0xff] }
 0x2af   : > { %7400 = vpow2.f32 %v4769_v5  ;;  %v4301_v42 = vmax.f32 %v9746_v27, %v4300_v57  ;;  %v9792_v2 = vmul.f32 %v11239_v11, %v11238_v56  ;;  %v9795_v6 = vmul.f32 %v5431_v30, %v11240_v10  ;;  %v11241_v27 = vld [vmem:[#allocation20_spill] sm:$0xff]  ;;  %v9821_v5 = vpop.f32.mrf.mxu0 }
 0x2b0   : > { %7402 = vpow2.f32 %v4771_v18  ;;  %v4291_v0 = vmax.f32 %v4289_v8, %v4290_v62  ;;  %v4310_v4 = vmax.f32 %v4308_v13, %v4309_v50  ;;  %v9799_v41 = vmul.f32 %v11242_v33, %v11241_v27  ;;  %v11249_v62 = vld [vmem:[#allocation13_spill] sm:$0xff] }
 0x2b1   : > { %v4302_v31 = vrot.slane %v4301_v42, 2  ;;  %v9802_v43 = vmul.f32 %v5433_v9, %v11243_v44  ;;  %v9804_v59 = vpop.eup %7384  ;;  %v9810_v12 = vmul.f32 %v11245_v15, %v11244_v1  ;;  %v9815_v52 = vmul.f32 %v5435_v36, %v11246_v19  ;;  %v9840_v27 = vpop.f32.mrf.mxu0 }
 0x2b2   : > { %v4573_v35 = vsub.f32 %v9671_v26, %v4291_v0  ;;  %v4574_v17 = vsub.f32 %v9699_v48, %v4291_v0  ;;  %v4311_v51 = vrot.slane %v4310_v4, 1  ;;  %v9812_v61 = vpop.eup %7386  ;;  %v9818_v14 = vmul.f32 %v5436_v45, %v11247_v47 }
 0x2b3   : > { %v4303_v53 = vmax.f32 %v4301_v42, %v4302_v31  ;;  %v5720_v21 = vrot.slane %v11248_v22, 2  ;;  %v5096_v48 = vadd.f32 %v9812_v61, %v9804_v59  ;;  %v5727_v50 = vrot.slane %v11249_v62, 2  ;;  %v11250_v42 = vld [vmem:[#allocation16_spill] sm:$0xff] }
 0x2b4   : > { %v9823_v26 = vpop.eup %7388  ;;  %v4765_v18 = vmul.f32 1.442695, %v4573_v35  ;;  %v4767_v8 = vmul.f32 1.442695, %v4574_v17  ;;  %v4312_v13 = vmax.f32 %v4310_v4, %v4311_v51  ;;  %v11251_v36 = vrot.slane %v11250_v42, 4 }
 0x2b5   : > { %v9827_v57 = vpop.eup %7390  ;;  %v4304_v30 = vrot.slane %v4303_v53, 1  ;;  %v5721_v9 = vadd.f32 %v5720_v21, %v11248_v22  ;;  %v5097_v45 = vrot.slane %v5096_v48, 4  ;;  %v5728_v51 = vadd.f32 %v5727_v50, %v11249_v62 }
 0x2b6   : > { %v5733_v29 = vadd.f32 %v11251_v36, %v11250_v42  ;;  %v5089_v0 = vadd.f32 %v9827_v57, %v9823_v26  ;;  %7404 = vpow2.f32 %v4765_v18  ;;  %v4579_v56 = vsub.f32 %v9703_v37, %v4312_v13 }
 0x2b7   : > { %v9837_v11 = vpop.eup %7392  ;;  %7406 = vpow2.f32 %v4767_v8  ;;  %v4580_v4 = vsub.f32 %v9727_v34, %v4312_v13  ;;  %v4305_v31 = vmax.f32 %v4303_v53, %v4304_v30  ;;  %v5722_v10 = vrot.slane %v5721_v9, 1  ;;  %v9855_v13 = vpop.f32.mrf.mxu0 }
 0x2b8   : > { %11252 = vst [vmem:[#allocation31_spill] sm:$0xff] %v9837_v11  ;;  %v9842_v33 = vpop.eup %7394  ;;  %v5098_v44 = vadd.f32 %v5097_v45, %v5096_v48  ;;  %v5090_v35 = vrot.slane %v5089_v0, 4  ;;  %v4777_v17 = vmul.f32 1.442695, %v4579_v56  ;;  %v5729_v50 = vrot.slane %v5728_v51, 1  ;;  %v11254_v45 = vld [vmem:[#allocation18_spill] sm:$0xff] }
 0x2b9   : > { %11253 = vst [vmem:[#allocation29_spill] sm:$0xff] %v9842_v33  ;;  %v5110_v1 = vadd.f32 %v9842_v33, %v9837_v11  ;;  %v4779_v37 = vmul.f32 1.442695, %v4580_v4  ;;  %v4577_v15 = vsub.f32 %v9714_v40, %v4305_v31  ;;  %v4578_v19 = vsub.f32 %v9739_v20, %v4305_v31 }
 0x2ba   : > { %v9849_v34 = vpop.eup %7396  ;;  %v5099_v53 = vrot.slane %v5098_v44, 2  ;;  %v5091_v47 = vadd.f32 %v5090_v35, %v5089_v0  ;;  %7408 = vpow2.f32 %v4777_v17  ;;  %v9851_v22 = vadd.f32 %v5722_v10, %v5721_v9 }
 0x2bb   : > { %v9853_v21 = vpop.eup %7398  ;;  %v5111_v48 = vrot.slane %v5110_v1, 4  ;;  %7410 = vpow2.f32 %v4779_v37  ;;  %v4773_v18 = vmul.f32 1.442695, %v4577_v15  ;;  %v4775_v8 = vmul.f32 1.442695, %v4578_v19  ;;  %v9868_v37 = vpop.f32.mrf.mxu0 }
 0x2bc   : > { %v9857_v30 = vpop.eup %7400  ;;  %v5100_v40 = vadd.f32 %v5099_v53, %v5098_v44  ;;  %v5092_v62 = vrot.slane %v5091_v47, 2  ;;  %v5103_v20 = vadd.f32 %v9853_v21, %v9849_v34  ;;  %v5734_v36 = vrot.slane %v5733_v29, 2 }
 0x2bd   : > { %v9861_v42 = vpop.eup %7402  ;;  %v5112_v9 = vadd.f32 %v5111_v48, %v5110_v1  ;;  %7412 = vpow2.f32 %v4773_v18  ;;  %v5739_v0 = vrot.slane %v11254_v45, 4  ;;  %v9866_v44 = vadd.f32 %v5729_v50, %v5728_v51 }
 0x2be   : > { %v5101_v56 = vrot.slane %v5100_v40, 1  ;;  %v5093_v4 = vadd.f32 %v5092_v62, %v5091_v47  ;;  %v5104_v31 = vrot.slane %v5103_v20, 4  ;;  %v5124_v10 = vadd.f32 %v9861_v42, %v9857_v30  ;;  %v11255_v47 = vld [vmem:[#allocation17_spill] sm:$0xff] }
 0x2bf   : > { %v5113_v35 = vrot.slane %v5112_v9, 2  ;;  %7414 = vpow2.f32 %v4775_v8  ;;  %v5735_v17 = vadd.f32 %v5734_v36, %v5733_v29  ;;  %v5740_v60 = vadd.f32 %v5739_v0, %v11254_v45 }
 0x2c0   : > { %v5102_v15 = vadd.f32 %v5101_v56, %v5100_v40  ;;  %v5094_v19 = vrot.slane %v5093_v4, 1  ;;  %v5105_v1 = vadd.f32 %v5104_v31, %v5103_v20  ;;  %v5125_v53 = vrot.slane %v5124_v10, 4  ;;  %v9875_v56 = vpop.f32.mrf.mxu0 }
 0x2c1   : > { %v5114_v48 = vadd.f32 %v5113_v35, %v5112_v9  ;;  %v5736_v18 = vrot.slane %v5735_v17, 1  ;;  %v5745_v62 = vadd.f32 %v11255_v47, %v9792_v2  ;;  %v5741_v36 = vrot.slane %v5740_v60, 2 }
 0x2c2   : > { %7416 = vrcp.f32 %v5102_v15  ;;  %v5095_v23 = vadd.f32 %v5094_v19, %v5093_v4  ;;  %v5106_v7 = vrot.slane %v5105_v1, 2  ;;  %v5126_v8 = vadd.f32 %v5125_v53, %v5124_v10 }
 0x2c3   : > { %v9873_v51 = vpop.eup %7404  ;;  %v5115_v29 = vrot.slane %v5114_v48, 1  ;;  %v5737_v50 = vadd.f32 %v5736_v18, %v5735_v17  ;;  %v5746_v40 = vrot.slane %v5745_v62, 4  ;;  %v5752_v2 = vadd.f32 %v9799_v41, %v9795_v6  ;;  %v9887_v18 = vpop.f32.mrf.mxu0 }
 0x2c4   : > { %v9877_v20 = vpop.eup %7406  ;;  %7418 = vrcp.f32 %v5095_v23  ;;  %v5107_v9 = vadd.f32 %v5106_v7, %v5105_v1  ;;  %v5127_v45 = vrot.slane %v5126_v8, 2  ;;  %v5742_v31 = vadd.f32 %v5741_v36, %v5740_v60 }
 0x2c5   : > { %v5116_v0 = vadd.f32 %v5115_v29, %v5114_v48  ;;  %v5117_v4 = vadd.f32 %v9877_v20, %v9873_v51  ;;  %v5747_v10 = vadd.f32 %v5746_v40, %v5745_v62  ;;  %v5753_v15 = vrot.slane %v5752_v2, 4 }
 0x2c6   : > { %v5108_v35 = vrot.slane %v5107_v9, 1  ;;  %v5128_v17 = vadd.f32 %v5127_v45, %v5126_v8  ;;  %v5759_v19 = vadd.f32 %v9810_v12, %v9802_v43  ;;  %v5743_v7 = vrot.slane %v5742_v31, 1 }
 0x2c7   : > { %v9885_v53 = vpop.eup %7408  ;;  %7420 = vrcp.f32 %v5116_v0  ;;  %v5118_v23 = vrot.slane %v5117_v4, 4  ;;  %v5748_v1 = vrot.slane %v5747_v10, 2  ;;  %v5754_v60 = vadd.f32 %v5753_v15, %v5752_v2  ;;  %v9897_v2 = vpop.f32.mrf.mxu0 }
 0x2c8   : > { %v9889_v6 = vpop.eup %7410  ;;  %v5109_v41 = vadd.f32 %v5108_v35, %v5107_v9  ;;  %v5129_v48 = vrot.slane %v5128_v17, 1  ;;  %v5760_v47 = vrot.slane %v5759_v19, 4  ;;  %v5744_v29 = vadd.f32 %v5743_v7, %v5742_v31 }
 0x2c9   : > { %v5119_v62 = vadd.f32 %v5118_v23, %v5117_v4  ;;  %v5138_v8 = vadd.f32 %v9889_v6, %v9885_v53  ;;  %v5749_v43 = vadd.f32 %v5748_v1, %v5747_v10  ;;  %v5755_v40 = vrot.slane %v5754_v60, 2 }
 0x2ca   : > { %v9893_v12 = vpop.eup %7412  ;;  %7422 = vrcp.f32 %v5109_v41  ;;  %v5130_v36 = vadd.f32 %v5129_v48, %v5128_v17  ;;  %v5761_v45 = vadd.f32 %v5760_v47, %v5759_v19  ;;  %v5766_v9 = vadd.f32 %v9818_v14, %v9815_v52 }
 0x2cb   : > { %v5120_v0 = vrot.slane %v5119_v62, 2  ;;  %v5139_v33 = vrot.slane %v5138_v8, 4  ;;  %v5750_v11 = vrot.slane %v5749_v43, 1  ;;  %v5756_v35 = vadd.f32 %v5755_v40, %v5754_v60  ;;  %v9910_v40 = vpop.f32.mrf.mxu0 }
 0x2cc   : > { %v9899_v4 = vpop.eup %7414  ;;  %7424 = vrcp.f32 %v5130_v36  ;;  %v5762_v31 = vrot.slane %v5761_v45, 2  ;;  %v6187_v10 = vsel %vm6173_vm1, %v9866_v44, %v9851_v22  ;;  %v5767_v52 = vrot.slane %v5766_v9, 4 }
 0x2cd   : > { %v5121_v17 = vadd.f32 %v5120_v0, %v5119_v62  ;;  %v5140_v15 = vadd.f32 %v5139_v33, %v5138_v8  ;;  %v5131_v19 = vadd.f32 %v9899_v4, %v9893_v12  ;;  %v5751_v23 = vadd.f32 %v5750_v11, %v5749_v43 }
 0x2ce   : > { %v5757_v7 = vrot.slane %v5756_v35, 1  ;;  %v5763_v1 = vadd.f32 %v5762_v31, %v5761_v45  ;;  %v6188_v14 = vsel %vm6175_vm2, %v5737_v50, %v6187_v10  ;;  %v5768_v44 = vadd.f32 %v5767_v52, %v5766_v9 }
 0x2cf   : > { %v9907_v41 = vpop.eup %7416  ;;  %v5122_v48 = vrot.slane %v5121_v17, 1  ;;  %v5141_v60 = vrot.slane %v5140_v15, 2  ;;  %v5132_v47 = vrot.slane %v5131_v19, 4  ;;  %v6189_v36 = vsel %vm6177_vm3, %v5744_v29, %v6188_v14 }
 0x2d0   : > { %v9914_v33 = vmul.f32 %v9907_v41, %v9812_v61  ;;  %v5758_v22 = vadd.f32 %v5757_v7, %v5756_v35  ;;  %v5764_v11 = vrot.slane %v5763_v1, 1  ;;  %v6190_v45 = vsel %vm6179_vm4, %v5751_v23, %v6189_v36  ;;  %v9922_v7 = vpop.f32.mrf.mxu0 }
 0x2d1   : > { %v7419_v62 = vpop.eup %7418  ;;  %v5123_v8 = vadd.f32 %v5122_v48, %v5121_v17  ;;  %v5142_v43 = vadd.f32 %v5141_v60, %v5140_v15  ;;  %v5133_v50 = vadd.f32 %v5132_v47, %v5131_v19  ;;  %v5769_v10 = vrot.slane %v5768_v44, 2  ;;  %v11258_v17 = vld [vmem:[#allocation49_spill] sm:$0xff] }
 0x2d2   : > { %11256 = vst [vmem:[#allocation10_spill] sm:$0xff] %v9914_v33  ;;  %v9918_v0 = vmul.f32 %v7419_v62, %v9823_v26  ;;  %v5462_v29 = vmul.f32 %v7419_v62, %v9827_v57  ;;  %v5765_v31 = vadd.f32 %v5764_v11, %v5763_v1  ;;  %v6191_v35 = vsel %vm6181_vm5, %v5758_v22, %v6190_v45 }
 0x2d3   : > { %7426 = vrcp.f32 %v5123_v8  ;;  %v5143_v14 = vrot.slane %v5142_v43, 1  ;;  %v5134_v61 = vrot.slane %v5133_v50, 2  ;;  %v5770_v19 = vadd.f32 %v5769_v10, %v5768_v44 }
 0x2d4   : > { %11257 = vst [vmem:[#allocation9_spill] sm:$0xff] %v9918_v0  ;;  %v9924_v9 = vpop.eup %7420  ;;  %v9927_v15 = vmul.f32 %v5462_v29, %v11258_v17  ;;  %v6192_v26 = vsel %vm6183_vm6, %v5765_v31, %v6191_v35  ;;  %v4320_v57 = vmax.f32 %v9754_v38, %v9772_v46  ;;  %v4313_v52 = vmax.f32 %v9762_v3, %v9788_v63 }
 0x2d5   : > { %v5144_v23 = vadd.f32 %v5143_v14, %v5142_v43  ;;  %v5135_v1 = vadd.f32 %v5134_v61, %v5133_v50  ;;  %v4334_v48 = vmax.f32 %v9821_v5, %v9855_v13  ;;  %v5771_v60 = vrot.slane %v5770_v19, 1  ;;  %v9942_v43 = vpop.f32.mrf.mxu0 }
 0x2d6   : > { %11259 = vst [vmem:[#allocation11_spill] sm:$0xff] %v9927_v15  ;;  %v4321_v47 = vrot.slane %v4320_v57, 4  ;;  %v4327_v36 = vmax.f32 %v9840_v27, %v9868_v37  ;;  %v4348_v22 = vmax.f32 %v9875_v56, %v9897_v2  ;;  %v4314_v62 = vrot.slane %v4313_v52, 4 }
 0x2d7   : > { %v9940_v11 = vpop.eup %7422  ;;  %7428 = vrcp.f32 %v5144_v23  ;;  %v5136_v44 = vrot.slane %v5135_v1, 1  ;;  %v4335_v8 = vrot.slane %v4334_v48, 4  ;;  %v5772_v45 = vadd.f32 %v5771_v60, %v5770_v19  ;;  %v11261_v60 = vld [vmem:[#allocation62_spill] sm:$0xff] }
 0x2d8   : > { %v9946_v50 = vmul.f32 %v9940_v11, %v9853_v21  ;;  %v4322_v29 = vmax.f32 %v4320_v57, %v4321_v47  ;;  %v4328_v31 = vrot.slane %v4327_v36, 4  ;;  %v4315_v61 = vmax.f32 %v4313_v52, %v4314_v62  ;;  %v9952_v57 = vpop.f32.mrf.mxu0  ;;  %v11262_v52 = vld [vmem:[#allocation60_spill] sm:$0xff] }
 0x2d9   : > { %v7425_v10 = vpop.eup %7424  ;;  %v5137_v14 = vadd.f32 %v5136_v44, %v5135_v1  ;;  %v4336_v35 = vmax.f32 %v4334_v48, %v4335_v8  ;;  %v4349_v17 = vrot.slane %v4348_v22, 4  ;;  %v6193_v33 = vsel %vm6185_vm7, %v5772_v45, %v6192_v26 }
 0x2da   : > { %11260 = vst [vmem:[#allocation12_spill] sm:$0xff] %v9946_v50  ;;  %v5471_v15 = vmul.f32 %v7425_v10, %v9857_v30  ;;  %v5472_v23 = vmul.f32 %v7425_v10, %v9861_v42  ;;  %v4323_v0 = vrot.slane %v4322_v29, 2  ;;  %6238 = vrot.lane.b32.xlu0 %v6193_v33, %s7671_s26  ;;  %v4316_v21 = vrot.slane %v4315_v61, 2 }
 0x2db   : > { %7430 = vrcp.f32 %v5137_v14  ;;  %v4337_v50 = vrot.slane %v4336_v35, 2  ;;  %v4329_v19 = vmax.f32 %v4327_v36, %v4328_v31  ;;  %v4350_v44 = vmax.f32 %v4348_v22, %v4349_v17 }
 0x2dc   : > { %v5599_v1 = vmul.f32 %v5471_v15, %v11261_v60  ;;  %v5600_v48 = vmul.f32 %v5472_v23, %v11262_v52  ;;  %v4324_v47 = vmax.f32 %v4322_v29, %v4323_v0  ;;  %v4317_v30 = vmax.f32 %v4315_v61, %v4316_v21  ;;  %v9965_v60 = vpop.f32.mrf.mxu0 }
 0x2dd   : > { %v4338_v62 = vmax.f32 %v4336_v35, %v4337_v50  ;;  %v4330_v42 = vrot.slane %v4329_v19, 2  ;;  %v4341_v26 = vmax.f32 %v9887_v18, %v9910_v40  ;;  %v4351_v33 = vrot.slane %v4350_v44, 2 }
 0x2de   : > { %v5892_v8 = vadd.f32 %v5600_v48, %v5599_v1  ;;  %v4325_v45 = vrot.slane %v4324_v47, 1  ;;  %v9960_v36 = vmax.f32 %v9922_v7, %v9952_v57  ;;  %v4318_v31 = vrot.slane %v4317_v30, 1 }
 0x2df   : > { %v4339_v10 = vrot.slane %v4338_v62, 1  ;;  %v4331_v15 = vmax.f32 %v4329_v19, %v4330_v42  ;;  %v4342_v14 = vrot.slane %v4341_v26, 4  ;;  %v4352_v29 = vmax.f32 %v4350_v44, %v4351_v33  ;;  %v11264_v42 = vld [vmem:[#allocation59_spill] sm:$0xff]  ;;  %v11265_v44 = vld [vmem:[#allocation57_spill] sm:$0xff] }
 0x2e0   : > { %v7427_v23 = vpop.eup %7426  ;;  %v5893_v0 = vrot.slane %v5892_v8, 4  ;;  %v4326_v22 = vmax.f32 %v4324_v47, %v4325_v45  ;;  %v4363_v50 = vrot.slane %v9960_v36, 4  ;;  %v4319_v17 = vmax.f32 %v4317_v30, %v4318_v31 }
 0x2e1   : > { %v5469_v61 = vmul.f32 %v7427_v23, %v9873_v51  ;;  %v5470_v35 = vmul.f32 %v7427_v23, %v9877_v20  ;;  %v4340_v21 = vmax.f32 %v4338_v62, %v4339_v10  ;;  %v4332_v48 = vrot.slane %v4331_v15, 1 }
 0x2e2   : > { %v9967_v1 = vadd.f32 %v5893_v0, %v5892_v8  ;;  %v4583_v52 = vsub.f32 %v9754_v38, %v4326_v22  ;;  %v4584_v19 = vsub.f32 %v9772_v46, %v4326_v22  ;;  %v4581_v33 = vsub.f32 %v9762_v3, %v4319_v17  ;;  %v9979_v0 = vpop.f32.mrf.mxu0 }
 0x2e3   : > { %v5597_v47 = vmul.f32 %v5469_v61, %v11264_v42  ;;  %v5598_v45 = vmul.f32 %v5470_v35, %v11265_v44  ;;  %v4582_v51 = vsub.f32 %v9788_v63, %v4319_v17  ;;  %v4587_v31 = vsub.f32 %v9821_v5, %v4340_v21  ;;  %v11266_v35 = vld [vmem:[#allocation66_spill] sm:$0xff] }
 0x2e4   : > { %11263 = vst [vmem:[#allocation122_spill] sm:$0xff] %v9967_v1  ;;  %v7429_v20 = vpop.eup %7428  ;;  %v4785_v30 = vmul.f32 1.442695, %v4583_v52  ;;  %v4787_v62 = vmul.f32 1.442695, %v4584_v19  ;;  %v4588_v8 = vsub.f32 %v9855_v13, %v4340_v21  ;;  %v11267_v52 = vld [vmem:[#allocation64_spill] sm:$0xff]  ;;  %v4333_v13 = vmax.f32 %v4331_v15, %v4332_v48 }
 0x2e5   : > { %v5885_v10 = vadd.f32 %v5598_v45, %v5597_v47  ;;  %v5475_v38 = vmul.f32 %v7429_v20, %v9885_v53  ;;  %v5476_v46 = vmul.f32 %v7429_v20, %v9889_v6  ;;  %v4781_v23 = vmul.f32 1.442695, %v4581_v33  ;;  %v9989_v45 = vpop.f32.mrf.mxu0  ;;  %v11271_v48 = vld [vmem:[#allocation61_spill] sm:$0xff] }
 0x2e6   : > { %7432 = vpow2.f32 %v4785_v30  ;;  %v4783_v22 = vmul.f32 1.442695, %v4582_v51  ;;  %v4793_v3 = vmul.f32 1.442695, %v4587_v31  ;;  %v4795_v61 = vmul.f32 1.442695, %v4588_v8 }
 0x2e7   : > { %v5886_v63 = vrot.slane %v5885_v10, 4  ;;  %v5603_v17 = vmul.f32 %v5475_v38, %v11266_v35  ;;  %v5604_v19 = vmul.f32 %v5476_v46, %v11267_v52  ;;  %7434 = vpow2.f32 %v4787_v62  ;;  %v11270_v30 = vld [vmem:[#allocation63_spill] sm:$0xff] }
 0x2e8   : > { %v7431_v5 = vpop.eup %7430  ;;  %7436 = vpow2.f32 %v4781_v23  ;;  %v4353_v21 = vrot.slane %v4352_v29, 1  ;;  %v4343_v53 = vmax.f32 %v4341_v26, %v4342_v14  ;;  %v4585_v33 = vsub.f32 %v9840_v27, %v4333_v13  ;;  %v11273_v46 = vld [vmem:[#allocation127_spill] sm:$0xff] }
 0x2e9   : > { %v9983_v42 = vadd.f32 %v5886_v63, %v5885_v10  ;;  %v9985_v6 = vadd.f32 %v5604_v19, %v5603_v17  ;;  %v5473_v47 = vmul.f32 %v7431_v5, %v9893_v12  ;;  %v5474_v44 = vmul.f32 %v7431_v5, %v9899_v4  ;;  %v11274_v19 = vld [vmem:[#allocation34_spill] sm:$0xff] }
 0x2ea   : > { %7438 = vpow2.f32 %v4783_v22  ;;  %v4586_v51 = vsub.f32 %v9868_v37, %v4333_v13  ;;  %v4354_v20 = vmax.f32 %v4352_v29, %v4353_v21  ;;  %v4344_v14 = vrot.slane %v4343_v53, 2  ;;  %v10000_v37 = vpop.f32.mrf.mxu0  ;;  %v11275_v13 = vld [vmem:[#allocation35_spill] sm:$0xff] }
 0x2eb   : > { %11268 = vst [vmem:[#allocation123_spill] sm:$0xff] %v9983_v42  ;;  %11269 = vst [vmem:[#allocation33_spill] sm:$0xff] %v9985_v6  ;;  %v5601_v15 = vmul.f32 %v5473_v47, %v11270_v30  ;;  %v5602_v26 = vmul.f32 %v5474_v44, %v11271_v48  ;;  %7440 = vpow2.f32 %v4793_v3  ;;  %v4789_v62 = vmul.f32 1.442695, %v4585_v33 }
 0x2ec   : > { %7442 = vpow2.f32 %v4795_v61  ;;  %v4791_v31 = vmul.f32 1.442695, %v4586_v51  ;;  %v4591_v12 = vsub.f32 %v9875_v56, %v4354_v20  ;;  %v4592_v8 = vsub.f32 %v9897_v2, %v4354_v20  ;;  %v11278_v51 = vld [vmem:[#allocation39_spill] sm:$0xff]  ;;  %v11279_v20 = vld [vmem:[#allocation37_spill] sm:$0xff] }
 0x2ed   : > { %v9996_v4 = vadd.f32 %v5602_v26, %v5601_v15  ;;  %v4345_v10 = vmax.f32 %v4343_v53, %v4344_v14  ;;  %v4364_v27 = vmax.f32 %v9960_v36, %v4363_v50  ;;  %7444 = vpow2.f32 %v4789_v62  ;;  %v11276_v53 = vld [vmem:[#allocation38_spill] sm:$0xff] }
 0x2ee   : > { %v4801_v29 = vmul.f32 1.442695, %v4591_v12  ;;  %v4355_v38 = vmax.f32 %v9942_v43, %v9965_v60  ;;  %v5447_v23 = vmul.f32 %v9645_v24, %v11273_v46  ;;  %7446 = vpow2.f32 %v4791_v31  ;;  %v10013_v24 = vpop.f32.mrf.mxu0  ;;  %v11281_v12 = vld [vmem:[#allocation40_spill] sm:$0xff]  ;;  %v11284_v46 = vld [vmem:[#allocation30_spill] sm:$0xff] }
 0x2ef   : > { %11272 = vst [vmem:[#allocation46_spill] sm:$0xff] %v9996_v4  ;;  %v4803_v56 = vmul.f32 1.442695, %v4592_v8  ;;  %v4346_v3 = vrot.slane %v4345_v10, 1  ;;  %v4365_v2 = vrot.slane %v4364_v27, 2  ;;  %v5449_v36 = vmul.f32 %v9687_v16, %v9565_v39 }
 0x2f0   : > { %7448 = vpow2.f32 %v4801_v29  ;;  %v4356_v61 = vrot.slane %v4355_v38, 4  ;;  %v5451_v63 = vmul.f32 %v9678_v54, %v9556_v28  ;;  %v5452_v35 = vmul.f32 %v9678_v54, %v9562_v55  ;;  %v11277_v54 = vld [vmem:[#allocation36_spill] sm:$0xff]  ;;  %v10050_v14 = vpop.f32.mrf.mxu0 }
 0x2f1   : > { %7450 = vpow2.f32 %v4803_v56  ;;  %v4347_v50 = vmax.f32 %v4345_v10, %v4346_v3  ;;  %v4366_v17 = vmax.f32 %v4364_v27, %v4365_v2  ;;  %v10017_v5 = vmul.f32 %v9593_v25, %v11274_v19  ;;  %v11282_v10 = vld [vmem:[#allocation28_spill] sm:$0xff]  ;;  %v11286_v3 = vld [vmem:[#allocation25_spill] sm:$0xff] }
 0x2f2   : > { %v4357_v52 = vmax.f32 %v4355_v38, %v4356_v61  ;;  %v10021_v21 = vmul.f32 %v9666_v49, %v11275_v13  ;;  %v10028_v55 = vmul.f32 %v5447_v23, %v11276_v53  ;;  %v10032_v47 = vmul.f32 %v9654_v32, %v11277_v54  ;;  %v11280_v32 = vld [vmem:[#allocation42_spill] sm:$0xff] }
 0x2f3   : > { %v10023_v39 = vpop.eup %7432  ;;  %v4589_v16 = vsub.f32 %v9887_v18, %v4347_v50  ;;  %v4590_v28 = vsub.f32 %v9910_v40, %v4347_v50  ;;  %v4367_v25 = vrot.slane %v4366_v17, 1  ;;  %v10037_v49 = vmul.f32 %v5449_v36, %v11278_v51 }
 0x2f4   : > { %v10034_v44 = vpop.eup %7434  ;;  %v4358_v33 = vrot.slane %v4357_v52, 2  ;;  %v10041_v30 = vmul.f32 %v9694_v58, %v11279_v20  ;;  %v10048_v26 = vmul.f32 %v5451_v63, %v11280_v32  ;;  %v10053_v8 = vmul.f32 %v5452_v35, %v11281_v12 }
 0x2f5   : > { %v10043_v18 = vpop.eup %7436  ;;  %v5152_v40 = vadd.f32 %v10034_v44, %v10023_v39  ;;  %v4797_v15 = vmul.f32 1.442695, %v4589_v16  ;;  %v4799_v48 = vmul.f32 1.442695, %v4590_v28  ;;  %v4368_v62 = vmax.f32 %v4366_v17, %v4367_v25  ;;  %v10072_v16 = vpop.f32.mrf.mxu0 }
 0x2f6   : > { %v4359_v31 = vmax.f32 %v4357_v52, %v4358_v33  ;;  %v11283_v58 = vrot.slane %v11282_v10, 4  ;;  %v11285_v23 = vrot.slane %v11284_v46, 4  ;;  %v5788_v2 = vrot.slane %v11286_v3, 4 }
 0x2f7   : > { %v10058_v29 = vpop.eup %7438  ;;  %v5153_v38 = vrot.slane %v5152_v40, 4  ;;  %7452 = vpow2.f32 %v4797_v15  ;;  %v4595_v50 = vsub.f32 %v9922_v7, %v4368_v62  ;;  %v4596_v63 = vsub.f32 %v9952_v57, %v4368_v62 }
 0x2f8   : > { %v5775_v27 = vadd.f32 %v11283_v58, %v11282_v10  ;;  %v5782_v56 = vadd.f32 %v11285_v23, %v11284_v46  ;;  %v10064_v61 = vpop.eup %7440  ;;  %v5145_v36 = vadd.f32 %v10058_v29, %v10043_v18  ;;  %7454 = vpow2.f32 %v4799_v48 }
 0x2f9   : > { %v10070_v35 = vpop.eup %7442  ;;  %v5154_v17 = vadd.f32 %v5153_v38, %v5152_v40  ;;  %v4360_v52 = vrot.slane %v4359_v31, 1  ;;  %v4809_v54 = vmul.f32 1.442695, %v4595_v50  ;;  %v4811_v25 = vmul.f32 1.442695, %v4596_v63  ;;  %v10086_v38 = vpop.f32.mrf.mxu0 }
 0x2fa   : > { %v5776_v19 = vrot.slane %v5775_v27, 2  ;;  %v5783_v13 = vrot.slane %v5782_v56, 2  ;;  %v5146_v28 = vrot.slane %v5145_v36, 4  ;;  %v5166_v53 = vadd.f32 %v10070_v35, %v10064_v61  ;;  %v10076_v33 = vpop.eup %7444 }
 0x2fb   : > { %v5155_v51 = vrot.slane %v5154_v17, 2  ;;  %v4361_v7 = vmax.f32 %v4359_v31, %v4360_v52  ;;  %v10078_v15 = vpop.eup %7446  ;;  %7456 = vpow2.f32 %v4809_v54  ;;  %v5789_v32 = vadd.f32 %v5788_v2, %v11286_v3  ;;  %v10095_v54 = vpop.f32.mrf.mxu0 }
 0x2fc   : > { %v5777_v20 = vadd.f32 %v5776_v19, %v5775_v27  ;;  %v5784_v57 = vadd.f32 %v5783_v13, %v5782_v56  ;;  %v5147_v40 = vadd.f32 %v5146_v28, %v5145_v36  ;;  %v5167_v48 = vrot.slane %v5166_v53, 4 }
 0x2fd   : > { %v10081_v62 = vpop.eup %7448  ;;  %v5156_v12 = vadd.f32 %v5155_v51, %v5154_v17  ;;  %v5159_v10 = vadd.f32 %v10078_v15, %v10076_v33  ;;  %7458 = vpow2.f32 %v4811_v25  ;;  %v4593_v58 = vsub.f32 %v9942_v43, %v4361_v7 }
 0x2fe   : > { %v10088_v31 = vpop.eup %7450  ;;  %v5148_v27 = vrot.slane %v5147_v40, 2  ;;  %v5168_v46 = vadd.f32 %v5167_v48, %v5166_v53  ;;  %v4594_v23 = vsub.f32 %v9965_v60, %v4361_v7  ;;  %v5778_v56 = vrot.slane %v5777_v20, 1 }
 0x2ff   : > { %v5157_v36 = vrot.slane %v5156_v12, 1  ;;  %v5160_v3 = vrot.slane %v5159_v10, 4  ;;  %v5180_v2 = vadd.f32 %v10088_v31, %v10081_v62  ;;  %v4805_v50 = vmul.f32 1.442695, %v4593_v58 }
 0x300   : > { %v5149_v63 = vadd.f32 %v5148_v27, %v5147_v40  ;;  %v5169_v17 = vrot.slane %v5168_v46, 2  ;;  %v4807_v52 = vmul.f32 1.442695, %v4594_v23  ;;  %v10093_v19 = vadd.f32 %v5778_v56, %v5777_v20 }
 0x301   : > { %v5158_v43 = vadd.f32 %v5157_v36, %v5156_v12  ;;  %v5161_v13 = vadd.f32 %v5160_v3, %v5159_v10  ;;  %v5181_v28 = vrot.slane %v5180_v2, 4  ;;  %7460 = vpow2.f32 %v4805_v50  ;;  %v11287_v12 = vld [vmem:[#allocation27_spill] sm:$0xff] }
 0x302   : > { %v5150_v53 = vrot.slane %v5149_v63, 1  ;;  %v5170_v60 = vadd.f32 %v5169_v17, %v5168_v46  ;;  %7462 = vpow2.f32 %v4807_v52  ;;  %v5785_v25 = vrot.slane %v5784_v57, 1  ;;  %v11288_v46 = vld [vmem:[#allocation5_spill] sm:$0xff]  ;;  %v10105_v17 = vpop.f32.mrf.mxu0 }
 0x303   : > { %7464 = vrcp.f32 %v5158_v43  ;;  %v5162_v51 = vrot.slane %v5161_v13, 2  ;;  %v5182_v7 = vadd.f32 %v5181_v28, %v5180_v2  ;;  %v5790_v48 = vrot.slane %v5789_v32, 2 }
 0x304   : > { %v10097_v58 = vpop.eup %7452  ;;  %v5151_v40 = vadd.f32 %v5150_v53, %v5149_v63  ;;  %v5171_v27 = vrot.slane %v5170_v60, 1  ;;  %v5786_v20 = vadd.f32 %v5785_v25, %v5784_v57  ;;  %v5794_v10 = vadd.f32 %v11287_v12, %v10017_v5 }
 0x305   : > { %v10101_v23 = vpop.eup %7454  ;;  %v5163_v56 = vadd.f32 %v5162_v51, %v5161_v13  ;;  %v5183_v36 = vrot.slane %v5182_v7, 2  ;;  %v5791_v3 = vadd.f32 %v5790_v48, %v5789_v32  ;;  %v5801_v50 = vadd.f32 %v11288_v46, %v10021_v21 }
 0x306   : > { %7466 = vrcp.f32 %v5151_v40  ;;  %v5172_v2 = vadd.f32 %v5171_v27, %v5170_v60  ;;  %v5173_v63 = vadd.f32 %v10101_v23, %v10097_v58  ;;  %v5795_v52 = vrot.slane %v5794_v10, 4  ;;  %v10113_v40 = vpop.f32.mrf.mxu0 }
 0x307   : > { %v5164_v57 = vrot.slane %v5163_v56, 1  ;;  %v5184_v43 = vadd.f32 %v5183_v36, %v5182_v7  ;;  %v5792_v28 = vrot.slane %v5791_v3, 1  ;;  %v5802_v5 = vrot.slane %v5801_v50, 4 }
 0x308   : > { %7468 = vrcp.f32 %v5172_v2  ;;  %v5174_v53 = vrot.slane %v5173_v63, 4  ;;  %v5796_v13 = vadd.f32 %v5795_v52, %v5794_v10  ;;  %v5808_v32 = vadd.f32 %v10032_v47, %v10028_v55  ;;  %v10111_v25 = vpop.eup %7456 }
 0x309   : > { %v5165_v21 = vadd.f32 %v5164_v57, %v5163_v56  ;;  %v5185_v51 = vrot.slane %v5184_v43, 1  ;;  %v5793_v48 = vadd.f32 %v5792_v28, %v5791_v3  ;;  %v5803_v60 = vadd.f32 %v5802_v5, %v5801_v50  ;;  %v10123_v28 = vpop.f32.mrf.mxu0 }
 0x30a   : > { %v10115_v27 = vpop.eup %7458  ;;  %v5175_v12 = vadd.f32 %v5174_v53, %v5173_v63  ;;  %v5797_v7 = vrot.slane %v5796_v13, 2  ;;  %v5809_v36 = vrot.slane %v5808_v32, 4  ;;  %v5815_v46 = vadd.f32 %v10041_v30, %v10037_v49 }
 0x30b   : > { %7470 = vrcp.f32 %v5165_v21  ;;  %v5186_v10 = vadd.f32 %v5185_v51, %v5184_v43  ;;  %v5194_v55 = vadd.f32 %v10115_v27, %v10111_v25  ;;  %v5804_v47 = vrot.slane %v5803_v60, 2 }
 0x30c   : > { %v5176_v56 = vrot.slane %v5175_v12, 2  ;;  %v5798_v2 = vadd.f32 %v5797_v7, %v5796_v13  ;;  %v5810_v3 = vadd.f32 %v5809_v36, %v5808_v32  ;;  %v5816_v50 = vrot.slane %v5815_v46, 4 }
 0x30d   : > { %7472 = vrcp.f32 %v5186_v10  ;;  %v5195_v52 = vrot.slane %v5194_v55, 4  ;;  %v5805_v57 = vadd.f32 %v5804_v47, %v5803_v60  ;;  %v5822_v63 = vadd.f32 %v10053_v8, %v10048_v26 }
 0x30e   : > { %v10125_v5 = vpop.eup %7460  ;;  %v5177_v49 = vadd.f32 %v5176_v56, %v5175_v12  ;;  %v5799_v30 = vrot.slane %v5798_v2, 1  ;;  %v5811_v43 = vrot.slane %v5810_v3, 2  ;;  %v5817_v53 = vadd.f32 %v5816_v50, %v5815_v46  ;;  %v10139_v56 = vpop.f32.mrf.mxu0 }
 0x30f   : > { %v10127_v21 = vpop.eup %7462  ;;  %v5196_v51 = vadd.f32 %v5195_v52, %v5194_v55  ;;  %v5806_v13 = vrot.slane %v5805_v57, 1  ;;  %v5823_v32 = vrot.slane %v5822_v63, 4  ;;  %v6194_v7 = vsel %vm6173_vm1, %v5786_v20, %v10093_v19 }
 0x310   : > { %v10131_v60 = vpop.eup %7464  ;;  %v5178_v36 = vrot.slane %v5177_v49, 1  ;;  %v5187_v26 = vadd.f32 %v10127_v21, %v10125_v5  ;;  %v5800_v8 = vadd.f32 %v5799_v30, %v5798_v2  ;;  %v5812_v10 = vadd.f32 %v5811_v43, %v5810_v3 }
 0x311   : > { %v10137_v12 = vmul.f32 %v10131_v60, %v10034_v44  ;;  %v5197_v46 = vrot.slane %v5196_v51, 2  ;;  %v5807_v47 = vadd.f32 %v5806_v13, %v5805_v57  ;;  %v5818_v55 = vrot.slane %v5817_v53, 2 }
 0x312   : > { %v5179_v50 = vadd.f32 %v5178_v36, %v5177_v49  ;;  %v5188_v52 = vrot.slane %v5187_v26, 4  ;;  %v5813_v19 = vrot.slane %v5812_v10, 1  ;;  %v5824_v20 = vadd.f32 %v5823_v32, %v5822_v63 }
 0x313   : > { %11289 = vst [vmem:[#allocation44_spill] sm:$0xff] %v10137_v12  ;;  %v7467_v22 = vpop.eup %7466  ;;  %v5198_v6 = vadd.f32 %v5197_v46, %v5196_v51  ;;  %v5819_v4 = vadd.f32 %v5818_v55, %v5817_v53  ;;  %v6195_v1 = vsel %vm6175_vm2, %v5793_v48, %v6194_v7  ;;  %v4376_v2 = vmax.f32 %v9979_v0, %v10000_v37  ;;  %v10150_v51 = vpop.f32.mrf.mxu0  ;;  %v11291_v53 = vld [vmem:[#allocation65_spill] sm:$0xff] }
 0x314   : > { %v10145_v44 = vmul.f32 %v7467_v22, %v10043_v18  ;;  %v5478_v3 = vmul.f32 %v7467_v22, %v10058_v29  ;;  %7474 = vrcp.f32 %v5179_v50  ;;  %v5189_v57 = vadd.f32 %v5188_v52, %v5187_v26 }
 0x315   : > { %v10148_v30 = vpop.eup %7468  ;;  %v5199_v49 = vrot.slane %v5198_v6, 1  ;;  %v5814_v43 = vadd.f32 %v5813_v19, %v5812_v10  ;;  %v5820_v63 = vrot.slane %v5819_v4, 1  ;;  %v5825_v13 = vrot.slane %v5824_v20, 2 }
 0x316   : > { %11290 = vst [vmem:[#allocation43_spill] sm:$0xff] %v10145_v44  ;;  %v10153_v48 = vmul.f32 %v5478_v3, %v11291_v53  ;;  %v5190_v32 = vrot.slane %v5189_v57, 2  ;;  %v6196_v7 = vsel %vm6177_vm3, %v5800_v8, %v6195_v1  ;;  %v4377_v18 = vrot.slane %v4376_v2, 4 }
 0x317   : > { %v5200_v36 = vadd.f32 %v5199_v49, %v5198_v6  ;;  %v5821_v46 = vadd.f32 %v5820_v63, %v5819_v4  ;;  %v5826_v22 = vadd.f32 %v5825_v13, %v5824_v20  ;;  %v6197_v29 = vsel %vm6179_vm4, %v5807_v47, %v6196_v7  ;;  %v10167_v4 = vpop.f32.mrf.mxu0  ;;  %v11294_v7 = vld [vmem:[#allocation78_spill] sm:$0xff] }
 0x318   : > { %11292 = vst [vmem:[#allocation41_spill] sm:$0xff] %v10153_v48  ;;  %v10157_v26 = vpop.eup %7470  ;;  %v5191_v55 = vadd.f32 %v5190_v32, %v5189_v57  ;;  %v6198_v10 = vsel %vm6181_vm5, %v5814_v43, %v6197_v29  ;;  %v4378_v50 = vmax.f32 %v4376_v2, %v4377_v18  ;;  %v4369_v52 = vmax.f32 %v9989_v45, %v10013_v24 }
 0x319   : > { %v10164_v19 = vmul.f32 %v10157_v26, %v10078_v15  ;;  %7476 = vrcp.f32 %v5200_v36  ;;  %v5827_v1 = vrot.slane %v5826_v22, 1  ;;  %v6199_v6 = vsel %vm6183_vm6, %v5821_v46, %v6198_v10  ;;  %v11295_v36 = vld [vmem:[#allocation76_spill] sm:$0xff]  ;;  %v10178_v48 = vpop.f32.mrf.mxu0 }
 0x31a   : > { %v7473_v8 = vpop.eup %7472  ;;  %v5192_v47 = vrot.slane %v5191_v55, 1  ;;  %v4379_v20 = vrot.slane %v4378_v50, 2  ;;  %v4370_v3 = vrot.slane %v4369_v52, 4  ;;  %v4390_v2 = vmax.f32 %v10050_v14, %v10086_v38 }
 0x31b   : > { %11293 = vst [vmem:[#allocation50_spill] sm:$0xff] %v10164_v19  ;;  %v5487_v57 = vmul.f32 %v7473_v8, %v10081_v62  ;;  %v5488_v49 = vmul.f32 %v7473_v8, %v10088_v31  ;;  %v5828_v43 = vadd.f32 %v5827_v1, %v5826_v22  ;;  %v4383_v15 = vmax.f32 %v10072_v16, %v10095_v54 }
 0x31c   : > { %v5193_v63 = vadd.f32 %v5192_v47, %v5191_v55  ;;  %v4380_v13 = vmax.f32 %v4378_v50, %v4379_v20  ;;  %v4371_v53 = vmax.f32 %v4369_v52, %v4370_v3  ;;  %v4391_v32 = vrot.slane %v4390_v2, 4 }
 0x31d   : > { %v5615_v18 = vmul.f32 %v5487_v57, %v11294_v7  ;;  %v5616_v46 = vmul.f32 %v5488_v49, %v11295_v36  ;;  %v6200_v29 = vsel %vm6185_vm7, %v5828_v43, %v6199_v6  ;;  %v4384_v10 = vrot.slane %v4383_v15, 4 }
 0x31e   : > { %7478 = vrcp.f32 %v5193_v63  ;;  %6240 = vrot.lane.b32.xlu1 %v6200_v29, %s7671_s26  ;;  %v4381_v62 = vrot.slane %v4380_v13, 1  ;;  %v4372_v31 = vrot.slane %v4371_v53, 2  ;;  %v4392_v22 = vmax.f32 %v4390_v2, %v4391_v32 }
 0x31f   : > { %v5948_v1 = vadd.f32 %v5616_v46, %v5615_v18  ;;  %v4385_v55 = vmax.f32 %v4383_v15, %v4384_v10  ;;  %v4404_v50 = vmax.f32 %v10105_v17, %v10123_v28  ;;  %v4397_v52 = vmax.f32 %v10113_v40, %v10139_v56  ;;  %v11297_v46 = vld [vmem:[#allocation75_spill] sm:$0xff]  ;;  %v11298_v10 = vld [vmem:[#allocation73_spill] sm:$0xff] }
 0x320   : > { %v4382_v8 = vmax.f32 %v4380_v13, %v4381_v62  ;;  %v4373_v47 = vmax.f32 %v4371_v53, %v4372_v31  ;;  %v4393_v6 = vrot.slane %v4392_v22, 2  ;;  %v10187_v20 = vmax.f32 %v10150_v51, %v10178_v48 }
 0x321   : > { %v7475_v3 = vpop.eup %7474  ;;  %v5949_v57 = vrot.slane %v5948_v1, 4  ;;  %v4386_v49 = vrot.slane %v4385_v55, 2  ;;  %v4405_v43 = vrot.slane %v4404_v50, 4  ;;  %v4398_v2 = vrot.slane %v4397_v52, 4 }
 0x322   : > { %v5485_v15 = vmul.f32 %v7475_v3, %v10097_v58  ;;  %v5486_v63 = vmul.f32 %v7475_v3, %v10101_v23  ;;  %v4599_v32 = vsub.f32 %v9979_v0, %v4382_v8  ;;  %v4600_v7 = vsub.f32 %v10000_v37, %v4382_v8 }
 0x323   : > { %v10193_v13 = vadd.f32 %v5949_v57, %v5948_v1  ;;  %v4374_v53 = vrot.slane %v4373_v47, 1  ;;  %v4394_v18 = vmax.f32 %v4392_v22, %v4393_v6  ;;  %v4387_v36 = vmax.f32 %v4385_v55, %v4386_v49  ;;  %v11299_v49 = vld [vmem:[#allocation82_spill] sm:$0xff] }
 0x324   : > { %v5613_v29 = vmul.f32 %v5485_v15, %v11297_v46  ;;  %v5614_v62 = vmul.f32 %v5486_v63, %v11298_v10  ;;  %v4817_v31 = vmul.f32 1.442695, %v4599_v32  ;;  %v4819_v42 = vmul.f32 1.442695, %v4600_v7 }
 0x325   : > { %11296 = vst [vmem:[#allocation48_spill] sm:$0xff] %v10193_v13  ;;  %v4375_v19 = vmax.f32 %v4373_v47, %v4374_v53  ;;  %v4395_v12 = vrot.slane %v4394_v18, 1  ;;  %v4388_v58 = vrot.slane %v4387_v36, 1  ;;  %v4406_v44 = vmax.f32 %v4404_v50, %v4405_v43  ;;  %v11300_v43 = vld [vmem:[#allocation80_spill] sm:$0xff] }
 0x326   : > { %v7477_v23 = vpop.eup %7476  ;;  %v5941_v3 = vadd.f32 %v5614_v62, %v5613_v29  ;;  %7480 = vpow2.f32 %v4817_v31  ;;  %v4399_v0 = vmax.f32 %v4397_v52, %v4398_v2  ;;  %v4419_v37 = vrot.slane %v10187_v20, 4  ;;  %v11303_v29 = vld [vmem:[#allocation79_spill] sm:$0xff]  ;;  %v11304_v62 = vld [vmem:[#allocation77_spill] sm:$0xff] }
 0x327   : > { %v5491_v1 = vmul.f32 %v7477_v23, %v10111_v25  ;;  %v5492_v22 = vmul.f32 %v7477_v23, %v10115_v27  ;;  %7482 = vpow2.f32 %v4819_v42  ;;  %v4597_v55 = vsub.f32 %v9989_v45, %v4375_v19 }
 0x328   : > { %v5942_v8 = vrot.slane %v5941_v3, 4  ;;  %v4598_v6 = vsub.f32 %v10013_v24, %v4375_v19  ;;  %v4396_v47 = vmax.f32 %v4394_v18, %v4395_v12  ;;  %v4389_v57 = vmax.f32 %v4387_v36, %v4388_v58  ;;  %v10214_v18 = vpop.f32.mrf.mxu0 }
 0x329   : > { %v5619_v50 = vmul.f32 %v5491_v1, %v11299_v49  ;;  %v5620_v15 = vmul.f32 %v5492_v22, %v11300_v43  ;;  %v4813_v63 = vmul.f32 1.442695, %v4597_v55  ;;  %v4407_v52 = vrot.slane %v4406_v44, 2  ;;  %v11307_v43 = vld [vmem:[#allocation29_spill] sm:$0xff] }
 0x32a   : > { %v10204_v2 = vadd.f32 %v5942_v8, %v5941_v3  ;;  %v4815_v32 = vmul.f32 1.442695, %v4598_v6  ;;  %v4603_v25 = vsub.f32 %v10050_v14, %v4396_v47  ;;  %v4604_v42 = vsub.f32 %v10086_v38, %v4396_v47 }
 0x32b   : > { %v7479_v27 = vpop.eup %7478  ;;  %v10208_v45 = vadd.f32 %v5620_v15, %v5619_v50  ;;  %7484 = vpow2.f32 %v4813_v63  ;;  %v4601_v24 = vsub.f32 %v10072_v16, %v4389_v57  ;;  %v4602_v12 = vsub.f32 %v10095_v54, %v4389_v57  ;;  %v11308_v63 = vld [vmem:[#allocation51_spill] sm:$0xff] }
 0x32c   : > { %11301 = vst [vmem:[#allocation47_spill] sm:$0xff] %v10204_v2  ;;  %v5489_v19 = vmul.f32 %v7479_v27, %v10125_v5  ;;  %v5490_v7 = vmul.f32 %v7479_v27, %v10127_v21  ;;  %7486 = vpow2.f32 %v4815_v32  ;;  %v4825_v53 = vmul.f32 1.442695, %v4603_v25 }
 0x32d   : > { %11302 = vst [vmem:[#allocation45_spill] sm:$0xff] %v10208_v45  ;;  %v4827_v36 = vmul.f32 1.442695, %v4604_v42  ;;  %v4821_v14 = vmul.f32 1.442695, %v4601_v24  ;;  %v4408_v38 = vmax.f32 %v4406_v44, %v4407_v52  ;;  %v4400_v16 = vrot.slane %v4399_v0, 2 }
 0x32e   : > { %v4823_v46 = vmul.f32 1.442695, %v4602_v12  ;;  %v5617_v10 = vmul.f32 %v5489_v19, %v11303_v29  ;;  %v5618_v31 = vmul.f32 %v5490_v7, %v11304_v62  ;;  %7488 = vpow2.f32 %v4825_v53  ;;  %v11309_v52 = vld [vmem:[#allocation9_spill] sm:$0xff]  ;;  %v11311_v19 = vld [vmem:[#allocation52_spill] sm:$0xff] }
 0x32f   : > { %7490 = vpow2.f32 %v4827_v36  ;;  %v4409_v54 = vrot.slane %v4408_v38, 1  ;;  %v4420_v5 = vmax.f32 %v10187_v20, %v4419_v37  ;;  %v4411_v21 = vmax.f32 %v10167_v4, %v10214_v18  ;;  %v11306_v37 = vld [vmem:[#allocation31_spill] sm:$0xff] }
 0x330   : > { %v10221_v58 = vadd.f32 %v5618_v31, %v5617_v10  ;;  %7492 = vpow2.f32 %v4821_v14  ;;  %v4401_v23 = vmax.f32 %v4399_v0, %v4400_v16  ;;  %v5463_v44 = vmul.f32 %v9907_v41, %v9804_v59  ;;  %v11313_v14 = vld [vmem:[#allocation55_spill] sm:$0xff] }
 0x331   : > { %7494 = vpow2.f32 %v4823_v46  ;;  %v4410_v3 = vmax.f32 %v4408_v38, %v4409_v54  ;;  %v4421_v1 = vrot.slane %v4420_v5, 2  ;;  %v4412_v22 = vrot.slane %v4411_v21, 4  ;;  %v11314_v54 = vld [vmem:[#allocation53_spill] sm:$0xff] }
 0x332   : > { %11305 = vst [vmem:[#allocation124_spill] sm:$0xff] %v10221_v58  ;;  %v4402_v8 = vrot.slane %v4401_v23, 1  ;;  %v5465_v20 = vmul.f32 %v9940_v11, %v9849_v34  ;;  %v5467_v6 = vmul.f32 %v9924_v9, %v11306_v37  ;;  %v5468_v15 = vmul.f32 %v9924_v9, %v11307_v43  ;;  %v11310_v11 = vld [vmem:[#allocation54_spill] sm:$0xff] }
 0x333   : > { %v10230_v47 = vpop.eup %7480  ;;  %v4607_v0 = vsub.f32 %v10105_v17, %v4410_v3  ;;  %v4608_v57 = vsub.f32 %v10123_v28, %v4410_v3  ;;  %v4422_v59 = vmax.f32 %v4420_v5, %v4421_v1  ;;  %v4413_v41 = vmax.f32 %v4411_v21, %v4412_v22  ;;  %v11312_v9 = vld [vmem:[#allocation10_spill] sm:$0xff]  ;;  %v11315_v5 = vld [vmem:[#allocation12_spill] sm:$0xff] }
 0x334   : > { %v10234_v49 = vpop.eup %7482  ;;  %v4403_v50 = vmax.f32 %v4401_v23, %v4402_v8  ;;  %v10240_v34 = vmul.f32 %v11309_v52, %v11308_v63  ;;  %v10243_v32 = vmul.f32 %v5463_v44, %v11310_v11  ;;  %v10251_v7 = vmul.f32 %v11312_v9, %v11311_v19  ;;  %v11316_v3 = vld [vmem:[#allocation58_spill] sm:$0xff] }
 0x335   : > { %v5208_v17 = vadd.f32 %v10234_v49, %v10230_v47  ;;  %v4833_v25 = vmul.f32 1.442695, %v4607_v0  ;;  %v4835_v28 = vmul.f32 1.442695, %v4608_v57  ;;  %v4423_v42 = vrot.slane %v4422_v59, 1  ;;  %v11319_v57 = vld [vmem:[#allocation56_spill] sm:$0xff] }
 0x336   : > { %v4605_v27 = vsub.f32 %v10113_v40, %v4403_v50  ;;  %v4606_v24 = vsub.f32 %v10139_v56, %v4403_v50  ;;  %v4414_v12 = vrot.slane %v4413_v41, 2  ;;  %v10254_v46 = vmul.f32 %v5465_v20, %v11313_v14  ;;  %v11321_v52 = vld [vmem:[#allocation6_spill] sm:$0xff] }
 0x337   : > { %v5209_v53 = vrot.slane %v5208_v17, 4  ;;  %7496 = vpow2.f32 %v4833_v25  ;;  %v4424_v36 = vmax.f32 %v4422_v59, %v4423_v42  ;;  %v10264_v21 = vmul.f32 %v11315_v5, %v11314_v54  ;;  %v10288_v42 = vpop.f32.mrf.mxu0 }
 0x338   : > { %v10256_v38 = vpop.eup %7484  ;;  %7498 = vpow2.f32 %v4835_v28  ;;  %v4829_v29 = vmul.f32 1.442695, %v4605_v27  ;;  %v4831_v10 = vmul.f32 1.442695, %v4606_v24  ;;  %v4415_v62 = vmax.f32 %v4413_v41, %v4414_v12  ;;  %v11320_v41 = vld [vmem:[#allocation7_spill] sm:$0xff] }
 0x339   : > { %v10258_v40 = vpop.eup %7486  ;;  %v5210_v56 = vadd.f32 %v5209_v53, %v5208_v17  ;;  %v4611_v31 = vsub.f32 %v10150_v51, %v4424_v36  ;;  %v4612_v16 = vsub.f32 %v10178_v48, %v4424_v36  ;;  %v10269_v1 = vmul.f32 %v5467_v6, %v11316_v3  ;;  %v10297_v5 = vpop.f32.mrf.mxu0 }
 0x33a   : > { %v5201_v23 = vadd.f32 %v10258_v40, %v10256_v38  ;;  %7500 = vpow2.f32 %v4829_v29  ;;  %v4416_v44 = vrot.slane %v4415_v62, 1  ;;  %v10276_v59 = vmul.f32 %v5468_v15, %v11319_v57 }
 0x33b   : > { %v10271_v22 = vpop.eup %7488  ;;  %v5211_v8 = vrot.slane %v5210_v56, 2  ;;  %7502 = vpow2.f32 %v4831_v10  ;;  %v4841_v20 = vmul.f32 1.442695, %v4611_v31  ;;  %v4843_v51 = vmul.f32 1.442695, %v4612_v16  ;;  %v11322_v31 = vld [vmem:[#allocation8_spill] sm:$0xff] }
 0x33c   : > { %11317 = vst [vmem:[#allocation19_spill] sm:$0xff] %v10271_v22  ;;  %v10273_v37 = vpop.eup %7490  ;;  %v5202_v48 = vrot.slane %v5201_v23, 4  ;;  %v4417_v0 = vmax.f32 %v4415_v62, %v4416_v44  ;;  %v5832_v50 = vrot.slane %v11320_v41, 2  ;;  %v5839_v11 = vrot.slane %v11321_v52, 2 }
 0x33d   : > { %11318 = vst [vmem:[#allocation14_spill] sm:$0xff] %v10273_v37  ;;  %v10279_v43 = vpop.eup %7492  ;;  %v5212_v63 = vadd.f32 %v5211_v8, %v5210_v56  ;;  %v5222_v6 = vadd.f32 %v10273_v37, %v10271_v22  ;;  %7504 = vpow2.f32 %v4841_v20  ;;  %v11323_v16 = vrot.slane %v11322_v31, 4  ;;  %v11336_v22 = vld [vmem:[#allocation89_spill] sm:$0xff] }
 0x33e   : > { %v10284_v17 = vpop.eup %7494  ;;  %v5203_v25 = vadd.f32 %v5202_v48, %v5201_v23  ;;  %7506 = vpow2.f32 %v4843_v51  ;;  %v4609_v28 = vsub.f32 %v10167_v4, %v4417_v0  ;;  %v4610_v15 = vsub.f32 %v10214_v18, %v4417_v0  ;;  %v10305_v0 = vpop.f32.mrf.mxu1 }
 0x33f   : > { %v5213_v27 = vrot.slane %v5212_v63, 1  ;;  %v5223_v24 = vrot.slane %v5222_v6, 4  ;;  %v5215_v12 = vadd.f32 %v10284_v17, %v10279_v43  ;;  %v5833_v19 = vadd.f32 %v5832_v50, %v11320_v41 }
 0x340   : > { %v5204_v9 = vrot.slane %v5203_v25, 2  ;;  %v4837_v53 = vmul.f32 1.442695, %v4609_v28  ;;  %v4839_v36 = vmul.f32 1.442695, %v4610_v15  ;;  %v5840_v14 = vadd.f32 %v5839_v11, %v11321_v52  ;;  %v11325_v52 = vld [vmem:[#allocation11_spill] sm:$0xff] }
 0x341   : > { %v5214_v29 = vadd.f32 %v5213_v27, %v5212_v63  ;;  %v5224_v10 = vadd.f32 %v5223_v24, %v5222_v6  ;;  %v5216_v62 = vrot.slane %v5215_v12, 4  ;;  %v5834_v4 = vrot.slane %v5833_v19, 1  ;;  %v11324_v63 = vld [vmem:[#allocation32_spill] sm:$0xff]  ;;  %v10316_v24 = vpop.f32.mrf.mxu0 }
 0x342   : > { %v5205_v56 = vadd.f32 %v5204_v9, %v5203_v25  ;;  %7508 = vpow2.f32 %v4837_v53  ;;  %v5841_v18 = vrot.slane %v5840_v14, 1  ;;  %v5845_v54 = vadd.f32 %v11323_v16, %v11322_v31 }
 0x343   : > { %7510 = vrcp.f32 %v5214_v29  ;;  %v5225_v23 = vrot.slane %v5224_v10, 2  ;;  %v5217_v44 = vadd.f32 %v5216_v62, %v5215_v12  ;;  %v10299_v3 = vadd.f32 %v5834_v4, %v5833_v19  ;;  %v10323_v62 = vpop.f32.mrf.mxu1 }
 0x344   : > { %v10301_v8 = vpop.eup %7496  ;;  %v5206_v20 = vrot.slane %v5205_v56, 1  ;;  %7512 = vpow2.f32 %v4839_v36  ;;  %v10303_v51 = vadd.f32 %v5841_v18, %v5840_v14  ;;  %v5846_v48 = vrot.slane %v5845_v54, 2 }
 0x345   : > { %v10307_v57 = vpop.eup %7498  ;;  %v5226_v41 = vadd.f32 %v5225_v23, %v5224_v10  ;;  %v5218_v50 = vrot.slane %v5217_v44, 2  ;;  %v5851_v6 = vrot.slane %v11324_v63, 4  ;;  %v5857_v11 = vadd.f32 %v11325_v52, %v10240_v34 }
 0x346   : > { %v5207_v25 = vadd.f32 %v5206_v20, %v5205_v56  ;;  %v5236_v28 = vadd.f32 %v10307_v57, %v10301_v8  ;;  %v5847_v15 = vadd.f32 %v5846_v48, %v5845_v54  ;;  %v5864_v27 = vadd.f32 %v10251_v7, %v10243_v32 }
 0x347   : > { %v10318_v12 = vpop.eup %7500  ;;  %v5227_v19 = vrot.slane %v5226_v41, 1  ;;  %v5219_v9 = vadd.f32 %v5218_v50, %v5217_v44  ;;  %v5852_v53 = vadd.f32 %v5851_v6, %v11324_v63  ;;  %v5858_v36 = vrot.slane %v5857_v11, 4  ;;  %v10329_v44 = vpop.f32.mrf.mxu0 }
 0x348   : > { %v10321_v14 = vpop.eup %7502  ;;  %7514 = vrcp.f32 %v5207_v25  ;;  %v5237_v34 = vrot.slane %v5236_v28, 4  ;;  %v5848_v29 = vrot.slane %v5847_v15, 1  ;;  %v5865_v10 = vrot.slane %v5864_v27, 4 }
 0x349   : > { %v5228_v4 = vadd.f32 %v5227_v19, %v5226_v41  ;;  %v5220_v56 = vrot.slane %v5219_v9, 1  ;;  %v5229_v32 = vadd.f32 %v10321_v14, %v10318_v12  ;;  %v5853_v7 = vrot.slane %v5852_v53, 2  ;;  %v10335_v19 = vpop.f32.mrf.mxu1 }
 0x34a   : > { %v10327_v18 = vpop.eup %7504  ;;  %v5238_v31 = vadd.f32 %v5237_v34, %v5236_v28  ;;  %v5849_v16 = vadd.f32 %v5848_v29, %v5847_v15  ;;  %v5859_v54 = vadd.f32 %v5858_v36, %v5857_v11  ;;  %v5866_v23 = vadd.f32 %v5865_v10, %v5864_v27  ;;  %v10339_v29 = vpop.f32.mrf.mxu0 }
 0x34b   : > { %v10331_v20 = vpop.eup %7506  ;;  %7516 = vrcp.f32 %v5228_v4  ;;  %v5221_v48 = vadd.f32 %v5220_v56, %v5219_v9  ;;  %v5230_v50 = vrot.slane %v5229_v32, 4  ;;  %v5854_v63 = vadd.f32 %v5853_v7, %v5852_v53 }
 0x34c   : > { %v5239_v41 = vrot.slane %v5238_v31, 2  ;;  %v5250_v6 = vadd.f32 %v10331_v20, %v10327_v18  ;;  %v5860_v52 = vrot.slane %v5859_v54, 2  ;;  %v5867_v25 = vrot.slane %v5866_v23, 2 }
 0x34d   : > { %7518 = vrcp.f32 %v5221_v48  ;;  %v5231_v28 = vadd.f32 %v5230_v50, %v5229_v32  ;;  %v5855_v11 = vrot.slane %v5854_v63, 1  ;;  %v5871_v15 = vadd.f32 %v10264_v21, %v10254_v46  ;;  %v10347_v21 = vpop.f32.mrf.mxu1 }
 0x34e   : > { %v5240_v27 = vadd.f32 %v5239_v41, %v5238_v31  ;;  %v5251_v36 = vrot.slane %v5250_v6, 4  ;;  %v5861_v34 = vadd.f32 %v5860_v52, %v5859_v54  ;;  %v5868_v9 = vadd.f32 %v5867_v25, %v5866_v23 }
 0x34f   : > { %v10341_v53 = vpop.eup %7508  ;;  %v5232_v10 = vrot.slane %v5231_v28, 2  ;;  %v5856_v4 = vadd.f32 %v5855_v11, %v5854_v63  ;;  %v5872_v56 = vrot.slane %v5871_v15, 4  ;;  %v5878_v7 = vadd.f32 %v10276_v59, %v10269_v1 }
 0x350   : > { %v10345_v48 = vpop.eup %7510  ;;  %v5241_v32 = vrot.slane %v5240_v27, 1  ;;  %v5252_v50 = vadd.f32 %v5251_v36, %v5250_v6  ;;  %v5862_v55 = vrot.slane %v5861_v34, 1  ;;  %v5869_v46 = vrot.slane %v5868_v9, 1  ;;  %v10357_v6 = vpop.f32.mrf.mxu0 }
 0x351   : > { %v10349_v31 = vpop.eup %7512  ;;  %v10353_v54 = vmul.f32 %v10345_v48, %v10234_v49  ;;  %v5233_v23 = vadd.f32 %v5232_v10, %v5231_v28  ;;  %v5873_v63 = vadd.f32 %v5872_v56, %v5871_v15  ;;  %v5879_v41 = vrot.slane %v5878_v7, 4  ;;  %v10362_v28 = vpop.f32.mrf.mxu1 }
 0x352   : > { %v5242_v52 = vadd.f32 %v5241_v32, %v5240_v27  ;;  %v5253_v25 = vrot.slane %v5252_v50, 2  ;;  %v5243_v1 = vadd.f32 %v10349_v31, %v10341_v53  ;;  %v5863_v59 = vadd.f32 %v5862_v55, %v5861_v34 }
 0x353   : > { %11326 = vst [vmem:[#allocation22_spill] sm:$0xff] %v10353_v54  ;;  %v5234_v11 = vrot.slane %v5233_v23, 1  ;;  %v5870_v36 = vadd.f32 %v5869_v46, %v5868_v9  ;;  %v5874_v45 = vrot.slane %v5873_v63, 2  ;;  %v5880_v58 = vadd.f32 %v5879_v41, %v5878_v7 }
 0x354   : > { %7520 = vrcp.f32 %v5242_v52  ;;  %v5254_v13 = vadd.f32 %v5253_v25, %v5252_v50  ;;  %v5244_v2 = vrot.slane %v5243_v1, 4  ;;  %v6201_v49 = vsel %vm6173_vm1, %v10303_v51, %v10299_v3  ;;  %v10369_v50 = vpop.f32.mrf.mxu0  ;;  %v10378_v52 = vpop.f32.mrf.mxu1 }
 0x355   : > { %v7515_v15 = vpop.eup %7514  ;;  %v5235_v27 = vadd.f32 %v5234_v11, %v5233_v23  ;;  %v5875_v10 = vadd.f32 %v5874_v45, %v5873_v63  ;;  %v5881_v56 = vrot.slane %v5880_v58, 2  ;;  %v6202_v55 = vsel %vm6175_vm2, %v5849_v16, %v6201_v49  ;;  %v11329_v45 = vld [vmem:[#allocation81_spill] sm:$0xff] }
 0x356   : > { %v10366_v34 = vmul.f32 %v7515_v15, %v10256_v38  ;;  %v5494_v9 = vmul.f32 %v7515_v15, %v10258_v40  ;;  %v5255_v7 = vrot.slane %v5254_v13, 1  ;;  %v5245_v32 = vadd.f32 %v5244_v2, %v5243_v1 }
 0x357   : > { %7522 = vrcp.f32 %v5235_v27  ;;  %v5876_v46 = vrot.slane %v5875_v10, 1  ;;  %v5882_v3 = vadd.f32 %v5881_v56, %v5880_v58  ;;  %v6203_v51 = vsel %vm6177_vm3, %v5856_v4, %v6202_v55 }
 0x358   : > { %11327 = vst [vmem:[#allocation20_spill] sm:$0xff] %v10366_v34  ;;  %v10372_v41 = vpop.eup %7516  ;;  %v10375_v23 = vmul.f32 %v5494_v9, %v11329_v45  ;;  %v5256_v16 = vadd.f32 %v5255_v7, %v5254_v13  ;;  %v5246_v63 = vrot.slane %v5245_v32, 2  ;;  %v6204_v38 = vsel %vm6179_vm4, %v5863_v59, %v6203_v51  ;;  %v10389_v59 = vpop.f32.mrf.mxu0 }
 0x359   : > { %11328 = vst [vmem:[#allocation15_spill] sm:$0xff] %v10372_v41  ;;  %v5877_v40 = vadd.f32 %v5876_v46, %v5875_v10  ;;  %v5883_v2 = vrot.slane %v5882_v3, 1  ;;  %v6205_v25 = vsel %vm6181_vm5, %v5870_v36, %v6204_v38  ;;  %v4432_v58 = vmax.f32 %v10288_v42, %v10316_v24  ;;  %v10398_v7 = vpop.f32.mrf.mxu1 }
 0x35a   : > { %11330 = vst [vmem:[#allocation23_spill] sm:$0xff] %v10375_v23  ;;  %v10383_v1 = vpop.eup %7518  ;;  %7524 = vrcp.f32 %v5256_v16  ;;  %v5247_v4 = vadd.f32 %v5246_v63, %v5245_v32  ;;  %v4425_v11 = vmax.f32 %v10297_v5, %v10329_v44  ;;  %v4474_v13 = vmax.f32 %v10305_v0, %v10335_v19 }
 0x35b   : > { %11331 = vst [vmem:[#allocation21_spill] sm:$0xff] %v10383_v1  ;;  %v10393_v49 = vmul.f32 %v10383_v1, %v10284_v17  ;;  %v5884_v36 = vadd.f32 %v5883_v2, %v5882_v3  ;;  %v6206_v15 = vsel %vm6183_vm6, %v5877_v40, %v6205_v25  ;;  %v4433_v27 = vrot.slane %v4432_v58, 4 }
 0x35c   : > { %v5248_v10 = vrot.slane %v5247_v4, 1  ;;  %v4426_v56 = vrot.slane %v4425_v11, 4  ;;  %v4475_v55 = vrot.slane %v4474_v13, 4  ;;  %v4467_v9 = vmax.f32 %v10323_v62, %v10347_v21 }
 0x35d   : > { %11332 = vst [vmem:[#allocation126_spill] sm:$0xff] %v10393_v49  ;;  %v6207_v32 = vsel %vm6185_vm7, %v5884_v36, %v6206_v15  ;;  %v4434_v46 = vmax.f32 %v4432_v58, %v4433_v27  ;;  %v4446_v51 = vmax.f32 %v10339_v29, %v10369_v50  ;;  %v4439_v17 = vmax.f32 %v10357_v6, %v10389_v59 }
 0x35e   : > { %v5249_v3 = vadd.f32 %v5248_v10, %v5247_v4  ;;  %6242 = vrot.lane.b32.xlu1 %v6207_v32, %s7671_s26  ;;  %v4427_v45 = vmax.f32 %v4425_v11, %v4426_v56  ;;  %v4476_v16 = vmax.f32 %v4474_v13, %v4475_v55  ;;  %v4468_v63 = vrot.slane %v4467_v9, 4  ;;  %v11335_v11 = vld [vmem:[#allocation91_spill] sm:$0xff] }
 0x35f   : > { %v4435_v38 = vrot.slane %v4434_v46, 2  ;;  %v4447_v40 = vrot.slane %v4446_v51, 4  ;;  %v4440_v2 = vrot.slane %v4439_v17, 4  ;;  %v10408_v25 = vmax.f32 %v10362_v28, %v10398_v7 }
 0x360   : > { %7526 = vrcp.f32 %v5249_v3  ;;  %v4428_v58 = vrot.slane %v4427_v45, 2  ;;  %v4477_v36 = vrot.slane %v4476_v16, 2  ;;  %v4469_v15 = vmax.f32 %v4467_v9, %v4468_v63  ;;  %v11333_v9 = vld [vmem:[#allocation94_spill] sm:$0xff] }
 0x361   : > { %v7521_v27 = vpop.eup %7520  ;;  %v4436_v23 = vmax.f32 %v4434_v46, %v4435_v38  ;;  %v4448_v49 = vmax.f32 %v4446_v51, %v4447_v40  ;;  %v10410_v4 = vmax.f32 %v4439_v17, %v4440_v2  ;;  %v11334_v46 = vld [vmem:[#allocation92_spill] sm:$0xff] }
 0x362   : > { %v5503_v13 = vmul.f32 %v7521_v27, %v10301_v8  ;;  %v5504_v10 = vmul.f32 %v7521_v27, %v10307_v57  ;;  %v4429_v56 = vmax.f32 %v4427_v45, %v4428_v58  ;;  %v4478_v55 = vmax.f32 %v4476_v16, %v4477_v36 }
 0x363   : > { %v4437_v32 = vrot.slane %v4436_v23, 1  ;;  %v4470_v54 = vrot.slane %v4469_v15, 2  ;;  %v4449_v34 = vrot.slane %v4448_v49, 2  ;;  %v4442_v3 = vrot.slane %v10410_v4, 2 }
 0x364   : > { %v7523_v37 = vpop.eup %7522  ;;  %v5631_v63 = vmul.f32 %v5503_v13, %v11333_v9  ;;  %v5632_v51 = vmul.f32 %v5504_v10, %v11334_v46  ;;  %v4430_v17 = vrot.slane %v4429_v56, 1  ;;  %v4479_v38 = vrot.slane %v4478_v55, 1 }
 0x365   : > { %v5501_v40 = vmul.f32 %v7523_v37, %v10318_v12  ;;  %v5502_v8 = vmul.f32 %v7523_v37, %v10321_v14  ;;  %v4438_v2 = vmax.f32 %v4436_v23, %v4437_v32  ;;  %v4471_v57 = vmax.f32 %v4469_v15, %v4470_v54  ;;  %v10434_v32 = vpop.f32.mrf.mxu1 }
 0x366   : > { %v6004_v45 = vadd.f32 %v5632_v51, %v5631_v63  ;;  %v4431_v16 = vmax.f32 %v4429_v56, %v4430_v17  ;;  %v4480_v58 = vmax.f32 %v4478_v55, %v4479_v38  ;;  %v4450_v36 = vmax.f32 %v4448_v49, %v4449_v34  ;;  %v11338_v56 = vld [vmem:[#allocation96_spill] sm:$0xff] }
 0x367   : > { %v7525_v27 = vpop.eup %7524  ;;  %v5629_v41 = vmul.f32 %v5501_v40, %v11335_v11  ;;  %v5630_v1 = vmul.f32 %v5502_v8, %v11336_v22  ;;  %v4615_v13 = vsub.f32 %v10288_v42, %v4438_v2  ;;  %v4616_v10 = vsub.f32 %v10316_v24, %v4438_v2  ;;  %v11337_v11 = vld [vmem:[#allocation97_spill] sm:$0xff]  ;;  %v10432_v24 = vpop.f32.mrf.mxu0 }
 0x368   : > { %v6005_v9 = vrot.slane %v6004_v45, 4  ;;  %v5507_v12 = vmul.f32 %v7525_v27, %v10327_v18  ;;  %v5508_v37 = vmul.f32 %v7525_v27, %v10331_v20  ;;  %v4613_v14 = vsub.f32 %v10297_v5, %v4431_v16  ;;  %v10446_v2 = vpop.f32.mrf.mxu1  ;;  %v11339_v27 = vld [vmem:[#allocation95_spill] sm:$0xff] }
 0x369   : > { %v5997_v54 = vadd.f32 %v5630_v1, %v5629_v41  ;;  %v4849_v23 = vmul.f32 1.442695, %v4615_v13  ;;  %v4851_v15 = vmul.f32 1.442695, %v4616_v10  ;;  %v4614_v34 = vsub.f32 %v10329_v44, %v4431_v16  ;;  %v11340_v10 = vld [vmem:[#allocation93_spill] sm:$0xff] }
 0x36a   : > { %v10428_v49 = vadd.f32 %v6005_v9, %v6004_v45  ;;  %v5635_v22 = vmul.f32 %v5507_v12, %v11337_v11  ;;  %v5636_v42 = vmul.f32 %v5508_v37, %v11338_v56  ;;  %v4845_v55 = vmul.f32 1.442695, %v4613_v14 }
 0x36b   : > { %v5998_v18 = vrot.slane %v5997_v54, 4  ;;  %7528 = vpow2.f32 %v4849_v23  ;;  %v4847_v20 = vmul.f32 1.442695, %v4614_v34  ;;  %v4627_v5 = vsub.f32 %v10305_v0, %v4480_v58  ;;  %v10444_v0 = vpop.f32.mrf.mxu0 }
 0x36c   : > { %v10437_v41 = vadd.f32 %v5636_v42, %v5635_v22  ;;  %7530 = vpow2.f32 %v4851_v15  ;;  %v4628_v44 = vsub.f32 %v10335_v19, %v4480_v58  ;;  %v4472_v1 = vrot.slane %v4471_v57, 1  ;;  %v6237_v58 = vpop.permute.xlu0 %6236  ;;  %v10470_v15 = vpop.f32.mrf.mxu1 }
 0x36d   : > { %v7527_v63 = vpop.eup %7526  ;;  %v10440_v46 = vadd.f32 %v5998_v18, %v5997_v54  ;;  %7532 = vpow2.f32 %v4845_v55  ;;  %v4873_v51 = vmul.f32 1.442695, %v4627_v5  ;;  %v4451_v17 = vrot.slane %v4450_v36, 1  ;;  %v10468_v23 = vpop.f32.mrf.mxu0 }
 0x36e   : > { %v5505_v38 = vmul.f32 %v7527_v63, %v10341_v53  ;;  %v5506_v40 = vmul.f32 %v7527_v63, %v10349_v31  ;;  %7534 = vpow2.f32 %v4847_v20  ;;  %v4875_v8 = vmul.f32 1.442695, %v4628_v44  ;;  %v10484_v63 = vpop.f32.mrf.mxu1 }
 0x36f   : > { %7536 = vpow2.f32 %v4873_v51  ;;  %v4473_v19 = vmax.f32 %v4471_v57, %v4472_v1  ;;  %v4452_v45 = vmax.f32 %v4450_v36, %v4451_v17  ;;  %v4443_v16 = vmax.f32 %v10410_v4, %v4442_v3  ;;  %v10482_v1 = vpop.f32.mrf.mxu0 }
 0x370   : > { %v5633_v13 = vmul.f32 %v5505_v38, %v11339_v27  ;;  %v5634_v9 = vmul.f32 %v5506_v40, %v11340_v10  ;;  %7538 = vpow2.f32 %v4875_v8  ;;  %v11341_v53 = vrot.slane %v10408_v25, 4 }
 0x371   : > { %v4625_v57 = vsub.f32 %v10323_v62, %v4473_v19  ;;  %v4626_v4 = vsub.f32 %v10347_v21, %v4473_v19  ;;  %v4619_v3 = vsub.f32 %v10339_v29, %v4452_v45  ;;  %v4620_v36 = vsub.f32 %v10369_v50, %v4452_v45 }
 0x372   : > { %v4490_v31 = vmax.f32 %v10408_v25, %v11341_v53  ;;  %v10465_v12 = vadd.f32 %v5634_v9, %v5633_v13  ;;  %v4444_v37 = vrot.slane %v4443_v16, 1  ;;  %v7600_v25 = vld [vmem:[%s7784_s12] sm:$0xff]  ;;  %v4481_v21 = vmax.f32 %v10378_v52, %v10434_v32 }
 0x373   : > { %v6260_v54 = vadd.f32 %v7600_v25, %v6237_v58  ;;  %v4869_v34 = vmul.f32 1.442695, %v4625_v57  ;;  %v4871_v11 = vmul.f32 1.442695, %v4626_v4  ;;  %v4857_v62 = vmul.f32 1.442695, %v4619_v3 }
 0x374   : > { %v4491_v14 = vrot.slane %v4490_v31, 2  ;;  %v4859_v50 = vmul.f32 1.442695, %v4620_v36  ;;  %v4445_v22 = vmax.f32 %v4443_v16, %v4444_v37  ;;  %v4482_v18 = vrot.slane %v4481_v21, 4 }
 0x375   : > { %6268 = vst.msk [vmem:[%s10459_s16] sm:$0xff] %vm332_vm0, %v6260_v54  ;;  %7540 = vpow2.f32 %v4869_v34  ;;  %v10478_v42 = vsel %vm332_vm0, %v6260_v54, 0.0  ;;  %v6297_v55 = vmul.f32 %v6260_v54, %v6260_v54  ;;  %v4460_v38 = vmax.f32 %v10432_v24, %v10468_v23 }
 0x376   : > { %v4492_v56 = vmax.f32 %v4490_v31, %v4491_v14  ;;  %7542 = vpow2.f32 %v4871_v11  ;;  %v4617_v20 = vsub.f32 %v10357_v6, %v4445_v22  ;;  %v4618_v5 = vsub.f32 %v10389_v59, %v4445_v22 }
 0x377   : > { %7544 = vpow2.f32 %v4857_v62  ;;  %v10487_v51 = vsel %vm332_vm0, %v6297_v55, 0.0  ;;  %v4483_v17 = vmax.f32 %v4481_v21, %v4482_v18  ;;  %v4461_v16 = vrot.slane %v4460_v38, 4 }
 0x378   : > { %v4493_v44 = vrot.slane %v4492_v56, 1  ;;  %v10491_v40 = vpop.eup %7528  ;;  %7546 = vpow2.f32 %v4859_v50  ;;  %v4853_v8 = vmul.f32 1.442695, %v4617_v20  ;;  %v4855_v6 = vmul.f32 1.442695, %v4618_v5 }
 0x379   : > { %v10493_v59 = vpop.eup %7530  ;;  %v4484_v45 = vrot.slane %v4483_v17, 2  ;;  %v4453_v58 = vmax.f32 %v10444_v0, %v10482_v1  ;;  %v4502_v27 = vmax.f32 %v10446_v2, %v10484_v63  ;;  %v4462_v4 = vmax.f32 %v4460_v38, %v4461_v16 }
 0x37a   : > { %v4494_v19 = vmax.f32 %v4492_v56, %v4493_v44  ;;  %v10499_v13 = vpop.eup %7532  ;;  %v5264_v10 = vadd.f32 %v10493_v59, %v10491_v40  ;;  %7548 = vpow2.f32 %v4853_v8 }
 0x37b   : > { %v10505_v31 = vpop.eup %7534  ;;  %7550 = vpow2.f32 %v4855_v6  ;;  %v4485_v57 = vmax.f32 %v4483_v17, %v4484_v45  ;;  %v4454_v3 = vrot.slane %v4453_v58, 4 }
 0x37c   : > { %v4631_v9 = vsub.f32 %v10362_v28, %v4494_v19  ;;  %v4632_v53 = vsub.f32 %v10398_v7, %v4494_v19  ;;  %v10507_v36 = vpop.eup %7536  ;;  %v5265_v37 = vrot.slane %v5264_v10, 4  ;;  %v5257_v14 = vadd.f32 %v10505_v31, %v10499_v13 }
 0x37d   : > { %v10511_v34 = vpop.eup %7538  ;;  %v4486_v11 = vrot.slane %v4485_v57, 1  ;;  %v4463_v28 = vrot.slane %v4462_v4, 2  ;;  %v4455_v62 = vmax.f32 %v4453_v58, %v4454_v3  ;;  %v4503_v7 = vrot.slane %v4502_v27, 4 }
 0x37e   : > { %v4881_v25 = vmul.f32 1.442695, %v4631_v9  ;;  %v4883_v54 = vmul.f32 1.442695, %v4632_v53  ;;  %v5266_v21 = vadd.f32 %v5265_v37, %v5264_v10  ;;  %v5258_v50 = vrot.slane %v5257_v14, 4 }
 0x37f   : > { %v5306_v22 = vadd.f32 %v10511_v34, %v10507_v36  ;;  %v4487_v56 = vmax.f32 %v4485_v57, %v4486_v11  ;;  %v4464_v55 = vmax.f32 %v4462_v4, %v4463_v28  ;;  %v4456_v18 = vrot.slane %v4455_v62, 2 }
 0x380   : > { %7552 = vpow2.f32 %v4881_v25  ;;  %v5267_v20 = vrot.slane %v5266_v21, 2  ;;  %v5259_v5 = vadd.f32 %v5258_v50, %v5257_v14  ;;  %v4504_v17 = vmax.f32 %v4502_v27, %v4503_v7 }
 0x381   : > { %7554 = vpow2.f32 %v4883_v54  ;;  %v5307_v44 = vrot.slane %v5306_v22, 4  ;;  %v4629_v38 = vsub.f32 %v10378_v52, %v4487_v56  ;;  %v4630_v8 = vsub.f32 %v10434_v32, %v4487_v56 }
 0x382   : > { %v4465_v6 = vrot.slane %v4464_v55, 1  ;;  %v4457_v19 = vmax.f32 %v4455_v62, %v4456_v18  ;;  %v10517_v45 = vpop.eup %7540  ;;  %v5268_v16 = vadd.f32 %v5267_v20, %v5266_v21  ;;  %v5260_v58 = vrot.slane %v5259_v5, 2 }
 0x383   : > { %v5308_v10 = vadd.f32 %v5307_v44, %v5306_v22  ;;  %v4505_v9 = vrot.slane %v4504_v17, 2  ;;  %v10519_v53 = vpop.eup %7542  ;;  %v4877_v57 = vmul.f32 1.442695, %v4629_v38  ;;  %v4879_v4 = vmul.f32 1.442695, %v4630_v8 }
 0x384   : > { %v4466_v3 = vmax.f32 %v4464_v55, %v4465_v6  ;;  %v4458_v37 = vrot.slane %v4457_v19, 1  ;;  %v10521_v14 = vpop.eup %7544  ;;  %v5269_v27 = vrot.slane %v5268_v16, 1  ;;  %v5261_v52 = vadd.f32 %v5260_v58, %v5259_v5 }
 0x385   : > { %v5309_v25 = vrot.slane %v5308_v10, 2  ;;  %v5299_v32 = vadd.f32 %v10519_v53, %v10517_v45  ;;  %v10525_v54 = vpop.eup %7546  ;;  %7556 = vpow2.f32 %v4877_v57 }
 0x386   : > { %v4623_v11 = vsub.f32 %v10432_v24, %v4466_v3  ;;  %v4624_v28 = vsub.f32 %v10468_v23, %v4466_v3  ;;  %v4459_v62 = vmax.f32 %v4457_v19, %v4458_v37  ;;  %v5270_v7 = vadd.f32 %v5269_v27, %v5268_v16  ;;  %v10541_v37 = vpop.f32.mrf.mxu1 }
 0x387   : > { %v5262_v21 = vrot.slane %v5261_v52, 1  ;;  %v5310_v50 = vadd.f32 %v5309_v25, %v5308_v10  ;;  %v5300_v22 = vrot.slane %v5299_v32, 4  ;;  %v10529_v56 = vpop.eup %7548  ;;  %v5278_v55 = vadd.f32 %v10525_v54, %v10521_v14 }
 0x388   : > { %7558 = vpow2.f32 %v4879_v4  ;;  %v4865_v18 = vmul.f32 1.442695, %v4623_v11  ;;  %v4867_v20 = vmul.f32 1.442695, %v4624_v28  ;;  %v10533_v5 = vpop.eup %7550  ;;  %v4621_v6 = vsub.f32 %v10444_v0, %v4459_v62 }
 0x389   : > { %7560 = vrcp.f32 %v5270_v7  ;;  %v5263_v44 = vadd.f32 %v5262_v21, %v5261_v52  ;;  %v5311_v24 = vrot.slane %v5310_v50, 1  ;;  %v5301_v38 = vadd.f32 %v5300_v22, %v5299_v32 }
 0x38a   : > { %v5279_v23 = vrot.slane %v5278_v55, 4  ;;  %v5271_v8 = vadd.f32 %v10533_v5, %v10529_v56  ;;  %7562 = vpow2.f32 %v4865_v18  ;;  %v4622_v58 = vsub.f32 %v10482_v1, %v4459_v62 }
 0x38b   : > { %7564 = vrcp.f32 %v5263_v44  ;;  %v5312_v19 = vadd.f32 %v5311_v24, %v5310_v50  ;;  %v5302_v16 = vrot.slane %v5301_v38, 2  ;;  %v4861_v3 = vmul.f32 1.442695, %v4621_v6 }
 0x38c   : > { %v5280_v57 = vadd.f32 %v5279_v23, %v5278_v55  ;;  %v5272_v4 = vrot.slane %v5271_v8, 4  ;;  %7566 = vpow2.f32 %v4867_v20  ;;  %v4863_v25 = vmul.f32 1.442695, %v4622_v58 }
 0x38d   : > { %v10539_v10 = vpop.eup %7552  ;;  %7568 = vrcp.f32 %v5312_v19  ;;  %v5303_v52 = vadd.f32 %v5302_v16, %v5301_v38  ;;  %v4506_v32 = vmax.f32 %v4504_v17, %v4505_v9  ;;  %v4495_v7 = vmax.f32 %v10470_v15, %v10541_v37 }
 0x38e   : > { %v10543_v27 = vpop.eup %7554  ;;  %v5281_v0 = vrot.slane %v5280_v57, 2  ;;  %v5273_v11 = vadd.f32 %v5272_v4, %v5271_v8  ;;  %7570 = vpow2.f32 %v4861_v3  ;;  %v5479_v55 = vmul.f32 %v10131_v60, %v10023_v39 }
 0x38f   : > { %v5320_v28 = vadd.f32 %v10543_v27, %v10539_v10  ;;  %v5304_v1 = vrot.slane %v5303_v52, 1  ;;  %7572 = vpow2.f32 %v4863_v25  ;;  %v4507_v62 = vrot.slane %v4506_v32, 1 }
 0x390   : > { %v5282_v21 = vadd.f32 %v5281_v0, %v5280_v57  ;;  %v5274_v50 = vrot.slane %v5273_v11, 2  ;;  %v4496_v9 = vrot.slane %v4495_v7, 4  ;;  %v5481_v20 = vmul.f32 %v10157_v26, %v10076_v33 }
 0x391   : > { %v5321_v22 = vrot.slane %v5320_v28, 4  ;;  %v5305_v18 = vadd.f32 %v5304_v1, %v5303_v52  ;;  %v4508_v17 = vmax.f32 %v4506_v32, %v4507_v62  ;;  %v5483_v23 = vmul.f32 %v10148_v30, %v10064_v61  ;;  %v11342_v61 = vld [vmem:[#allocation67_spill] sm:$0xff] }
 0x392   : > { %v5283_v44 = vrot.slane %v5282_v21, 1  ;;  %v5275_v24 = vadd.f32 %v5274_v50, %v5273_v11  ;;  %v10555_v8 = vpop.eup %7556  ;;  %v4497_v39 = vmax.f32 %v4495_v7, %v4496_v9  ;;  %v5484_v33 = vmul.f32 %v10148_v30, %v10070_v35  ;;  %v11343_v52 = vld [vmem:[#allocation43_spill] sm:$0xff]  ;;  %v11345_v50 = vld [vmem:[#allocation68_spill] sm:$0xff] }
 0x393   : > { %v5322_v38 = vadd.f32 %v5321_v22, %v5320_v28  ;;  %7574 = vrcp.f32 %v5305_v18  ;;  %v4635_v6 = vsub.f32 %v10446_v2, %v4508_v17  ;;  %v4636_v19 = vsub.f32 %v10484_v63, %v4508_v17  ;;  %v11344_v28 = vld [vmem:[#allocation70_spill] sm:$0xff]  ;;  %v11346_v22 = vld [vmem:[#allocation44_spill] sm:$0xff] }
 0x394   : > { %v5284_v60 = vadd.f32 %v5283_v44, %v5282_v21  ;;  %v5276_v16 = vrot.slane %v5275_v24, 1  ;;  %v4498_v3 = vrot.slane %v4497_v39, 2  ;;  %v10565_v25 = vmul.f32 %v11343_v52, %v11342_v61  ;;  %v11349_v52 = vld [vmem:[#allocation69_spill] sm:$0xff] }
 0x395   : > { %v5323_v58 = vrot.slane %v5322_v38, 2  ;;  %v10561_v26 = vpop.eup %7558  ;;  %v4889_v57 = vmul.f32 1.442695, %v4635_v6  ;;  %v4891_v4 = vmul.f32 1.442695, %v4636_v19  ;;  %v10578_v1 = vmul.f32 %v5479_v55, %v11344_v28  ;;  %v11347_v19 = vld [vmem:[#allocation71_spill] sm:$0xff] }
 0x396   : > { %v10567_v32 = vpop.eup %7560  ;;  %7576 = vrcp.f32 %v5284_v60  ;;  %v5277_v2 = vadd.f32 %v5276_v16, %v5275_v24  ;;  %v5313_v0 = vadd.f32 %v10561_v26, %v10555_v8  ;;  %v4499_v30 = vmax.f32 %v4497_v39, %v4498_v3  ;;  %v11348_v16 = vld [vmem:[#allocation98_spill] sm:$0xff] }
 0x397   : > { %v5324_v63 = vadd.f32 %v5323_v58, %v5322_v38  ;;  %v10571_v11 = vpop.eup %7562  ;;  %v10575_v35 = vmul.f32 %v10567_v32, %v10493_v59  ;;  %7578 = vpow2.f32 %v4889_v57  ;;  %v10582_v18 = vmul.f32 %v11346_v22, %v11345_v50  ;;  %v11352_v28 = vld [vmem:[#allocation106_spill] sm:$0xff] }
 0x398   : > { %v7565_v62 = vpop.eup %7564  ;;  %7580 = vrcp.f32 %v5277_v2  ;;  %v5314_v21 = vrot.slane %v5313_v0, 4  ;;  %v4500_v44 = vrot.slane %v4499_v30, 1  ;;  %v10593_v39 = vmul.f32 %v5481_v20, %v11347_v19  ;;  %v11350_v2 = vld [vmem:[#allocation50_spill] sm:$0xff]  ;;  %v11351_v20 = vld [vmem:[#allocation108_spill] sm:$0xff] }
 0x399   : > { %v5325_v7 = vrot.slane %v5324_v63, 1  ;;  %v10584_v17 = vpop.eup %7566  ;;  %v10587_v9 = vmul.f32 %v7565_v62, %v10499_v13  ;;  %v5510_v59 = vmul.f32 %v7565_v62, %v10505_v31  ;;  %7582 = vpow2.f32 %v4891_v4  ;;  %v11353_v50 = vld [vmem:[#allocation74_spill] sm:$0xff] }
 0x39a   : > { %v7569_v24 = vpop.eup %7568  ;;  %v5315_v38 = vadd.f32 %v5314_v21, %v5313_v0  ;;  %v5292_v6 = vadd.f32 %v10584_v17, %v10571_v11  ;;  %v4501_v57 = vmax.f32 %v4499_v30, %v4500_v44  ;;  %v5611_v22 = vmul.f32 %v5483_v23, %v11353_v50 }
 0x39b   : > { %v5326_v55 = vadd.f32 %v5325_v7, %v5324_v63  ;;  %v10595_v60 = vpop.eup %7570  ;;  %v10598_v58 = vmul.f32 %v5510_v59, %v11348_v16  ;;  %v5523_v13 = vmul.f32 %v7569_v24, %v10507_v36  ;;  %v5524_v31 = vmul.f32 %v7569_v24, %v10511_v34 }
 0x39c   : > { %v10602_v4 = vpop.eup %7572  ;;  %v5316_v3 = vrot.slane %v5315_v38, 2  ;;  %v5293_v61 = vrot.slane %v5292_v6, 4  ;;  %v10606_v63 = vmul.f32 %v11350_v2, %v11349_v52  ;;  %v4633_v36 = vsub.f32 %v10470_v15, %v4501_v57  ;;  %v11355_v2 = vld [vmem:[#allocation123_spill] sm:$0xff] }
 0x39d   : > { %7584 = vrcp.f32 %v5326_v55  ;;  %v5651_v0 = vmul.f32 %v5523_v13, %v11351_v20  ;;  %v5652_v62 = vmul.f32 %v5524_v31, %v11352_v28  ;;  %v5285_v7 = vadd.f32 %v10602_v4, %v10595_v60  ;;  %v11354_v55 = vld [vmem:[#allocation72_spill] sm:$0xff] }
 0x39e   : > { %v5317_v34 = vadd.f32 %v5316_v3, %v5315_v38  ;;  %v5294_v30 = vadd.f32 %v5293_v61, %v5292_v6  ;;  %v4634_v21 = vsub.f32 %v10541_v37, %v4501_v57  ;;  %v4885_v24 = vmul.f32 1.442695, %v4633_v36  ;;  %v11358_v36 = vld [vmem:[#allocation122_spill] sm:$0xff] }
 0x39f   : > { %v10615_v59 = vadd.f32 %v5652_v62, %v5651_v0  ;;  %v5286_v44 = vrot.slane %v5285_v7, 4  ;;  %v5612_v19 = vmul.f32 %v5484_v33, %v11354_v55  ;;  %v5888_v20 = vrot.slane %v11355_v2, 2  ;;  %v11356_v33 = vld [vmem:[#allocation105_spill] sm:$0xff] }
 0x3a0   : > { %v7575_v16 = vpop.eup %7574  ;;  %v5318_v13 = vrot.slane %v5317_v34, 1  ;;  %v5295_v31 = vrot.slane %v5294_v30, 2  ;;  %v4887_v52 = vmul.f32 1.442695, %v4634_v21  ;;  %7586 = vpow2.f32 %v4885_v24  ;;  %v11357_v0 = vld [vmem:[#allocation109_spill] sm:$0xff] }
 0x3a1   : > { %v5521_v15 = vmul.f32 %v7575_v16, %v10517_v45  ;;  %v5522_v38 = vmul.f32 %v7575_v16, %v10519_v53  ;;  %v5287_v6 = vadd.f32 %v5286_v44, %v5285_v7  ;;  %v5889_v57 = vadd.f32 %v5888_v20, %v11355_v2  ;;  %v11359_v7 = vld [vmem:[#allocation46_spill] sm:$0xff] }
 0x3a2   : > { %v5319_v37 = vadd.f32 %v5318_v13, %v5317_v34  ;;  %v5296_v23 = vadd.f32 %v5295_v31, %v5294_v30  ;;  %7588 = vpow2.f32 %v4887_v52  ;;  %v5895_v21 = vrot.slane %v11358_v36, 2  ;;  %v11361_v13 = vld [vmem:[#allocation33_spill] sm:$0xff] }
 0x3a3   : > { %v10622_v3 = vpop.eup %7576  ;;  %v5649_v61 = vmul.f32 %v5521_v15, %v11356_v33  ;;  %v5650_v28 = vmul.f32 %v5522_v38, %v11357_v0  ;;  %v5288_v62 = vrot.slane %v5287_v6, 2  ;;  %v5890_v53 = vrot.slane %v5889_v57, 1 }
 0x3a4   : > { %v10627_v50 = vpop.eup %7578  ;;  %7590 = vrcp.f32 %v5319_v37  ;;  %v5297_v45 = vrot.slane %v5296_v23, 1  ;;  %v11360_v34 = vrot.slane %v11359_v7, 4  ;;  %v5896_v16 = vadd.f32 %v5895_v21, %v11358_v36 }
 0x3a5   : > { %v10632_v44 = vpop.eup %7580  ;;  %v10634_v24 = vadd.f32 %v5650_v28, %v5649_v61  ;;  %v5289_v55 = vadd.f32 %v5288_v62, %v5287_v6  ;;  %v5907_v31 = vrot.slane %v11361_v13, 4  ;;  %v5891_v15 = vadd.f32 %v5890_v53, %v5889_v57  ;;  %v11362_v62 = vld [vmem:[#allocation41_spill] sm:$0xff] }
 0x3a6   : > { %v5901_v30 = vadd.f32 %v11360_v34, %v11359_v7  ;;  %v10638_v52 = vpop.eup %7582  ;;  %v10642_v2 = vmul.f32 %v10632_v44, %v10533_v5  ;;  %v5298_v20 = vadd.f32 %v5297_v45, %v5296_v23  ;;  %v5897_v6 = vrot.slane %v5896_v16, 1 }
 0x3a7   : > { %v5290_v33 = vrot.slane %v5289_v55, 1  ;;  %v5334_v61 = vadd.f32 %v10638_v52, %v10627_v50  ;;  %v5908_v28 = vadd.f32 %v5907_v31, %v11361_v13  ;;  %v5913_v36 = vadd.f32 %v11362_v62, %v10565_v25 }
 0x3a8   : > { %v5902_v38 = vrot.slane %v5901_v30, 2  ;;  %7592 = vrcp.f32 %v5298_v20  ;;  %v5898_v57 = vadd.f32 %v5897_v6, %v5896_v16  ;;  %v5920_v45 = vadd.f32 %v10582_v18, %v10578_v1 }
 0x3a9   : > { %v5291_v5 = vadd.f32 %v5290_v33, %v5289_v55  ;;  %v5335_v23 = vrot.slane %v5334_v61, 4  ;;  %v5909_v34 = vrot.slane %v5908_v28, 2  ;;  %v5927_v25 = vadd.f32 %v10606_v63, %v10593_v39  ;;  %v6239_v33 = vpop.permute.xlu0 %6238 }
 0x3aa   : > { %v5903_v0 = vadd.f32 %v5902_v38, %v5901_v30  ;;  %v10650_v21 = vpop.eup %7584  ;;  %v5914_v30 = vrot.slane %v5913_v36, 4  ;;  %v5921_v31 = vrot.slane %v5920_v45, 4  ;;  %v5934_v16 = vadd.f32 %v5612_v19, %v5611_v22  ;;  %v7601_v22 = vld [vmem:[%s7784_s12 + $0x8] sm:$0xff] }
 0x3ab   : > { %v10656_v53 = vmul.f32 %v10650_v21, %v10543_v27  ;;  %7594 = vrcp.f32 %v5291_v5  ;;  %v5336_v13 = vadd.f32 %v5335_v23, %v5334_v61  ;;  %v5910_v55 = vadd.f32 %v5909_v34, %v5908_v28 }
 0x3ac   : > { %v5904_v7 = vrot.slane %v5903_v0, 1  ;;  %v5915_v38 = vadd.f32 %v5914_v30, %v5913_v36  ;;  %v5922_v18 = vadd.f32 %v5921_v31, %v5920_v45  ;;  %v5928_v6 = vrot.slane %v5927_v25, 4 }
 0x3ad   : > { %v5337_v1 = vrot.slane %v5336_v13, 2  ;;  %v6208_v27 = vsel %vm6173_vm1, %v5898_v57, %v5891_v15  ;;  %v10661_v62 = vpop.eup %7586  ;;  %v5911_v37 = vrot.slane %v5910_v55, 1  ;;  %v5935_v61 = vrot.slane %v5934_v16, 4 }
 0x3ae   : > { %v5905_v20 = vadd.f32 %v5904_v7, %v5903_v0  ;;  %v5916_v5 = vrot.slane %v5915_v38, 2  ;;  %v5923_v0 = vrot.slane %v5922_v18, 2  ;;  %v5929_v28 = vadd.f32 %v5928_v6, %v5927_v25 }
 0x3af   : > { %v10664_v39 = vpop.eup %7588  ;;  %v5338_v63 = vadd.f32 %v5337_v1, %v5336_v13  ;;  %v6261_v19 = vadd.f32 %v7601_v22, %v6239_v33  ;;  %v5912_v45 = vadd.f32 %v5911_v37, %v5910_v55  ;;  %v5936_v57 = vadd.f32 %v5935_v61, %v5934_v16 }
 0x3b0   : > { %v6209_v23 = vsel %vm6175_vm2, %v5905_v20, %v6208_v27  ;;  %v5327_v36 = vadd.f32 %v10664_v39, %v10661_v62  ;;  %v5917_v15 = vadd.f32 %v5916_v5, %v5915_v38  ;;  %v5924_v30 = vadd.f32 %v5923_v0, %v5922_v18  ;;  %v11363_v38 = vld [vmem:[#allocation117_spill] sm:$0xff] }
 0x3b1   : > { %v7591_v7 = vpop.eup %7590  ;;  %v5339_v34 = vrot.slane %v5338_v63, 1  ;;  %v5930_v31 = vrot.slane %v5929_v28, 2  ;;  %6269 = vst.msk [vmem:[%s10459_s16 + $0x8] sm:$0xff] %vm332_vm0, %v6261_v19  ;;  %v6277_v20 = vsel %vm332_vm0, %v6261_v19, 0.0  ;;  %v5937_v55 = vrot.slane %v5936_v57, 2 }
 0x3b2   : > { %v10673_v13 = vmul.f32 %v7591_v7, %v10555_v8  ;;  %v5526_v25 = vmul.f32 %v7591_v7, %v10561_v26  ;;  %v5328_v33 = vrot.slane %v5327_v36, 4  ;;  %v5918_v1 = vrot.slane %v5917_v15, 1 }
 0x3b3   : > { %v5340_v6 = vadd.f32 %v5339_v34, %v5338_v63  ;;  %v5925_v27 = vrot.slane %v5924_v30, 1  ;;  %v5931_v37 = vadd.f32 %v5930_v31, %v5929_v28  ;;  %v6210_v61 = vsel %vm6177_vm3, %v5912_v45, %v6209_v23  ;;  %v11364_v45 = vld [vmem:[#allocation112_spill] sm:$0xff] }
 0x3b4   : > { %v10677_v16 = vmul.f32 %v5526_v25, %v11363_v38  ;;  %v5329_v18 = vadd.f32 %v5328_v33, %v5327_v36  ;;  %v5919_v5 = vadd.f32 %v5918_v1, %v5917_v15  ;;  %v5938_v29 = vadd.f32 %v5937_v55, %v5936_v57 }
 0x3b5   : > { %v7593_v0 = vpop.eup %7592  ;;  %7596 = vrcp.f32 %v5340_v6  ;;  %v5926_v22 = vadd.f32 %v5925_v27, %v5924_v30  ;;  %v5932_v8 = vrot.slane %v5931_v37, 1  ;;  %v10685_v36 = vadd.f32 %v6277_v20, %v10478_v42  ;;  %v11365_v30 = vld [vmem:[#allocation113_spill] sm:$0xff]  ;;  %v11366_v20 = vld [vmem:[#allocation111_spill] sm:$0xff] }
 0x3b6   : > { %v5519_v26 = vmul.f32 %v7593_v0, %v10571_v11  ;;  %v5520_v7 = vmul.f32 %v7593_v0, %v10584_v17  ;;  %v5330_v63 = vrot.slane %v5329_v18, 2  ;;  %v6211_v28 = vsel %vm6179_vm4, %v5919_v5, %v6210_v61  ;;  %v11367_v61 = vld [vmem:[#allocation110_spill] sm:$0xff] }
 0x3b7   : > { %v5933_v34 = vadd.f32 %v5932_v8, %v5931_v37  ;;  %v5939_v31 = vrot.slane %v5938_v29, 1  ;;  %v6212_v25 = vsel %vm6181_vm5, %v5926_v22, %v6211_v28  ;;  %v6298_v1 = vmul.f32 %v6261_v19, %v6261_v19  ;;  %v11369_v8 = vld [vmem:[#allocation19_spill] sm:$0xff] }
 0x3b8   : > { %v7595_v23 = vpop.eup %7594  ;;  %v5647_v15 = vmul.f32 %v5519_v26, %v11364_v45  ;;  %v5648_v33 = vmul.f32 %v5520_v7, %v11365_v30  ;;  %v5331_v57 = vadd.f32 %v5330_v63, %v5329_v18  ;;  %v5495_v42 = vmul.f32 %v10345_v48, %v10230_v47  ;;  %v11368_v18 = vld [vmem:[#allocation21_spill] sm:$0xff]  ;;  %v11370_v26 = vld [vmem:[#allocation15_spill] sm:$0xff]  ;;  %v11371_v48 = vld [vmem:[#allocation14_spill] sm:$0xff] }
 0x3b9   : > { %v5517_v11 = vmul.f32 %v7595_v23, %v10595_v60  ;;  %v5518_v17 = vmul.f32 %v7595_v23, %v10602_v4  ;;  %v5940_v6 = vadd.f32 %v5939_v31, %v5938_v29  ;;  %v6213_v27 = vsel %vm6183_vm6, %v5933_v34, %v6212_v25  ;;  %v11372_v28 = vld [vmem:[#allocation83_spill] sm:$0xff]  ;;  %v11373_v34 = vld [vmem:[#allocation20_spill] sm:$0xff]  ;;  %v11374_v25 = vld [vmem:[#allocation86_spill] sm:$0xff] }
 0x3ba   : > { %v6060_v37 = vadd.f32 %v5648_v33, %v5647_v15  ;;  %v5332_v55 = vrot.slane %v5331_v57, 1  ;;  %v6306_v38 = vsel %vm332_vm0, %v6298_v1, 0.0  ;;  %v5497_v22 = vmul.f32 %v11368_v18, %v10279_v43  ;;  %v11375_v45 = vld [vmem:[#allocation84_spill] sm:$0xff]  ;;  %v11376_v15 = vld [vmem:[#allocation22_spill] sm:$0xff]  ;;  %v11377_v33 = vld [vmem:[#allocation87_spill] sm:$0xff] }
 0x3bb   : > { %v5645_v5 = vmul.f32 %v5517_v11, %v11366_v20  ;;  %v5646_v0 = vmul.f32 %v5518_v17, %v11367_v61  ;;  %v6214_v19 = vsel %vm6185_vm7, %v5940_v6, %v6213_v27  ;;  %v10699_v60 = vadd.f32 %v6306_v38, %v10487_v51  ;;  %v11378_v1 = vld [vmem:[#allocation85_spill] sm:$0xff]  ;;  %v11379_v11 = vld [vmem:[#allocation126_spill] sm:$0xff]  ;;  %v11382_v20 = vld [vmem:[#allocation47_spill] sm:$0xff] }
 0x3bc   : > { %v6061_v4 = vrot.slane %v6060_v37, 4  ;;  %v5333_v29 = vadd.f32 %v5332_v55, %v5331_v57  ;;  %6244 = vrot.lane.b32.xlu0 %v6214_v19, %s7671_s26  ;;  %v5499_v7 = vmul.f32 %v11370_v26, %v11369_v8  ;;  %v5500_v63 = vmul.f32 %v11370_v26, %v11371_v48  ;;  %v11380_v6 = vld [vmem:[#allocation90_spill] sm:$0xff]  ;;  %v11381_v55 = vld [vmem:[#allocation88_spill] sm:$0xff] }
 0x3bd   : > { %v6053_v47 = vadd.f32 %v5646_v0, %v5645_v5  ;;  %v5621_v31 = vmul.f32 %v11373_v34, %v11372_v28  ;;  %v5623_v51 = vmul.f32 %v5495_v42, %v11374_v25  ;;  %v5624_v30 = vmul.f32 %v11376_v15, %v11375_v45  ;;  %v11383_v61 = vld [vmem:[#allocation48_spill] sm:$0xff] }
 0x3be   : > { %v10711_v23 = vadd.f32 %v6061_v4, %v6060_v37  ;;  %7598 = vrcp.f32 %v5333_v29  ;;  %v5625_v43 = vmul.f32 %v5497_v22, %v11377_v33  ;;  %v5626_v17 = vmul.f32 %v11379_v11, %v11378_v1  ;;  %v11384_v37 = vld [vmem:[#allocation124_spill] sm:$0xff]  ;;  %v11386_v4 = vld [vmem:[#allocation45_spill] sm:$0xff]  ;;  %v11387_v22 = vld [vmem:[#allocation23_spill] sm:$0xff] }
 0x3bf   : > { %v6054_v57 = vrot.slane %v6053_v47, 4  ;;  %v5627_v27 = vmul.f32 %v5499_v7, %v11380_v6  ;;  %v5628_v38 = vmul.f32 %v5500_v63, %v11381_v55  ;;  %v5944_v5 = vrot.slane %v11382_v20, 2  ;;  %v6241_v6 = vpop.permute.xlu1 %6240 }
 0x3c0   : > { %v5951_v42 = vrot.slane %v11383_v61, 2  ;;  %v11385_v0 = vrot.slane %v11384_v37, 4  ;;  %v5963_v29 = vrot.slane %v11386_v4, 4  ;;  %v5969_v8 = vadd.f32 %v11387_v22, %v5621_v31 }
 0x3c1   : > { %v10726_v18 = vadd.f32 %v6054_v57, %v6053_v47  ;;  %v5976_v26 = vadd.f32 %v5624_v30, %v5623_v51  ;;  %v5983_v48 = vadd.f32 %v5626_v17, %v5625_v43  ;;  %v5945_v7 = vadd.f32 %v5944_v5, %v11382_v20 }
 0x3c2   : > { %v5957_v19 = vadd.f32 %v11385_v0, %v11384_v37  ;;  %v10729_v28 = vpop.eup %7596  ;;  %v5952_v63 = vadd.f32 %v5951_v42, %v11383_v61  ;;  %v5964_v25 = vadd.f32 %v5963_v29, %v11386_v4  ;;  %v5970_v15 = vrot.slane %v5969_v8, 4 }
 0x3c3   : > { %v6056_v45 = vrot.slane %v10726_v18, 2  ;;  %v5977_v33 = vrot.slane %v5976_v26, 4  ;;  %v5984_v1 = vrot.slane %v5983_v48, 4  ;;  %v5946_v47 = vrot.slane %v5945_v7, 1 }
 0x3c4   : > { %v5958_v34 = vrot.slane %v5957_v19, 2  ;;  %v5953_v57 = vrot.slane %v5952_v63, 1  ;;  %v5965_v31 = vrot.slane %v5964_v25, 2  ;;  %v5971_v51 = vadd.f32 %v5970_v15, %v5969_v8 }
 0x3c5   : > { %v5978_v30 = vadd.f32 %v5977_v33, %v5976_v26  ;;  %v5985_v43 = vadd.f32 %v5984_v1, %v5983_v48  ;;  %v5990_v17 = vadd.f32 %v5628_v38, %v5627_v27  ;;  %v5947_v55 = vadd.f32 %v5946_v47, %v5945_v7 }
 0x3c6   : > { %v5959_v11 = vadd.f32 %v5958_v34, %v5957_v19  ;;  %v5954_v20 = vadd.f32 %v5953_v57, %v5952_v63  ;;  %v5966_v61 = vadd.f32 %v5965_v31, %v5964_v25  ;;  %v5972_v42 = vrot.slane %v5971_v51, 2  ;;  %v7602_v34 = vld [vmem:[%s7784_s12 + $0x10] sm:$0xff] }
 0x3c7   : > { %v5979_v37 = vrot.slane %v5978_v30, 2  ;;  %v5986_v0 = vrot.slane %v5985_v43, 2  ;;  %v5991_v4 = vrot.slane %v5990_v17, 4  ;;  %v6262_v8 = vadd.f32 %v7602_v34, %v6241_v6 }
 0x3c8   : > { %v5960_v5 = vrot.slane %v5959_v11, 1  ;;  %v5967_v22 = vrot.slane %v5966_v61, 1  ;;  %v6215_v19 = vsel %vm6173_vm1, %v5954_v20, %v5947_v55  ;;  %v5973_v15 = vadd.f32 %v5972_v42, %v5971_v51 }
 0x3c9   : > { %v5980_v26 = vadd.f32 %v5979_v37, %v5978_v30  ;;  %v5987_v48 = vadd.f32 %v5986_v0, %v5985_v43  ;;  %v5992_v27 = vadd.f32 %v5991_v4, %v5990_v17  ;;  %6270 = vst.msk [vmem:[%s10459_s16 + $0x10] sm:$0xff] %vm332_vm0, %v6262_v8  ;;  %v6279_v63 = vsel %vm332_vm0, %v6262_v8, 0.0  ;;  %v11388_v4 = vld [vmem:[#allocation100_spill] sm:$0xff] }
 0x3ca   : > { %v5961_v29 = vadd.f32 %v5960_v5, %v5959_v11  ;;  %v5968_v38 = vadd.f32 %v5967_v22, %v5966_v61  ;;  %v6299_v25 = vmul.f32 %v6262_v8, %v6262_v8  ;;  %v5974_v1 = vrot.slane %v5973_v15, 1  ;;  %v11389_v22 = vld [vmem:[#allocation99_spill] sm:$0xff]  ;;  %v11392_v8 = vld [vmem:[#allocation104_spill] sm:$0xff] }
 0x3cb   : > { %v10741_v33 = vpop.eup %7598  ;;  %v5981_v47 = vrot.slane %v5980_v26, 1  ;;  %v5988_v57 = vrot.slane %v5987_v48, 1  ;;  %v5993_v11 = vrot.slane %v5992_v27, 2  ;;  %v10749_v30 = vadd.f32 %v6279_v63, %v10685_v36 }
 0x3cc   : > { %v6216_v7 = vsel %vm6175_vm2, %v5961_v29, %v6215_v19  ;;  %v10745_v31 = vmul.f32 %v10741_v33, %v10664_v39  ;;  %v6308_v43 = vsel %vm332_vm0, %v6299_v25, 0.0  ;;  %v5975_v17 = vadd.f32 %v5974_v1, %v5973_v15 }
 0x3cd   : > { %v6217_v51 = vsel %vm6177_vm3, %v5968_v38, %v6216_v7  ;;  %v5982_v6 = vadd.f32 %v5981_v47, %v5980_v26  ;;  %v5989_v55 = vadd.f32 %v5988_v57, %v5987_v48  ;;  %v5994_v20 = vadd.f32 %v5993_v11, %v5992_v27  ;;  %v11393_v26 = vld [vmem:[#allocation103_spill] sm:$0xff] }
 0x3ce   : > { %v10753_v5 = vadd.f32 %v6308_v43, %v10699_v60  ;;  %v5511_v61 = vmul.f32 %v10567_v32, %v10491_v40  ;;  %v5513_v39 = vmul.f32 %v10632_v44, %v10529_v56  ;;  %v5515_v42 = vmul.f32 %v10622_v3, %v10521_v14  ;;  %v11390_v40 = vld [vmem:[#allocation101_spill] sm:$0xff]  ;;  %v11391_v56 = vld [vmem:[#allocation107_spill] sm:$0xff] }
 0x3cf   : > { %v5995_v36 = vrot.slane %v5994_v20, 1  ;;  %v6218_v37 = vsel %vm6179_vm4, %v5975_v17, %v6217_v51  ;;  %v5516_v0 = vmul.f32 %v10622_v3, %v10525_v54  ;;  %v5637_v29 = vmul.f32 %v10587_v9, %v11388_v4  ;;  %v11394_v3 = vld [vmem:[#allocation102_spill] sm:$0xff] }
 0x3d0   : > { %v6219_v60 = vsel %vm6181_vm5, %v5982_v6, %v6218_v37  ;;  %v5639_v19 = vmul.f32 %v5511_v61, %v11389_v22  ;;  %v5640_v32 = vmul.f32 %v10575_v35, %v11390_v40  ;;  %v5641_v44 = vmul.f32 %v5513_v39, %v11391_v56 }
 0x3d1   : > { %v5996_v34 = vadd.f32 %v5995_v36, %v5994_v20  ;;  %v6220_v14 = vsel %vm6183_vm6, %v5989_v55, %v6219_v60  ;;  %v5642_v15 = vmul.f32 %v10642_v2, %v11392_v8  ;;  %v5643_v54 = vmul.f32 %v5515_v42, %v11393_v26 }
 0x3d2   : > { %v5644_v48 = vmul.f32 %v5516_v0, %v11394_v3  ;;  %v6000_v9 = vrot.slane %v10440_v46, 2  ;;  %v6007_v27 = vrot.slane %v10428_v49, 2  ;;  %v11395_v38 = vrot.slane %v10465_v12, 4 }
 0x3d3   : > { %v6221_v7 = vsel %vm6185_vm7, %v5996_v34, %v6220_v14  ;;  %v6019_v63 = vrot.slane %v10437_v41, 4  ;;  %v6025_v25 = vadd.f32 %v10598_v58, %v5637_v29  ;;  %v6032_v1 = vadd.f32 %v5640_v32, %v5639_v19 }
 0x3d4   : > { %v6013_v35 = vadd.f32 %v11395_v38, %v10465_v12  ;;  %6246 = vrot.lane.b32.xlu1 %v6221_v7, %s7671_s26  ;;  %v6001_v2 = vadd.f32 %v6000_v9, %v10440_v46  ;;  %v6008_v47 = vadd.f32 %v6007_v27, %v10428_v49  ;;  %v6039_v11 = vadd.f32 %v5642_v15, %v5641_v44  ;;  %v11397_v7 = vld [vmem:[#allocation114_spill] sm:$0xff] }
 0x3d5   : > { %v6020_v51 = vadd.f32 %v6019_v63, %v10437_v41  ;;  %v6026_v43 = vrot.slane %v6025_v25, 4  ;;  %v6033_v17 = vrot.slane %v6032_v1, 4  ;;  %v6046_v12 = vadd.f32 %v5644_v48, %v5643_v54 }
 0x3d6   : > { %v6014_v57 = vrot.slane %v6013_v35, 2  ;;  %v6002_v6 = vrot.slane %v6001_v2, 1  ;;  %v6009_v55 = vrot.slane %v6008_v47, 1  ;;  %v6040_v61 = vrot.slane %v6039_v11, 4 }
 0x3d7   : > { %v6021_v39 = vrot.slane %v6020_v51, 2  ;;  %v6027_v58 = vadd.f32 %v6026_v43, %v6025_v25  ;;  %v6034_v42 = vadd.f32 %v6033_v17, %v6032_v1  ;;  %v6047_v36 = vrot.slane %v6046_v12, 4 }
 0x3d8   : > { %v6015_v20 = vadd.f32 %v6014_v57, %v6013_v35  ;;  %v6003_v37 = vadd.f32 %v6002_v6, %v6001_v2  ;;  %v6010_v0 = vadd.f32 %v6009_v55, %v6008_v47  ;;  %v6041_v4 = vadd.f32 %v6040_v61, %v6039_v11  ;;  %v11399_v57 = vld [vmem:[#allocation119_spill] sm:$0xff] }
 0x3d9   : > { %v6022_v49 = vadd.f32 %v6021_v39, %v6020_v51  ;;  %v6028_v29 = vrot.slane %v6027_v58, 2  ;;  %v6035_v60 = vrot.slane %v6034_v42, 2  ;;  %v6048_v22 = vadd.f32 %v6047_v36, %v6046_v12  ;;  %v11400_v51 = vld [vmem:[#allocation121_spill] sm:$0xff]  ;;  %v11402_v12 = vld [vmem:[#allocation120_spill] sm:$0xff] }
 0x3da   : > { %v6016_v46 = vrot.slane %v6015_v20, 1  ;;  %v6042_v19 = vrot.slane %v6041_v4, 2  ;;  %v6222_v40 = vsel %vm6173_vm1, %v6010_v0, %v6003_v37  ;;  %v5527_v32 = vmul.f32 %v10650_v21, %v10539_v10  ;;  %v11396_v21 = vld [vmem:[#allocation115_spill] sm:$0xff] }
 0x3db   : > { %v6023_v56 = vrot.slane %v6022_v49, 1  ;;  %v6029_v44 = vadd.f32 %v6028_v29, %v6027_v58  ;;  %v6036_v34 = vadd.f32 %v6035_v60, %v6034_v42  ;;  %v6049_v14 = vrot.slane %v6048_v22, 2  ;;  %v6243_v29 = vpop.permute.xlu1 %6242 }
 0x3dc   : > { %v6017_v41 = vadd.f32 %v6016_v46, %v6015_v20  ;;  %v6043_v8 = vadd.f32 %v6042_v19, %v6041_v4  ;;  %v5529_v26 = vmul.f32 %v10741_v33, %v10661_v62  ;;  %v5531_v54 = vmul.f32 %v10729_v28, %v10627_v50  ;;  %v11398_v50 = vld [vmem:[#allocation116_spill] sm:$0xff] }
 0x3dd   : > { %v6024_v3 = vadd.f32 %v6023_v56, %v6022_v49  ;;  %v6030_v48 = vrot.slane %v6029_v44, 1  ;;  %v6037_v9 = vrot.slane %v6036_v34, 1  ;;  %v6050_v27 = vadd.f32 %v6049_v14, %v6048_v22  ;;  %v7603_v14 = vld [vmem:[%s7784_s12 + $0x18] sm:$0xff] }
 0x3de   : > { %v6223_v15 = vsel %vm6175_vm2, %v6017_v41, %v6222_v40  ;;  %v6044_v38 = vrot.slane %v6043_v8, 1  ;;  %v5532_v10 = vmul.f32 %v10729_v28, %v10638_v52  ;;  %v5653_v35 = vmul.f32 %v10673_v13, %v11396_v21  ;;  %v11401_v13 = vld [vmem:[#allocation118_spill] sm:$0xff] }
 0x3df   : > { %v5655_v63 = vmul.f32 %v5527_v32, %v11397_v7  ;;  %v6031_v25 = vadd.f32 %v6030_v48, %v6029_v44  ;;  %v6038_v1 = vadd.f32 %v6037_v9, %v6036_v34  ;;  %v6051_v2 = vrot.slane %v6050_v27, 1 }
 0x3e0   : > { %v6224_v62 = vsel %vm6177_vm3, %v6024_v3, %v6223_v15  ;;  %v6045_v33 = vadd.f32 %v6044_v38, %v6043_v8  ;;  %v5656_v47 = vmul.f32 %v10656_v53, %v11398_v50  ;;  %v5657_v11 = vmul.f32 %v5529_v26, %v11399_v57 }
 0x3e1   : > { %v5658_v43 = vmul.f32 %v10745_v31, %v11400_v51  ;;  %v6052_v52 = vadd.f32 %v6051_v2, %v6050_v27  ;;  %v6225_v28 = vsel %vm6179_vm4, %v6031_v25, %v6224_v62  ;;  %v5659_v17 = vmul.f32 %v5531_v54, %v11401_v13 }
 0x3e2   : > { %v5660_v6 = vmul.f32 %v5532_v10, %v11402_v12  ;;  %v6226_v55 = vsel %vm6181_vm5, %v6038_v1, %v6225_v28  ;;  %v6057_v20 = vadd.f32 %v6056_v45, %v10726_v18  ;;  %v6063_v53 = vrot.slane %v10711_v23, 2 }
 0x3e3   : > { %v11403_v61 = vrot.slane %v10634_v24, 4  ;;  %v6227_v31 = vsel %vm6183_vm6, %v6045_v33, %v6226_v55  ;;  %v6075_v58 = vrot.slane %v10615_v59, 4  ;;  %v6081_v42 = vadd.f32 %v10677_v16, %v5653_v35 }
 0x3e4   : > { %v6088_v36 = vadd.f32 %v5656_v47, %v5655_v63  ;;  %v6228_v37 = vsel %vm6185_vm7, %v6052_v52, %v6227_v31  ;;  %v6058_v0 = vrot.slane %v6057_v20, 1  ;;  %v6064_v46 = vadd.f32 %v6063_v53, %v10711_v23 }
 0x3e5   : > { %v6069_v39 = vadd.f32 %v11403_v61, %v10634_v24  ;;  %6248 = vrot.lane.b32.xlu0 %v6228_v37, %s7671_s26  ;;  %v6076_v18 = vadd.f32 %v6075_v58, %v10615_v59  ;;  %v6082_v45 = vrot.slane %v6081_v42, 4  ;;  %v6095_v49 = vadd.f32 %v5658_v43, %v5657_v11  ;;  %v7604_v61 = vld [vmem:[%s7784_s12 + $0x20] sm:$0xff] }
 0x3e6   : > { %v6089_v24 = vrot.slane %v6088_v36, 4  ;;  %v6059_v60 = vadd.f32 %v6058_v0, %v6057_v20  ;;  %v6065_v22 = vrot.slane %v6064_v46, 1  ;;  %v6102_v16 = vadd.f32 %v5660_v6, %v5659_v17 }
 0x3e7   : > { %v6070_v4 = vrot.slane %v6069_v39, 2  ;;  %v6077_v19 = vrot.slane %v6076_v18, 2  ;;  %v6083_v40 = vadd.f32 %v6082_v45, %v6081_v42  ;;  %v6096_v56 = vrot.slane %v6095_v49, 4  ;;  %v7605_v42 = vld [vmem:[%s7784_s12 + $0x28] sm:$0xff] }
 0x3e8   : > { %v6090_v32 = vadd.f32 %v6089_v24, %v6088_v36  ;;  %v6066_v23 = vadd.f32 %v6065_v22, %v6064_v46  ;;  %v6103_v34 = vrot.slane %v6102_v16, 4  ;;  %v6263_v8 = vadd.f32 %v7603_v14, %v6243_v29 }
 0x3e9   : > { %v6071_v41 = vadd.f32 %v6070_v4, %v6069_v39  ;;  %v6078_v59 = vadd.f32 %v6077_v19, %v6076_v18  ;;  %v6084_v15 = vrot.slane %v6083_v40, 2  ;;  %v6097_v54 = vadd.f32 %v6096_v56, %v6095_v49  ;;  %v7606_v4 = vld [vmem:[%s7784_s12 + $0x30] sm:$0xff] }
 0x3ea   : > { %v6091_v26 = vrot.slane %v6090_v32, 2  ;;  %v6104_v48 = vadd.f32 %v6103_v34, %v6102_v16  ;;  %v6229_v9 = vsel %vm6173_vm1, %v6066_v23, %v6059_v60  ;;  %6271 = vst.msk [vmem:[%s10459_s16 + $0x18] sm:$0xff] %vm332_vm0, %v6263_v8  ;;  %v6281_v27 = vsel %vm332_vm0, %v6263_v8, 0.0 }
 0x3eb   : > { %v6072_v44 = vrot.slane %v6071_v41, 1  ;;  %v6079_v38 = vrot.slane %v6078_v59, 1  ;;  %v6085_v10 = vadd.f32 %v6084_v15, %v6083_v40  ;;  %v6098_v35 = vrot.slane %v6097_v54, 2 }
 0x3ec   : > { %v6092_v21 = vadd.f32 %v6091_v26, %v6090_v32  ;;  %v6105_v7 = vrot.slane %v6104_v48, 2  ;;  %v6282_v25 = vadd.f32 %v6281_v27, %v10749_v30  ;;  %v6300_v1 = vmul.f32 %v6263_v8, %v6263_v8  ;;  %v7607_v32 = vld [vmem:[%s7784_s12 + $0x38] sm:$0xff]  ;;  %s268_s12 = scalar_lea.vmem [#allocation2], %s267_s11 }
 0x3ed   : > { %v6073_v3 = vadd.f32 %v6072_v44, %v6071_v41  ;;  %v6080_v2 = vadd.f32 %v6079_v38, %v6078_v59  ;;  %v6086_v62 = vrot.slane %v6085_v10, 1  ;;  %v6099_v50 = vadd.f32 %v6098_v35, %v6097_v54  ;;  %s6354_s17 = sshll.u32 %s268_s12, 4  ;;  %s6355_s17 = int_to_ptr.vmem [resolvable:$true] %s6354_s17 }
 0x3ee   : > { %v6093_v33 = vrot.slane %v6092_v21, 1  ;;  %v6106_v47 = vadd.f32 %v6105_v7, %v6104_v48  ;;  %v6310_v57 = vsel %vm332_vm0, %v6300_v1, 0.0  ;;  %s7608_s9 = scalar_lea.vmem %s6355_s17, 16  ;;  %p7615_p1 = scmp.lt.s32.totalorder %s6355_s17, %s7613_s10 }
 0x3ef   : > { %v6230_v63 = vsel %vm6175_vm2, %v6073_v3, %v6229_v9  ;;  %v6087_v11 = vadd.f32 %v6086_v62, %v6085_v10  ;;  %v6100_v51 = vrot.slane %v6099_v50, 1  ;;  %v6311_v13 = vadd.f32 %v6310_v57, %v10753_v5  ;;  %p7609_p12 = scmp.ne.s32.totalorder %s6355_s17, %s7608_s9  ;;  %p7616_p2 = scmp.lt.s32.totalorder %s7614_s13, %s7608_s9 }
 0x3f0   : > { %v6231_v43 = vsel %vm6177_vm3, %v6080_v2, %v6230_v63  ;;  %v6094_v52 = vadd.f32 %v6093_v33, %v6092_v21  ;;  %v6107_v28 = vrot.slane %v6106_v47, 1 }
 0x3f1   : > { %v6101_v30 = vadd.f32 %v6100_v51, %v6099_v50  ;;  %v6232_v17 = vsel %vm6179_vm4, %v6087_v11, %v6231_v43  ;;  %p7610_p13 = pnand %p7609_p12, %p7746_p5  ;;  %p7617_p3 = por %p7616_p2, %p7615_p1 }
 0x3f2   : > { %v6108_v12 = vadd.f32 %v6107_v28, %v6106_v47  ;;  %v6233_v6 = vsel %vm6181_vm5, %v6094_v52, %v6232_v17 }
 0x3f3   : > { %v6234_v55 = vsel %vm6183_vm6, %v6101_v30, %v6233_v6  ;;  %p7611_p0 = pneg %p7610_p13 }
 0x3f4   : > { %v6235_v20 = vsel %vm6185_vm7, %v6108_v12, %v6234_v55 }
 0x3f5   : > { %6250 = vrot.lane.b32.xlu1 %v6235_v20, %s7671_s26  ;;  %p7618_p4 = pnand %p7617_p3, %p7611_p0 }
 0x42e   : > { %v6245_v53 = vpop.permute.xlu0 %6244 }
 0x42f   : > { %v6264_v39 = vadd.f32 %v7604_v61, %v6245_v53 }
 0x431   : > { %6272 = vst.msk [vmem:[%s10459_s16 + $0x20] sm:$0xff] %vm332_vm0, %v6264_v39  ;;  %v6283_v5 = vsel %vm332_vm0, %v6264_v39, 0.0  ;;  %v6301_v49 = vmul.f32 %v6264_v39, %v6264_v39 }
 0x432   : > { %v6284_v31 = vadd.f32 %v6283_v5, %v6282_v25 }
 0x433   : > { %v6312_v60 = vsel %vm332_vm0, %v6301_v49, 0.0 }
 0x434   : > { %v6313_v16 = vadd.f32 %v6312_v60, %v6311_v13 }
 0x446   : > { %v6247_v58 = vpop.permute.xlu1 %6246 }
 0x447   : > { %v6265_v36 = vadd.f32 %v7605_v42, %v6247_v58 }
 0x449   : > { %6273 = vst.msk [vmem:[%s10459_s16 + $0x28] sm:$0xff] %vm332_vm0, %v6265_v36  ;;  %v6285_v37 = vsel %vm332_vm0, %v6265_v36, 0.0  ;;  %v6302_v29 = vmul.f32 %v6265_v36, %v6265_v36 }
 0x44a   : > { %v6286_v0 = vadd.f32 %v6285_v37, %v6284_v31 }
 0x44b   : > { %v6314_v41 = vsel %vm332_vm0, %v6302_v29, 0.0 }
 0x44c   : > { %v6315_v23 = vadd.f32 %v6314_v41, %v6313_v16 }
 0x457   : > { %v6249_v46 = vpop.permute.xlu0 %6248 }
 0x458   : > { %v6266_v18 = vadd.f32 %v7606_v4, %v6249_v46 }
 0x45a   : > { %6274 = vst.msk [vmem:[%s10459_s16 + $0x30] sm:$0xff] %vm332_vm0, %v6266_v18  ;;  %v6287_v45 = vsel %vm332_vm0, %v6266_v18, 0.0  ;;  %v6303_v22 = vmul.f32 %v6266_v18, %v6266_v18 }
 0x45b   : > { %v6288_v24 = vadd.f32 %v6287_v45, %v6286_v0 }
 0x45c   : > { %v6316_v40 = vsel %vm332_vm0, %v6303_v22, 0.0 }
 0x45d   : > { %v6317_v14 = vadd.f32 %v6316_v40, %v6315_v23 }
 0x467   : > { %v6251_v19 = vpop.permute.xlu1 %6250 }
 0x468   : > { %v6267_v56 = vadd.f32 %v7607_v32, %v6251_v19 }
 0x46a   : > { %6275 = vst.msk [vmem:[%s10459_s16 + $0x38] sm:$0xff] %vm332_vm0, %v6267_v56  ;;  %v6289_v44 = vsel %vm332_vm0, %v6267_v56, 0.0  ;;  %v6304_v34 = vmul.f32 %v6267_v56, %v6267_v56 }
 0x46b   : > { %v6290_v8 = vadd.f32 %v6289_v44, %v6288_v24 }
 0x46c   : > { %v6318_v59 = vsel %vm332_vm0, %v6304_v34, 0.0 }
 0x46d   : > { %v6319_v15 = vadd.f32 %v6318_v59, %v6317_v14  ;;  %v6291_v38 = vrot.slane %v6290_v8, 4 }
 0x46f   : > { %v6320_v26 = vrot.slane %v6319_v15, 4  ;;  %v6292_v10 = vadd.f32 %v6291_v38, %v6290_v8 }
 0x471   : > { %v6321_v54 = vadd.f32 %v6320_v26, %v6319_v15  ;;  %v6293_v21 = vrot.slane %v6292_v10, 2 }
 0x473   : > { %v6322_v3 = vrot.slane %v6321_v54, 2  ;;  %v6294_v35 = vadd.f32 %v6293_v21, %v6292_v10 }
 0x475   : > { %v6323_v48 = vadd.f32 %v6322_v3, %v6321_v54  ;;  %v6295_v7 = vrot.slane %v6294_v35, 1 }
 0x477   : > { %v6324_v9 = vrot.slane %v6323_v48, 1  ;;  %v6296_v63 = vadd.f32 %v6295_v7, %v6294_v35 }
 0x479   : > { %v6325_v27 = vadd.f32 %v6324_v9, %v6323_v48 }
 0x47b   : > { %6327 = vrot.lane.b32.xlu0 %v6325_v27, %s7671_s26 }
 0x4ed   : > { %v6328_v25 = vpop.permute.xlu0 %6327 }
 0x4ee   : > { %v6330_v1 = vsel %vm332_vm0, %v6296_v63, %v6328_v25 }
 0x4ef   : > { %6331 = vst [vmem:[%s268_s12] sm:$0x1] %v6330_v1 }
 0x4f0   : > { %7621 = shalt.err (!%p7618_p4)
}
 0x4f1   : > { %s7622_s26 = scalar_lea.hbm %s10866_s20, 16  ;;  %s7626_s16 = scalar_lea.hbm %s10908_s6, 32 }
 0x4f2   : > { %p7623_p7 = scmp.ne.s32.totalorder %s10866_s20, %s7622_s26  ;;  %p7627_p10 = scmp.lt.s32.totalorder %s10866_s20, %s10908_s6 }
 0x4f3   : > { %p7628_p11 = scmp.lt.s32.totalorder %s7626_s16, %s7622_s26 }
 0x4f4   : > { %p7624_p8 = pnand %p7623_p7, %p7746_p5 }
 0x4f5   : > { %p7629_p12 = por %p7628_p11, %p7627_p10 }
 0x4f6   : > { %p7625_p9 = pneg %p7624_p8 }
 0x4f8   : > { %p7630_p13 = pnand %p7629_p12, %p7625_p9 }
 0x4fa   : > { %7633 = shalt.err (!%p7630_p13)
}
 0x4fb   : > { %7095 = dma.vmem_to_hbm [thread:$0]  (%p7746_p5), %s6355_s17, 16, %s10866_s20, %s6338_s28  }
 0x4fc PF: > { %p7101_p0 = scmp.ge.s32.totalorder %s7668_s24, 2  ;;  %s6374_s12 = sand.u32 1, %s7656_s21  }
 0x4fd   : > { %s6375_s18 = scalar_lea.sflag [#allocation3], %s6374_s12 }
 0x4fe   : > { %p7098_p1 = pnand %p7101_p0, %p7750_p6 }
 0x500   : > { %p7099_p2 = pneg %p7098_p1 }
 0x502   : > { %7651 = dma.done.wait (%p7099_p2), %s6375_s18, 16  }
 0x503   : > { %7653 = vsyncadd (%p7099_p2), %s6375_s18, 4294967280  ;;  %p17_p3 = scmp.ge.s32.totalorder %s7733_s27, 4   ;;  %s11404_s21 = smov %s7660_s22 }
 0x504   : > { %s11405_s22 = smov %s7664_s23  ;;  %s11406_s23 = smov %s7744_s30 }
 0x505   : > { %s11407_s24 = smov %s7733_s27  ;;  %19 = sbr.rel (!%p17_p3) target bundleno = 3 (0x3), region = 90 }
 0x50a   :  { %6379 = vsyncpa [#allocation3], 1 }
 0x50b   :  { %6381 = vsyncpa [#allocation3 + $0x1], 1 }

</bundles_post_ra>
